<compile_context>
chip_gen: v7x
topology: tpu7x:2x2x1
jax: 0.10.0
libtpu: 0.0.40
codegen_flags: <defaults>
</compile_context>

<pallas_src>
import math

import jax
import jax.numpy as jnp
from jax import lax
from jax.experimental import pallas as pl
from jax.experimental.pallas import tpu as pltpu

# ------------------------- tiny T5 configuration ---------------------------
B       = 2      # batch
S_SRC   = 8      # encoder sequence length
S_TGT   = 8      # decoder sequence length
VOCAB   = 128    # vocab size (lane-dense)
D_MODEL = 64     # d_model
N_HEAD  = 4      # attention heads
D_HEAD  = 16     # d_kv
HDH     = N_HEAD * D_HEAD     # 64 == D_MODEL
D_FF    = 128    # feed-forward inner dim
N_BUCKETS = 32   # relative-attention buckets
MAX_DIST  = 128
PAD_ID    = 0
IGNORE_ID = -100
NEG_INF   = -1e9


# ------------------------- in-kernel helper math ----------------------------
def _rms(x, w):
    """T5LayerNorm: no mean subtraction, no bias.  x:(S,D) f32, w:(1,D) f32."""
    var = jnp.mean(x * x, axis=-1, keepdims=True)
    return x * lax.rsqrt(var + 1e-6) * w


def _attend(q, k, v, bias_fn):
    """Per-head attention, heads unrolled as static column slices of [S, H*Dh].

    T5 attention has NO 1/sqrt(d) scale.  bias_fn(h) returns the additive bias
    (position bias + masks) for head h, broadcastable to (Sq, Sk).
    """
    outs = []
    for h in range(N_HEAD):
        sl = slice(h * D_HEAD, (h + 1) * D_HEAD)
        qh = q[:, sl].astype(jnp.bfloat16)
        kh = k[:, sl].astype(jnp.bfloat16)
        vh = v[:, sl].astype(jnp.bfloat16)
        # contract last dims directly (q @ k^T without an explicit transpose)
        s = lax.dot_general(qh, kh, (((1,), (1,)), ((), ())),
                            preferred_element_type=jnp.float32)
        s = s + bias_fn(h)
        m = jnp.max(s, axis=-1, keepdims=True)
        p = jnp.exp(s - m)
        p = p * pl.reciprocal(jnp.sum(p, axis=-1, keepdims=True), approx=True)
        outs.append(jnp.dot(p.astype(jnp.bfloat16), vh,
                            preferred_element_type=jnp.float32))
    return jnp.concatenate(outs, axis=-1)          # (Sq, H*Dh)


# ------------------------------ fused kernels --------------------------------
def _encoder_kernel(x_ref, mask_ref, pb_ref,
                    ln1_ref, qkv_ref, ow_ref,
                    ln2_ref, wi_ref, wo_ref, lnf_ref,
                    out_ref):
    """One batch element: self-attn block + FFN block + final RMSNorm."""
    x = x_ref[0]              # (Ss, D) f32
    mask = mask_ref[0]        # (1, Ss) additive padding mask

    # --- self-attention (pre-norm, fused QKV, residual) ---
    xn = _rms(x, ln1_ref[...])
    qkv = jnp.dot(xn.astype(jnp.bfloat16), qkv_ref[...],
                  preferred_element_type=jnp.float32)          # (Ss, 3*HDh)
    q, k, v = qkv[:, :HDH], qkv[:, HDH:2 * HDH], qkv[:, 2 * HDH:]
    att = _attend(q, k, v, lambda h: pb_ref[h] + mask)
    x = x + jnp.dot(att.astype(jnp.bfloat16), ow_ref[...],
                    preferred_element_type=jnp.float32)

    # --- ReLU feed-forward (pre-norm, residual) ---
    xn = _rms(x, ln2_ref[...])
    hmid = jnp.maximum(jnp.dot(xn.astype(jnp.bfloat16), wi_ref[...],
                               preferred_element_type=jnp.float32), 0.0)
    x = x + jnp.dot(hmid.astype(jnp.bfloat16), wo_ref[...],
                    preferred_element_type=jnp.float32)

    out_ref[0] = _rms(x, lnf_ref[...])


def _decoder_kernel(y_ref, enc_ref, dpad_ref, emask_ref, pb_ref,
                    sln_ref, sqkv_ref, so_ref,
                    cln_ref, cq_ref, ckv_ref, co_ref,
                    fln_ref, wi_ref, wo_ref, lnf_ref,
                    out_ref):
    """One batch element: causal self-attn + cross-attn + FFN + final RMSNorm."""
    y = y_ref[0]              # (St, D)
    enc = enc_ref[0]          # (Ss, D)
    dpad = dpad_ref[0]        # (1, St) additive decoder padding mask
    emask = emask_ref[0]      # (1, Ss) additive encoder padding mask

    # causal additive mask built in-kernel (no [B,H,S,S] HBM materialization)
    row = lax.broadcasted_iota(jnp.int32, (S_TGT, S_TGT), 0)
    col = lax.broadcasted_iota(jnp.int32, (S_TGT, S_TGT), 1)
    causal_add = jnp.where(col > row, jnp.float32(NEG_INF), jnp.float32(0.0))

    # --- masked self-attention with relative position bias ---
    yn = _rms(y, sln_ref[...])
    qkv = jnp.dot(yn.astype(jnp.bfloat16), sqkv_ref[...],
                  preferred_element_type=jnp.float32)
    q, k, v = qkv[:, :HDH], qkv[:, HDH:2 * HDH], qkv[:, 2 * HDH:]
    att = _attend(q, k, v, lambda h: pb_ref[h] + causal_add + dpad)
    y = y + jnp.dot(att.astype(jnp.bfloat16), so_ref[...],
                    preferred_element_type=jnp.float32)

    # --- cross-attention over the encoder output (no position bias in T5) ---
    yn = _rms(y, cln_ref[...])
    qc = jnp.dot(yn.astype(jnp.bfloat16), cq_ref[...],
                 preferred_element_type=jnp.float32)           # (St, HDh)
    kvc = jnp.dot(enc.astype(jnp.bfloat16), ckv_ref[...],
                  preferred_element_type=jnp.float32)          # (Ss, 2*HDh)
    kc, vc = kvc[:, :HDH], kvc[:, HDH:]
    attc = _attend(qc, kc, vc, lambda h: emask)
    y = y + jnp.dot(attc.astype(jnp.bfloat16), co_ref[...],
                    preferred_element_type=jnp.float32)

    # --- ReLU feed-forward ---
    yn = _rms(y, fln_ref[...])
    hmid = jnp.maximum(jnp.dot(yn.astype(jnp.bfloat16), wi_ref[...],
                               preferred_element_type=jnp.float32), 0.0)
    y = y + jnp.dot(hmid.astype(jnp.bfloat16), wo_ref[...],
                    preferred_element_type=jnp.float32)

    out_ref[0] = _rms(y, lnf_ref[...])


def _lmhead_ce_kernel(y_ref, wt_ref, labels_ref, logits_ref, loss_ref):
    """Tied LM head (scaled by d_model**-0.5) fused with mean cross-entropy."""
    y = y_ref[...] * (D_MODEL ** -0.5)
    logits = jnp.dot(y.astype(jnp.bfloat16), wt_ref[...],
                     preferred_element_type=jnp.float32)       # (N, V)
    logits_ref[...] = logits

    labels = labels_ref[...]                                   # (N, 1) int32
    m = jnp.max(logits, axis=-1, keepdims=True)
    lse = jnp.log(jnp.sum(jnp.exp(logits - m), axis=-1, keepdims=True)) + m
    col = lax.broadcasted_iota(jnp.int32, logits.shape, 1)
    picked = jnp.sum(jnp.where(col == labels, logits, 0.0), axis=-1, keepdims=True)
    valid = (labels != IGNORE_ID).astype(jnp.float32)
    nll = (lse - picked) * valid
    loss_ref[0] = jnp.sum(nll) / jnp.maximum(jnp.sum(valid), 1.0)


# ------------------------------ pallas wrappers ------------------------------
def _bcast_spec(shape):
    """Full-array block reused for every grid step (weights / position bias)."""
    zero = (0,) * len(shape)
    return pl.BlockSpec(shape, lambda b: zero)


def encoder_forward(p_enc, x, enc_mask_add, pos_bias):
    return pl.pallas_call(
        _encoder_kernel,
        out_shape=jax.ShapeDtypeStruct((B, S_SRC, D_MODEL), jnp.float32),
        grid=(B,),
        in_specs=[
            pl.BlockSpec((1, S_SRC, D_MODEL), lambda b: (b, 0, 0)),   # x
            pl.BlockSpec((1, 1, S_SRC), lambda b: (b, 0, 0)),         # pad mask
            _bcast_spec((N_HEAD, S_SRC, S_SRC)),                      # pos bias
            _bcast_spec((1, D_MODEL)),                                # attn ln
            _bcast_spec((D_MODEL, 3 * HDH)),                          # fused qkv
            _bcast_spec((HDH, D_MODEL)),                              # out proj
            _bcast_spec((1, D_MODEL)),                                # ffn ln
            _bcast_spec((D_MODEL, D_FF)),                             # wi
            _bcast_spec((D_FF, D_MODEL)),                             # wo
            _bcast_spec((1, D_MODEL)),                                # final ln
        ],
        out_specs=pl.BlockSpec((1, S_SRC, D_MODEL), lambda b: (b, 0, 0)),
        compiler_params=pltpu.CompilerParams(dimension_semantics=("parallel",)),
    )(x, enc_mask_add, pos_bias,
      p_enc["attn_ln"], p_enc["qkv"], p_enc["o"],
      p_enc["ffn_ln"], p_enc["wi"], p_enc["wo"], p_enc["final_ln"])


def decoder_forward(p_dec, y, enc_out, dec_pad_add, enc_mask_add, pos_bias):
    return pl.pallas_call(
        _decoder_kernel,
        out_shape=jax.ShapeDtypeStruct((B, S_TGT, D_MODEL), jnp.float32),
        grid=(B,),
        in_specs=[
            pl.BlockSpec((1, S_TGT, D_MODEL), lambda b: (b, 0, 0)),   # y
            pl.BlockSpec((1, S_SRC, D_MODEL), lambda b: (b, 0, 0)),   # enc out
            pl.BlockSpec((1, 1, S_TGT), lambda b: (b, 0, 0)),         # dec pad
            pl.BlockSpec((1, 1, S_SRC), lambda b: (b, 0, 0)),         # enc pad
            _bcast_spec((N_HEAD, S_TGT, S_TGT)),                      # pos bias
            _bcast_spec((1, D_MODEL)),                                # self ln
            _bcast_spec((D_MODEL, 3 * HDH)),                          # self qkv
            _bcast_spec((HDH, D_MODEL)),                              # self o
            _bcast_spec((1, D_MODEL)),                                # cross ln
            _bcast_spec((D_MODEL, HDH)),                              # cross q
            _bcast_spec((D_MODEL, 2 * HDH)),                          # cross kv
            _bcast_spec((HDH, D_MODEL)),                              # cross o
            _bcast_spec((1, D_MODEL)),                                # ffn ln
            _bcast_spec((D_MODEL, D_FF)),                             # wi
            _bcast_spec((D_FF, D_MODEL)),                             # wo
            _bcast_spec((1, D_MODEL)),                                # final ln
        ],
        out_specs=pl.BlockSpec((1, S_TGT, D_MODEL), lambda b: (b, 0, 0)),
        compiler_params=pltpu.CompilerParams(dimension_semantics=("parallel",)),
    )(y, enc_out, dec_pad_add, enc_mask_add, pos_bias,
      p_dec["self_ln"], p_dec["self_qkv"], p_dec["self_o"],
      p_dec["cross_ln"], p_dec["cross_q"], p_dec["cross_kv"], p_dec["cross_o"],
      p_dec["ffn_ln"], p_dec["wi"], p_dec["wo"], p_dec["final_ln"])


def lm_head_and_loss(y_flat, w_t, labels_flat):
    n = y_flat.shape[0]
    logits, loss = pl.pallas_call(
        _lmhead_ce_kernel,
        out_shape=(jax.ShapeDtypeStruct((n, VOCAB), jnp.float32),
                   jax.ShapeDtypeStruct((1,), jnp.float32)),
        in_specs=[pl.BlockSpec(memory_space=pltpu.MemorySpace.VMEM)] * 3,
        out_specs=(pl.BlockSpec(memory_space=pltpu.MemorySpace.VMEM),
                   pl.BlockSpec(memory_space=pltpu.MemorySpace.SMEM)),
    )(y_flat, w_t, labels_flat.reshape(n, 1).astype(jnp.int32))
    return loss[0], logits


# --------------------------- plain-JAX glue ----------------------------------
def _relative_position_bucket(relative_position, bidirectional,
                              num_buckets=N_BUCKETS, max_distance=MAX_DIST):
    relative_buckets = jnp.zeros_like(relative_position)
    if bidirectional:
        num_buckets = num_buckets // 2
        relative_buckets = relative_buckets + (relative_position > 0).astype(jnp.int32) * num_buckets
        relative_position = jnp.abs(relative_position)
    else:
        relative_position = -jnp.minimum(relative_position, 0)
    max_exact = num_buckets // 2
    is_small = relative_position < max_exact
    rel_if_large = max_exact + (
        jnp.log(jnp.maximum(relative_position, 1).astype(jnp.float32) / max_exact)
        / math.log(max_distance / max_exact) * (num_buckets - max_exact)
    ).astype(jnp.int32)
    rel_if_large = jnp.minimum(rel_if_large, num_buckets - 1)
    return relative_buckets + jnp.where(is_small, relative_position, rel_if_large)


def compute_position_bias(q_len, k_len, bidirectional, rel_emb):
    ctx = jnp.arange(q_len)[:, None]
    mem = jnp.arange(k_len)[None, :]
    buckets = _relative_position_bucket(mem - ctx, bidirectional)
    values = rel_emb[buckets]                 # (q_len, k_len, H)
    return jnp.transpose(values, (2, 0, 1))   # (H, q_len, k_len)


def t5_forward(params, input_ids, attention_mask, labels, decoder_attention_mask):
    """Returns (loss, lm_logits) — what Trainer.training_step / validation_step compute."""
    # embedding lookups (gathers) stay in plain JAX
    x = params["emb"][input_ids]                                   # (B, Ss, D)
    dec_input = jnp.concatenate(
        [jnp.full((B, 1), PAD_ID, dtype=labels.dtype), labels[:, :-1]], axis=1)
    y = params["emb"][dec_input]                                   # (B, St, D)

    # additive padding masks, [B, 1, Sk]; fully-masked rows degrade to a uniform
    # softmax (harmless here, masks are never all-zero in this setup)
    enc_mask_add = (1.0 - attention_mask.astype(jnp.float32))[:, None, :] * NEG_INF
    dec_pad_add = (1.0 - decoder_attention_mask.astype(jnp.float32))[:, None, :] * NEG_INF

    enc_pos_bias = compute_position_bias(S_SRC, S_SRC, True, params["enc_rel"])
    dec_pos_bias = compute_position_bias(S_TGT, S_TGT, False, params["dec_rel"])

    enc_out = encoder_forward(params["enc"], x, enc_mask_add, enc_pos_bias)
    dec_out = decoder_forward(params["dec"], y, enc_out,
                              dec_pad_add, enc_mask_add, dec_pos_bias)

    loss, logits = lm_head_and_loss(dec_out.reshape(B * S_TGT, D_MODEL),
                                    params["lm_head_T"], labels.reshape(-1))
    return loss, logits.reshape(B, S_TGT, VOCAB)


# ----------------------------- parameter init --------------------------------
def init_params(key):
    ks = iter(jax.random.split(key, 32))   # more keys than needed (19 consumed)

    def randn(shape, scale=1.0):
        return jax.random.normal(next(ks), shape, jnp.float32) * scale

    def attn_weights():
        q = randn((D_MODEL, HDH), (D_MODEL * D_HEAD) ** -0.5)
        k = randn((D_MODEL, HDH), D_MODEL ** -0.5)
        v = randn((D_MODEL, HDH), D_MODEL ** -0.5)
        o = randn((HDH, D_MODEL), HDH ** -0.5)
        return q, k, v, o

    ln = lambda: jnp.ones((1, D_MODEL), jnp.float32)      # (1,D) layout hoisted
    bf = lambda a: a.astype(jnp.bfloat16)                 # MXU operands in bf16

    emb = randn((VOCAB, D_MODEL))
    enc_rel = randn((N_BUCKETS, N_HEAD), D_MODEL ** -0.5)
    dec_rel = randn((N_BUCKETS, N_HEAD), D_MODEL ** -0.5)

    eq, ek, ev, eo = attn_weights()
    enc = {"attn_ln": ln(),
           "qkv": bf(jnp.concatenate([eq, ek, ev], axis=1)),
           "o": bf(eo),
           "ffn_ln": ln(),
           "wi": bf(randn((D_MODEL, D_FF), D_MODEL ** -0.5)),
           "wo": bf(randn((D_FF, D_MODEL), D_FF ** -0.5)),
           "final_ln": ln()}

    sq, sk, sv, so = attn_weights()
    cq, ck, cv, co = attn_weights()
    dec = {"self_ln": ln(),
           "self_qkv": bf(jnp.concatenate([sq, sk, sv], axis=1)),
           "self_o": bf(so),
           "cross_ln": ln(),
           "cross_q": bf(cq),
           "cross_kv": bf(jnp.concatenate([ck, cv], axis=1)),
           "cross_o": bf(co),
           "ffn_ln": ln(),
           "wi": bf(randn((D_MODEL, D_FF), D_MODEL ** -0.5)),
           "wo": bf(randn((D_FF, D_MODEL), D_FF ** -0.5)),
           "final_ln": ln()}

    return {"emb": emb,                       # f32 table for the gather
            "lm_head_T": bf(emb.T),           # tied head, pre-transposed bf16
            "enc_rel": enc_rel, "dec_rel": dec_rel,
            "enc": enc, "dec": dec}


# TODO(synk): tokenizer batch_encode_plus, beam-search generate(), optimizer /
# polynomial-decay scheduler steps, backward pass and text decoding/evaluation
# have no Pallas equivalent; only the T5 forward (logits + loss) is implemented.

if __name__ == "__main__":
    key = jax.random.PRNGKey(0)
    kp, ki, kl = jax.random.split(key, 3)
    params = init_params(kp)

    input_ids = jax.random.randint(ki, (B, S_SRC), 3, VOCAB, dtype=jnp.int32)
    labels = jax.random.randint(kl, (B, S_TGT), 3, VOCAB, dtype=jnp.int32)
    attention_mask = jnp.ones((B, S_SRC), jnp.int32)
    decoder_attention_mask = jnp.ones((B, S_TGT), jnp.int32)

    loss, logits = jax.jit(t5_forward)(params, input_ids, attention_mask,
                                       labels, decoder_attention_mask)
    jax.block_until_ready((loss, logits))
    assert logits.shape == (B, S_TGT, VOCAB)
    assert jnp.isfinite(loss)
    print("KERNEL_OK")
</pallas_src>

<mosaic_0001>
module attributes {stable_mosaic.version = 11 : i64} {
  func.func @_encoder_kernel(%arg0: i32, %arg1: memref<1x8x64xf32, #tpu.memory_space<vmem>>, %arg2: memref<1x1x8xf32, #tpu.memory_space<vmem>>, %arg3: memref<4x8x8xf32, #tpu.memory_space<vmem>>, %arg4: memref<1x64xf32, #tpu.memory_space<vmem>>, %arg5: memref<64x192xbf16, #tpu.memory_space<vmem>>, %arg6: memref<64x64xbf16, #tpu.memory_space<vmem>>, %arg7: memref<1x64xf32, #tpu.memory_space<vmem>>, %arg8: memref<64x128xbf16, #tpu.memory_space<vmem>>, %arg9: memref<128x64xbf16, #tpu.memory_space<vmem>>, %arg10: memref<1x64xf32, #tpu.memory_space<vmem>>, %arg11: memref<1x8x64xf32, #tpu.memory_space<vmem>>) attributes {dimension_semantics = [#tpu.dimension_semantics<parallel>], iteration_bounds = array<i64: 2>, scalar_prefetch = 0 : i64, scratch_operands = 0 : i64, tpu.core_type = #tpu.core_type<tc>, window_params = [{transform_indices = @transform_0, window_bounds = array<i64: 1, 8, 64>}, {transform_indices = @transform_1, window_bounds = array<i64: 1, 1, 8>}, {pipeline_mode = #tpu.pipeline_mode<synchronous>, transform_indices = @transform_2, window_bounds = array<i64: 4, 8, 8>}, {pipeline_mode = #tpu.pipeline_mode<synchronous>, transform_indices = @transform_3, window_bounds = array<i64: 1, 64>}, {pipeline_mode = #tpu.pipeline_mode<synchronous>, transform_indices = @transform_4, window_bounds = array<i64: 64, 192>}, {pipeline_mode = #tpu.pipeline_mode<synchronous>, transform_indices = @transform_5, window_bounds = array<i64: 64, 64>}, {pipeline_mode = #tpu.pipeline_mode<synchronous>, transform_indices = @transform_6, window_bounds = array<i64: 1, 64>}, {pipeline_mode = #tpu.pipeline_mode<synchronous>, transform_indices = @transform_7, window_bounds = array<i64: 64, 128>}, {pipeline_mode = #tpu.pipeline_mode<synchronous>, transform_indices = @transform_8, window_bounds = array<i64: 128, 64>}, {pipeline_mode = #tpu.pipeline_mode<synchronous>, transform_indices = @transform_9, window_bounds = array<i64: 1, 64>}, {transform_indices = @transform_10, window_bounds = array<i64: 1, 8, 64>}]} {
    %c0 = arith.constant 0 : index
    %c0_0 = arith.constant 0 : index
    %c0_1 = arith.constant 0 : index
    %0 = vector.load %arg1[%c0, %c0_0, %c0_1] : memref<1x8x64xf32, #tpu.memory_space<vmem>>, vector<1x8x64xf32>
    %1 = vector.shape_cast %0 : vector<1x8x64xf32> to vector<8x64xf32>
    %c0_2 = arith.constant 0 : index
    %c0_3 = arith.constant 0 : index
    %c0_4 = arith.constant 0 : index
    %2 = vector.load %arg2[%c0_2, %c0_3, %c0_4] : memref<1x1x8xf32, #tpu.memory_space<vmem>>, vector<1x1x8xf32>
    %3 = vector.shape_cast %2 : vector<1x1x8xf32> to vector<1x8xf32>
    %c0_5 = arith.constant 0 : index
    %c0_6 = arith.constant 0 : index
    %4 = vector.load %arg4[%c0_5, %c0_6] : memref<1x64xf32, #tpu.memory_space<vmem>>, vector<1x64xf32>
    %5 = arith.mulf %1, %1 : vector<8x64xf32>
    %cst = arith.constant dense<0.000000e+00> : vector<8xf32>
    %6 = vector.multi_reduction <add>, %5, %cst [1] : vector<8x64xf32> to vector<8xf32>
    %7 = vector.shape_cast %6 : vector<8xf32> to vector<8x1xf32>
    %cst_7 = arith.constant 6.400000e+01 : f32
    %8 = vector.broadcast %cst_7 : f32 to vector<8x1xf32>
    %9 = arith.divf %7, %8 : vector<8x1xf32>
    %cst_8 = arith.constant 9.99999997E-7 : f32
    %10 = vector.broadcast %cst_8 : f32 to vector<8x1xf32>
    %11 = arith.addf %9, %10 : vector<8x1xf32>
    %12 = math.rsqrt %11 : vector<8x1xf32>
    %13 = vector.broadcast %12 : vector<8x1xf32> to vector<8x64xf32>
    %14 = arith.mulf %1, %13 : vector<8x64xf32>
    %15 = vector.broadcast %4 : vector<1x64xf32> to vector<8x64xf32>
    %16 = arith.mulf %14, %15 : vector<8x64xf32>
    %17 = arith.truncf %16 : vector<8x64xf32> to vector<8x64xbf16>
    %c0_9 = arith.constant 0 : index
    %c0_10 = arith.constant 0 : index
    %18 = vector.load %arg5[%c0_9, %c0_10] : memref<64x192xbf16, #tpu.memory_space<vmem>>, vector<64x192xbf16>
    %cst_11 = arith.constant dense<0.000000e+00> : vector<8x192xf32>
    %19 = tpu.matmul %17, %18, %cst_11 {dimension_numbers = #tpu.dot_dimension_numbers<[1], [0], [0], [1], [0, 0, 1, 1], [], []>} : vector<8x64xbf16>, vector<64x192xbf16>, vector<8x192xf32> -> vector<8x192xf32>
    %20 = vector.extract_strided_slice %19 {offsets = [0, 0], sizes = [8, 64], strides = [1, 1]} : vector<8x192xf32> to vector<8x64xf32>
    %21 = vector.extract_strided_slice %19 {offsets = [0, 64], sizes = [8, 64], strides = [1, 1]} : vector<8x192xf32> to vector<8x64xf32>
    %22 = vector.extract_strided_slice %19 {offsets = [0, 128], sizes = [8, 64], strides = [1, 1]} : vector<8x192xf32> to vector<8x64xf32>
    %23 = vector.extract_strided_slice %20 {offsets = [0, 0], sizes = [8, 16], strides = [1, 1]} : vector<8x64xf32> to vector<8x16xf32>
    %24 = arith.truncf %23 : vector<8x16xf32> to vector<8x16xbf16>
    %25 = vector.extract_strided_slice %21 {offsets = [0, 0], sizes = [8, 16], strides = [1, 1]} : vector<8x64xf32> to vector<8x16xf32>
    %26 = arith.truncf %25 : vector<8x16xf32> to vector<8x16xbf16>
    %27 = vector.extract_strided_slice %22 {offsets = [0, 0], sizes = [8, 16], strides = [1, 1]} : vector<8x64xf32> to vector<8x16xf32>
    %28 = arith.truncf %27 : vector<8x16xf32> to vector<8x16xbf16>
    %cst_12 = arith.constant dense<0.000000e+00> : vector<8x8xf32>
    %29 = tpu.matmul %24, %26, %cst_12 {dimension_numbers = #tpu.dot_dimension_numbers<[1], [1], [0], [0], [0, 0, 1, 0], [], []>} : vector<8x16xbf16>, vector<8x16xbf16>, vector<8x8xf32> -> vector<8x8xf32>
    %c0_13 = arith.constant 0 : index
    %c0_14 = arith.constant 0 : index
    %c0_15 = arith.constant 0 : index
    %30 = vector.load %arg3[%c0_13, %c0_14, %c0_15] : memref<4x8x8xf32, #tpu.memory_space<vmem>>, vector<1x8x8xf32>
    %31 = vector.shape_cast %30 : vector<1x8x8xf32> to vector<8x8xf32>
    %32 = vector.broadcast %3 : vector<1x8xf32> to vector<8x8xf32>
    %33 = arith.addf %31, %32 : vector<8x8xf32>
    %34 = arith.addf %29, %33 : vector<8x8xf32>
    %cst_16 = arith.constant dense<0xFF800000> : vector<8xf32>
    %35 = vector.multi_reduction <maximumf>, %34, %cst_16 [1] : vector<8x8xf32> to vector<8xf32>
    %36 = vector.shape_cast %35 : vector<8xf32> to vector<8x1xf32>
    %37 = vector.broadcast %36 : vector<8x1xf32> to vector<8x8xf32>
    %38 = arith.subf %34, %37 : vector<8x8xf32>
    %39 = math.exp %38 : vector<8x8xf32>
    %cst_17 = arith.constant dense<0.000000e+00> : vector<8xf32>
    %40 = vector.multi_reduction <add>, %39, %cst_17 [1] : vector<8x8xf32> to vector<8xf32>
    %41 = vector.shape_cast %40 : vector<8xf32> to vector<8x1xf32>
    %42 = tpu.reciprocal %41 {approx = true} : vector<8x1xf32> -> vector<8x1xf32>
    %43 = vector.broadcast %42 : vector<8x1xf32> to vector<8x8xf32>
    %44 = arith.mulf %39, %43 : vector<8x8xf32>
    %45 = arith.truncf %44 : vector<8x8xf32> to vector<8x8xbf16>
    %cst_18 = arith.constant dense<0.000000e+00> : vector<8x16xf32>
    %46 = tpu.matmul %45, %28, %cst_18 {dimension_numbers = #tpu.dot_dimension_numbers<[1], [0], [0], [1], [0, 0, 1, 1], [], []>} : vector<8x8xbf16>, vector<8x16xbf16>, vector<8x16xf32> -> vector<8x16xf32>
    %47 = vector.extract_strided_slice %20 {offsets = [0, 16], sizes = [8, 16], strides = [1, 1]} : vector<8x64xf32> to vector<8x16xf32>
    %48 = arith.truncf %47 : vector<8x16xf32> to vector<8x16xbf16>
    %49 = vector.extract_strided_slice %21 {offsets = [0, 16], sizes = [8, 16], strides = [1, 1]} : vector<8x64xf32> to vector<8x16xf32>
    %50 = arith.truncf %49 : vector<8x16xf32> to vector<8x16xbf16>
    %51 = vector.extract_strided_slice %22 {offsets = [0, 16], sizes = [8, 16], strides = [1, 1]} : vector<8x64xf32> to vector<8x16xf32>
    %52 = arith.truncf %51 : vector<8x16xf32> to vector<8x16xbf16>
    %cst_19 = arith.constant dense<0.000000e+00> : vector<8x8xf32>
    %53 = tpu.matmul %48, %50, %cst_19 {dimension_numbers = #tpu.dot_dimension_numbers<[1], [1], [0], [0], [0, 0, 1, 0], [], []>} : vector<8x16xbf16>, vector<8x16xbf16>, vector<8x8xf32> -> vector<8x8xf32>
    %c1 = arith.constant 1 : index
    %c0_20 = arith.constant 0 : index
    %c0_21 = arith.constant 0 : index
    %54 = vector.load %arg3[%c1, %c0_20, %c0_21] : memref<4x8x8xf32, #tpu.memory_space<vmem>>, vector<1x8x8xf32>
    %55 = vector.shape_cast %54 : vector<1x8x8xf32> to vector<8x8xf32>
    %56 = vector.broadcast %3 : vector<1x8xf32> to vector<8x8xf32>
    %57 = arith.addf %55, %56 : vector<8x8xf32>
    %58 = arith.addf %53, %57 : vector<8x8xf32>
    %cst_22 = arith.constant dense<0xFF800000> : vector<8xf32>
    %59 = vector.multi_reduction <maximumf>, %58, %cst_22 [1] : vector<8x8xf32> to vector<8xf32>
    %60 = vector.shape_cast %59 : vector<8xf32> to vector<8x1xf32>
    %61 = vector.broadcast %60 : vector<8x1xf32> to vector<8x8xf32>
    %62 = arith.subf %58, %61 : vector<8x8xf32>
    %63 = math.exp %62 : vector<8x8xf32>
    %cst_23 = arith.constant dense<0.000000e+00> : vector<8xf32>
    %64 = vector.multi_reduction <add>, %63, %cst_23 [1] : vector<8x8xf32> to vector<8xf32>
    %65 = vector.shape_cast %64 : vector<8xf32> to vector<8x1xf32>
    %66 = tpu.reciprocal %65 {approx = true} : vector<8x1xf32> -> vector<8x1xf32>
    %67 = vector.broadcast %66 : vector<8x1xf32> to vector<8x8xf32>
    %68 = arith.mulf %63, %67 : vector<8x8xf32>
    %69 = arith.truncf %68 : vector<8x8xf32> to vector<8x8xbf16>
    %cst_24 = arith.constant dense<0.000000e+00> : vector<8x16xf32>
    %70 = tpu.matmul %69, %52, %cst_24 {dimension_numbers = #tpu.dot_dimension_numbers<[1], [0], [0], [1], [0, 0, 1, 1], [], []>} : vector<8x8xbf16>, vector<8x16xbf16>, vector<8x16xf32> -> vector<8x16xf32>
    %71 = vector.extract_strided_slice %20 {offsets = [0, 32], sizes = [8, 16], strides = [1, 1]} : vector<8x64xf32> to vector<8x16xf32>
    %72 = arith.truncf %71 : vector<8x16xf32> to vector<8x16xbf16>
    %73 = vector.extract_strided_slice %21 {offsets = [0, 32], sizes = [8, 16], strides = [1, 1]} : vector<8x64xf32> to vector<8x16xf32>
    %74 = arith.truncf %73 : vector<8x16xf32> to vector<8x16xbf16>
    %75 = vector.extract_strided_slice %22 {offsets = [0, 32], sizes = [8, 16], strides = [1, 1]} : vector<8x64xf32> to vector<8x16xf32>
    %76 = arith.truncf %75 : vector<8x16xf32> to vector<8x16xbf16>
    %cst_25 = arith.constant dense<0.000000e+00> : vector<8x8xf32>
    %77 = tpu.matmul %72, %74, %cst_25 {dimension_numbers = #tpu.dot_dimension_numbers<[1], [1], [0], [0], [0, 0, 1, 0], [], []>} : vector<8x16xbf16>, vector<8x16xbf16>, vector<8x8xf32> -> vector<8x8xf32>
    %c2 = arith.constant 2 : index
    %c0_26 = arith.constant 0 : index
    %c0_27 = arith.constant 0 : index
    %78 = vector.load %arg3[%c2, %c0_26, %c0_27] : memref<4x8x8xf32, #tpu.memory_space<vmem>>, vector<1x8x8xf32>
    %79 = vector.shape_cast %78 : vector<1x8x8xf32> to vector<8x8xf32>
    %80 = vector.broadcast %3 : vector<1x8xf32> to vector<8x8xf32>
    %81 = arith.addf %79, %80 : vector<8x8xf32>
    %82 = arith.addf %77, %81 : vector<8x8xf32>
    %cst_28 = arith.constant dense<0xFF800000> : vector<8xf32>
    %83 = vector.multi_reduction <maximumf>, %82, %cst_28 [1] : vector<8x8xf32> to vector<8xf32>
    %84 = vector.shape_cast %83 : vector<8xf32> to vector<8x1xf32>
    %85 = vector.broadcast %84 : vector<8x1xf32> to vector<8x8xf32>
    %86 = arith.subf %82, %85 : vector<8x8xf32>
    %87 = math.exp %86 : vector<8x8xf32>
    %cst_29 = arith.constant dense<0.000000e+00> : vector<8xf32>
    %88 = vector.multi_reduction <add>, %87, %cst_29 [1] : vector<8x8xf32> to vector<8xf32>
    %89 = vector.shape_cast %88 : vector<8xf32> to vector<8x1xf32>
    %90 = tpu.reciprocal %89 {approx = true} : vector<8x1xf32> -> vector<8x1xf32>
    %91 = vector.broadcast %90 : vector<8x1xf32> to vector<8x8xf32>
    %92 = arith.mulf %87, %91 : vector<8x8xf32>
    %93 = arith.truncf %92 : vector<8x8xf32> to vector<8x8xbf16>
    %cst_30 = arith.constant dense<0.000000e+00> : vector<8x16xf32>
    %94 = tpu.matmul %93, %76, %cst_30 {dimension_numbers = #tpu.dot_dimension_numbers<[1], [0], [0], [1], [0, 0, 1, 1], [], []>} : vector<8x8xbf16>, vector<8x16xbf16>, vector<8x16xf32> -> vector<8x16xf32>
    %95 = vector.extract_strided_slice %20 {offsets = [0, 48], sizes = [8, 16], strides = [1, 1]} : vector<8x64xf32> to vector<8x16xf32>
    %96 = arith.truncf %95 : vector<8x16xf32> to vector<8x16xbf16>
    %97 = vector.extract_strided_slice %21 {offsets = [0, 48], sizes = [8, 16], strides = [1, 1]} : vector<8x64xf32> to vector<8x16xf32>
    %98 = arith.truncf %97 : vector<8x16xf32> to vector<8x16xbf16>
    %99 = vector.extract_strided_slice %22 {offsets = [0, 48], sizes = [8, 16], strides = [1, 1]} : vector<8x64xf32> to vector<8x16xf32>
    %100 = arith.truncf %99 : vector<8x16xf32> to vector<8x16xbf16>
    %cst_31 = arith.constant dense<0.000000e+00> : vector<8x8xf32>
    %101 = tpu.matmul %96, %98, %cst_31 {dimension_numbers = #tpu.dot_dimension_numbers<[1], [1], [0], [0], [0, 0, 1, 0], [], []>} : vector<8x16xbf16>, vector<8x16xbf16>, vector<8x8xf32> -> vector<8x8xf32>
    %c3 = arith.constant 3 : index
    %c0_32 = arith.constant 0 : index
    %c0_33 = arith.constant 0 : index
    %102 = vector.load %arg3[%c3, %c0_32, %c0_33] : memref<4x8x8xf32, #tpu.memory_space<vmem>>, vector<1x8x8xf32>
    %103 = vector.shape_cast %102 : vector<1x8x8xf32> to vector<8x8xf32>
    %104 = vector.broadcast %3 : vector<1x8xf32> to vector<8x8xf32>
    %105 = arith.addf %103, %104 : vector<8x8xf32>
    %106 = arith.addf %101, %105 : vector<8x8xf32>
    %cst_34 = arith.constant dense<0xFF800000> : vector<8xf32>
    %107 = vector.multi_reduction <maximumf>, %106, %cst_34 [1] : vector<8x8xf32> to vector<8xf32>
    %108 = vector.shape_cast %107 : vector<8xf32> to vector<8x1xf32>
    %109 = vector.broadcast %108 : vector<8x1xf32> to vector<8x8xf32>
    %110 = arith.subf %106, %109 : vector<8x8xf32>
    %111 = math.exp %110 : vector<8x8xf32>
    %cst_35 = arith.constant dense<0.000000e+00> : vector<8xf32>
    %112 = vector.multi_reduction <add>, %111, %cst_35 [1] : vector<8x8xf32> to vector<8xf32>
    %113 = vector.shape_cast %112 : vector<8xf32> to vector<8x1xf32>
    %114 = tpu.reciprocal %113 {approx = true} : vector<8x1xf32> -> vector<8x1xf32>
    %115 = vector.broadcast %114 : vector<8x1xf32> to vector<8x8xf32>
    %116 = arith.mulf %111, %115 : vector<8x8xf32>
    %117 = arith.truncf %116 : vector<8x8xf32> to vector<8x8xbf16>
    %cst_36 = arith.constant dense<0.000000e+00> : vector<8x16xf32>
    %118 = tpu.matmul %117, %100, %cst_36 {dimension_numbers = #tpu.dot_dimension_numbers<[1], [0], [0], [1], [0, 0, 1, 1], [], []>} : vector<8x8xbf16>, vector<8x16xbf16>, vector<8x16xf32> -> vector<8x16xf32>
    %119 = tpu.concatenate %46, %70, %94, %118 in 1 : vector<8x16xf32>, vector<8x16xf32>, vector<8x16xf32>, vector<8x16xf32> -> vector<8x64xf32>
    %120 = arith.truncf %119 : vector<8x64xf32> to vector<8x64xbf16>
    %c0_37 = arith.constant 0 : index
    %c0_38 = arith.constant 0 : index
    %121 = vector.load %arg6[%c0_37, %c0_38] : memref<64x64xbf16, #tpu.memory_space<vmem>>, vector<64x64xbf16>
    %cst_39 = arith.constant dense<0.000000e+00> : vector<8x64xf32>
    %122 = tpu.matmul %120, %121, %cst_39 {dimension_numbers = #tpu.dot_dimension_numbers<[1], [0], [0], [1], [0, 0, 1, 1], [], []>} : vector<8x64xbf16>, vector<64x64xbf16>, vector<8x64xf32> -> vector<8x64xf32>
    %123 = arith.addf %1, %122 : vector<8x64xf32>
    %c0_40 = arith.constant 0 : index
    %c0_41 = arith.constant 0 : index
    %124 = vector.load %arg7[%c0_40, %c0_41] : memref<1x64xf32, #tpu.memory_space<vmem>>, vector<1x64xf32>
    %125 = arith.mulf %123, %123 : vector<8x64xf32>
    %cst_42 = arith.constant dense<0.000000e+00> : vector<8xf32>
    %126 = vector.multi_reduction <add>, %125, %cst_42 [1] : vector<8x64xf32> to vector<8xf32>
    %127 = vector.shape_cast %126 : vector<8xf32> to vector<8x1xf32>
    %cst_43 = arith.constant 6.400000e+01 : f32
    %128 = vector.broadcast %cst_43 : f32 to vector<8x1xf32>
    %129 = arith.divf %127, %128 : vector<8x1xf32>
    %cst_44 = arith.constant 9.99999997E-7 : f32
    %130 = vector.broadcast %cst_44 : f32 to vector<8x1xf32>
    %131 = arith.addf %129, %130 : vector<8x1xf32>
    %132 = math.rsqrt %131 : vector<8x1xf32>
    %133 = vector.broadcast %132 : vector<8x1xf32> to vector<8x64xf32>
    %134 = arith.mulf %123, %133 : vector<8x64xf32>
    %135 = vector.broadcast %124 : vector<1x64xf32> to vector<8x64xf32>
    %136 = arith.mulf %134, %135 : vector<8x64xf32>
    %137 = arith.truncf %136 : vector<8x64xf32> to vector<8x64xbf16>
    %c0_45 = arith.constant 0 : index
    %c0_46 = arith.constant 0 : index
    %138 = vector.load %arg8[%c0_45, %c0_46] : memref<64x128xbf16, #tpu.memory_space<vmem>>, vector<64x128xbf16>
    %cst_47 = arith.constant dense<0.000000e+00> : vector<8x128xf32>
    %139 = tpu.matmul %137, %138, %cst_47 {dimension_numbers = #tpu.dot_dimension_numbers<[1], [0], [0], [1], [0, 0, 1, 1], [], []>} : vector<8x64xbf16>, vector<64x128xbf16>, vector<8x128xf32> -> vector<8x128xf32>
    %cst_48 = arith.constant 0.000000e+00 : f32
    %140 = vector.broadcast %cst_48 : f32 to vector<8x128xf32>
    %141 = arith.maximumf %139, %140 : vector<8x128xf32>
    %142 = arith.truncf %141 : vector<8x128xf32> to vector<8x128xbf16>
    %c0_49 = arith.constant 0 : index
    %c0_50 = arith.constant 0 : index
    %143 = vector.load %arg9[%c0_49, %c0_50] : memref<128x64xbf16, #tpu.memory_space<vmem>>, vector<128x64xbf16>
    %cst_51 = arith.constant dense<0.000000e+00> : vector<8x64xf32>
    %144 = tpu.matmul %142, %143, %cst_51 {dimension_numbers = #tpu.dot_dimension_numbers<[1], [0], [0], [1], [0, 0, 1, 1], [], []>} : vector<8x128xbf16>, vector<128x64xbf16>, vector<8x64xf32> -> vector<8x64xf32>
    %145 = arith.addf %123, %144 : vector<8x64xf32>
    %c0_52 = arith.constant 0 : index
    %c0_53 = arith.constant 0 : index
    %146 = vector.load %arg10[%c0_52, %c0_53] : memref<1x64xf32, #tpu.memory_space<vmem>>, vector<1x64xf32>
    %147 = arith.mulf %145, %145 : vector<8x64xf32>
    %cst_54 = arith.constant dense<0.000000e+00> : vector<8xf32>
    %148 = vector.multi_reduction <add>, %147, %cst_54 [1] : vector<8x64xf32> to vector<8xf32>
    %149 = vector.shape_cast %148 : vector<8xf32> to vector<8x1xf32>
    %cst_55 = arith.constant 6.400000e+01 : f32
    %150 = vector.broadcast %cst_55 : f32 to vector<8x1xf32>
    %151 = arith.divf %149, %150 : vector<8x1xf32>
    %cst_56 = arith.constant 9.99999997E-7 : f32
    %152 = vector.broadcast %cst_56 : f32 to vector<8x1xf32>
    %153 = arith.addf %151, %152 : vector<8x1xf32>
    %154 = math.rsqrt %153 : vector<8x1xf32>
    %155 = vector.broadcast %154 : vector<8x1xf32> to vector<8x64xf32>
    %156 = arith.mulf %145, %155 : vector<8x64xf32>
    %157 = vector.broadcast %146 : vector<1x64xf32> to vector<8x64xf32>
    %158 = arith.mulf %156, %157 : vector<8x64xf32>
    %c0_57 = arith.constant 0 : index
    %c0_58 = arith.constant 0 : index
    %c0_59 = arith.constant 0 : index
    %159 = vector.load %arg11[%c0_57, %c0_58, %c0_59] : memref<1x8x64xf32, #tpu.memory_space<vmem>>, vector<1x8x64xf32>
    %160 = vector.shape_cast %159 : vector<1x8x64xf32> to vector<8x64xf32>
    %161 = vector.shape_cast %158 : vector<8x64xf32> to vector<1x8x64xf32>
    tpu.vector_store %arg11[%c0_57, %c0_58, %c0_59], %161 {strides = array<i32>} : memref<1x8x64xf32, #tpu.memory_space<vmem>>, vector<1x8x64xf32>,
    return
  }
  func.func @transform_0(%arg0: i32) -> (i32, i32, i32) {
    %c0_i32 = arith.constant 0 : i32
    %c0_i32_0 = arith.constant 0 : i32
    %c0_i32_1 = arith.constant 0 : i32
    return %arg0, %c0_i32, %c0_i32_0 : i32, i32, i32
  }
  func.func @transform_1(%arg0: i32) -> (i32, i32, i32) {
    %c0_i32 = arith.constant 0 : i32
    %c0_i32_0 = arith.constant 0 : i32
    %c0_i32_1 = arith.constant 0 : i32
    return %arg0, %c0_i32, %c0_i32_0 : i32, i32, i32
  }
  func.func @transform_2(%arg0: i32) -> (i32, i32, i32) {
    %c0_i32 = arith.constant 0 : i32
    %c0_i32_0 = arith.constant 0 : i32
    %c0_i32_1 = arith.constant 0 : i32
    %c0_i32_2 = arith.constant 0 : i32
    return %c0_i32, %c0_i32_0, %c0_i32_1 : i32, i32, i32
  }
  func.func @transform_3(%arg0: i32) -> (i32, i32) {
    %c0_i32 = arith.constant 0 : i32
    %c0_i32_0 = arith.constant 0 : i32
    %c0_i32_1 = arith.constant 0 : i32
    return %c0_i32, %c0_i32_0 : i32, i32
  }
  func.func @transform_4(%arg0: i32) -> (i32, i32) {
    %c0_i32 = arith.constant 0 : i32
    %c0_i32_0 = arith.constant 0 : i32
    %c0_i32_1 = arith.constant 0 : i32
    return %c0_i32, %c0_i32_0 : i32, i32
  }
  func.func @transform_5(%arg0: i32) -> (i32, i32) {
    %c0_i32 = arith.constant 0 : i32
    %c0_i32_0 = arith.constant 0 : i32
    %c0_i32_1 = arith.constant 0 : i32
    return %c0_i32, %c0_i32_0 : i32, i32
  }
  func.func @transform_6(%arg0: i32) -> (i32, i32) {
    %c0_i32 = arith.constant 0 : i32
    %c0_i32_0 = arith.constant 0 : i32
    %c0_i32_1 = arith.constant 0 : i32
    return %c0_i32, %c0_i32_0 : i32, i32
  }
  func.func @transform_7(%arg0: i32) -> (i32, i32) {
    %c0_i32 = arith.constant 0 : i32
    %c0_i32_0 = arith.constant 0 : i32
    %c0_i32_1 = arith.constant 0 : i32
    return %c0_i32, %c0_i32_0 : i32, i32
  }
  func.func @transform_8(%arg0: i32) -> (i32, i32) {
    %c0_i32 = arith.constant 0 : i32
    %c0_i32_0 = arith.constant 0 : i32
    %c0_i32_1 = arith.constant 0 : i32
    return %c0_i32, %c0_i32_0 : i32, i32
  }
  func.func @transform_9(%arg0: i32) -> (i32, i32) {
    %c0_i32 = arith.constant 0 : i32
    %c0_i32_0 = arith.constant 0 : i32
    %c0_i32_1 = arith.constant 0 : i32
    return %c0_i32, %c0_i32_0 : i32, i32
  }
  func.func @transform_10(%arg0: i32) -> (i32, i32, i32) {
    %c0_i32 = arith.constant 0 : i32
    %c0_i32_0 = arith.constant 0 : i32
    %c0_i32_1 = arith.constant 0 : i32
    return %arg0, %c0_i32, %c0_i32_0 : i32, i32, i32
  }
}

module attributes {stable_mosaic.version = 11 : i64} {
  func.func @_lmhead_ce_kernel(%arg0: memref<16x64xf32, #tpu.memory_space<vmem>>, %arg1: memref<64x128xbf16, #tpu.memory_space<vmem>>, %arg2: memref<16x1xi32, #tpu.memory_space<vmem>>, %arg3: memref<16x128xf32, #tpu.memory_space<vmem>>, %arg4: memref<1xf32, #tpu.memory_space<smem>>) attributes {dimension_semantics = [], scalar_prefetch = 0 : i64, scratch_operands = 0 : i64, tpu.core_type = #tpu.core_type<tc>} {
    %c0 = arith.constant 0 : index
    %c0_0 = arith.constant 0 : index
    %0 = vector.load %arg0[%c0, %c0_0] : memref<16x64xf32, #tpu.memory_space<vmem>>, vector<16x64xf32>
    %cst = arith.constant 1.250000e-01 : f32
    %1 = vector.broadcast %cst : f32 to vector<16x64xf32>
    %2 = arith.mulf %0, %1 : vector<16x64xf32>
    %3 = arith.truncf %2 : vector<16x64xf32> to vector<16x64xbf16>
    %c0_1 = arith.constant 0 : index
    %c0_2 = arith.constant 0 : index
    %4 = vector.load %arg1[%c0_1, %c0_2] : memref<64x128xbf16, #tpu.memory_space<vmem>>, vector<64x128xbf16>
    %cst_3 = arith.constant dense<0.000000e+00> : vector<16x128xf32>
    %5 = tpu.matmul %3, %4, %cst_3 {dimension_numbers = #tpu.dot_dimension_numbers<[1], [0], [0], [1], [0, 0, 1, 1], [], []>} : vector<16x64xbf16>, vector<64x128xbf16>, vector<16x128xf32> -> vector<16x128xf32>
    %c0_4 = arith.constant 0 : index
    %c0_5 = arith.constant 0 : index
    %6 = vector.load %arg3[%c0_4, %c0_5] : memref<16x128xf32, #tpu.memory_space<vmem>>, vector<16x128xf32>
    tpu.vector_store %arg3[%c0_4, %c0_5], %5 {strides = array<i32>} : memref<16x128xf32, #tpu.memory_space<vmem>>, vector<16x128xf32>,
    %c0_6 = arith.constant 0 : index
    %c0_7 = arith.constant 0 : index
    %7 = vector.load %arg2[%c0_6, %c0_7] : memref<16x1xi32, #tpu.memory_space<vmem>>, vector<16x1xi32>
    %cst_8 = arith.constant dense<0xFF800000> : vector<16xf32>
    %8 = vector.multi_reduction <maximumf>, %5, %cst_8 [1] : vector<16x128xf32> to vector<16xf32>
    %9 = vector.shape_cast %8 : vector<16xf32> to vector<16x1xf32>
    %10 = vector.broadcast %9 : vector<16x1xf32> to vector<16x128xf32>
    %11 = arith.subf %5, %10 : vector<16x128xf32>
    %12 = math.exp %11 : vector<16x128xf32>
    %cst_9 = arith.constant dense<0.000000e+00> : vector<16xf32>
    %13 = vector.multi_reduction <add>, %12, %cst_9 [1] : vector<16x128xf32> to vector<16xf32>
    %14 = vector.shape_cast %13 : vector<16xf32> to vector<16x1xf32>
    %15 = math.log %14 : vector<16x1xf32>
    %16 = arith.addf %15, %9 : vector<16x1xf32>
    %17 = tpu.iota {dimensions = array<i32: 1>} : vector<16x128xi32>
    %18 = vector.broadcast %7 : vector<16x1xi32> to vector<16x128xi32>
    %19 = arith.cmpi eq, %17, %18 : vector<16x128xi32>
    %cst_10 = arith.constant 0.000000e+00 : f32
    %20 = vector.broadcast %cst_10 : f32 to vector<16x128xf32>
    %21 = arith.select %19, %5, %20 : vector<16x128xi1>, vector<16x128xf32>
    %cst_11 = arith.constant dense<0.000000e+00> : vector<16xf32>
    %22 = vector.multi_reduction <add>, %21, %cst_11 [1] : vector<16x128xf32> to vector<16xf32>
    %23 = vector.shape_cast %22 : vector<16xf32> to vector<16x1xf32>
    %c-100_i32 = arith.constant -100 : i32
    %24 = vector.broadcast %c-100_i32 : i32 to vector<16x1xi32>
    %25 = arith.cmpi ne, %7, %24 : vector<16x1xi32>
    %26 = arith.extui %25 : vector<16x1xi1> to vector<16x1xi32>
    %27 = arith.sitofp %26 : vector<16x1xi32> to vector<16x1xf32>
    %28 = arith.subf %16, %23 : vector<16x1xf32>
    %29 = arith.mulf %28, %27 : vector<16x1xf32>
    %30 = vector.shape_cast %29 : vector<16x1xf32> to vector<1x16x1xf32>
    %cst_12 = arith.constant dense<0.000000e+00> : vector<1xf32>
    %31 = vector.multi_reduction <add>, %30, %cst_12 [1, 2] : vector<1x16x1xf32> to vector<1xf32>
    %32 = vector.shape_cast %31 : vector<1xf32> to vector<1x1x1xf32>
    %33 = vector.extract %32[0, 0, 0] : f32 from vector<1x1x1xf32>
    %34 = vector.shape_cast %27 : vector<16x1xf32> to vector<1x16x1xf32>
    %cst_13 = arith.constant dense<0.000000e+00> : vector<1xf32>
    %35 = vector.multi_reduction <add>, %34, %cst_13 [1, 2] : vector<1x16x1xf32> to vector<1xf32>
    %36 = vector.shape_cast %35 : vector<1xf32> to vector<1x1x1xf32>
    %37 = vector.extract %36[0, 0, 0] : f32 from vector<1x1x1xf32>
    %cst_14 = arith.constant 1.000000e+00 : f32
    %38 = arith.maximumf %37, %cst_14 : f32
    %39 = arith.divf %33, %38 : f32
    %c0_15 = arith.constant 0 : index
    %40 = memref.load %arg4[%c0_15] : memref<1xf32, #tpu.memory_space<smem>>
    memref.store %39, %arg4[%c0_15] : memref<1xf32, #tpu.memory_space<smem>>
    return
  }
}

module attributes {stable_mosaic.version = 11 : i64} {
  func.func @_decoder_kernel(%arg0: i32, %arg1: memref<1x8x64xf32, #tpu.memory_space<vmem>>, %arg2: memref<1x8x64xf32, #tpu.memory_space<vmem>>, %arg3: memref<1x1x8xf32, #tpu.memory_space<vmem>>, %arg4: memref<1x1x8xf32, #tpu.memory_space<vmem>>, %arg5: memref<4x8x8xf32, #tpu.memory_space<vmem>>, %arg6: memref<1x64xf32, #tpu.memory_space<vmem>>, %arg7: memref<64x192xbf16, #tpu.memory_space<vmem>>, %arg8: memref<64x64xbf16, #tpu.memory_space<vmem>>, %arg9: memref<1x64xf32, #tpu.memory_space<vmem>>, %arg10: memref<64x64xbf16, #tpu.memory_space<vmem>>, %arg11: memref<64x128xbf16, #tpu.memory_space<vmem>>, %arg12: memref<64x64xbf16, #tpu.memory_space<vmem>>, %arg13: memref<1x64xf32, #tpu.memory_space<vmem>>, %arg14: memref<64x128xbf16, #tpu.memory_space<vmem>>, %arg15: memref<128x64xbf16, #tpu.memory_space<vmem>>, %arg16: memref<1x64xf32, #tpu.memory_space<vmem>>, %arg17: memref<1x8x64xf32, #tpu.memory_space<vmem>>) attributes {dimension_semantics = [#tpu.dimension_semantics<parallel>], iteration_bounds = array<i64: 2>, scalar_prefetch = 0 : i64, scratch_operands = 0 : i64, tpu.core_type = #tpu.core_type<tc>, window_params = [{transform_indices = @transform_0, window_bounds = array<i64: 1, 8, 64>}, {transform_indices = @transform_1, window_bounds = array<i64: 1, 8, 64>}, {transform_indices = @transform_2, window_bounds = array<i64: 1, 1, 8>}, {transform_indices = @transform_3, window_bounds = array<i64: 1, 1, 8>}, {pipeline_mode = #tpu.pipeline_mode<synchronous>, transform_indices = @transform_4, window_bounds = array<i64: 4, 8, 8>}, {pipeline_mode = #tpu.pipeline_mode<synchronous>, transform_indices = @transform_5, window_bounds = array<i64: 1, 64>}, {pipeline_mode = #tpu.pipeline_mode<synchronous>, transform_indices = @transform_6, window_bounds = array<i64: 64, 192>}, {pipeline_mode = #tpu.pipeline_mode<synchronous>, transform_indices = @transform_7, window_bounds = array<i64: 64, 64>}, {pipeline_mode = #tpu.pipeline_mode<synchronous>, transform_indices = @transform_8, window_bounds = array<i64: 1, 64>}, {pipeline_mode = #tpu.pipeline_mode<synchronous>, transform_indices = @transform_9, window_bounds = array<i64: 64, 64>}, {pipeline_mode = #tpu.pipeline_mode<synchronous>, transform_indices = @transform_10, window_bounds = array<i64: 64, 128>}, {pipeline_mode = #tpu.pipeline_mode<synchronous>, transform_indices = @transform_11, window_bounds = array<i64: 64, 64>}, {pipeline_mode = #tpu.pipeline_mode<synchronous>, transform_indices = @transform_12, window_bounds = array<i64: 1, 64>}, {pipeline_mode = #tpu.pipeline_mode<synchronous>, transform_indices = @transform_13, window_bounds = array<i64: 64, 128>}, {pipeline_mode = #tpu.pipeline_mode<synchronous>, transform_indices = @transform_14, window_bounds = array<i64: 128, 64>}, {pipeline_mode = #tpu.pipeline_mode<synchronous>, transform_indices = @transform_15, window_bounds = array<i64: 1, 64>}, {transform_indices = @transform_16, window_bounds = array<i64: 1, 8, 64>}]} {
    %c0 = arith.constant 0 : index
    %c0_0 = arith.constant 0 : index
    %c0_1 = arith.constant 0 : index
    %0 = vector.load %arg1[%c0, %c0_0, %c0_1] : memref<1x8x64xf32, #tpu.memory_space<vmem>>, vector<1x8x64xf32>
    %1 = vector.shape_cast %0 : vector<1x8x64xf32> to vector<8x64xf32>
    %c0_2 = arith.constant 0 : index
    %c0_3 = arith.constant 0 : index
    %c0_4 = arith.constant 0 : index
    %2 = vector.load %arg2[%c0_2, %c0_3, %c0_4] : memref<1x8x64xf32, #tpu.memory_space<vmem>>, vector<1x8x64xf32>
    %3 = vector.shape_cast %2 : vector<1x8x64xf32> to vector<8x64xf32>
    %c0_5 = arith.constant 0 : index
    %c0_6 = arith.constant 0 : index
    %c0_7 = arith.constant 0 : index
    %4 = vector.load %arg3[%c0_5, %c0_6, %c0_7] : memref<1x1x8xf32, #tpu.memory_space<vmem>>, vector<1x1x8xf32>
    %5 = vector.shape_cast %4 : vector<1x1x8xf32> to vector<1x8xf32>
    %c0_8 = arith.constant 0 : index
    %c0_9 = arith.constant 0 : index
    %c0_10 = arith.constant 0 : index
    %6 = vector.load %arg4[%c0_8, %c0_9, %c0_10] : memref<1x1x8xf32, #tpu.memory_space<vmem>>, vector<1x1x8xf32>
    %7 = vector.shape_cast %6 : vector<1x1x8xf32> to vector<1x8xf32>
    %8 = tpu.iota {dimensions = array<i32: 0>} : vector<8x8xi32>
    %9 = tpu.iota {dimensions = array<i32: 1>} : vector<8x8xi32>
    %10 = arith.cmpi sgt, %9, %8 : vector<8x8xi32>
    %cst = arith.constant -1.000000e+09 : f32
    %cst_11 = arith.constant 0.000000e+00 : f32
    %11 = vector.broadcast %cst : f32 to vector<8x8xf32>
    %12 = vector.broadcast %cst_11 : f32 to vector<8x8xf32>
    %13 = arith.select %10, %11, %12 : vector<8x8xi1>, vector<8x8xf32>
    %c0_12 = arith.constant 0 : index
    %c0_13 = arith.constant 0 : index
    %14 = vector.load %arg6[%c0_12, %c0_13] : memref<1x64xf32, #tpu.memory_space<vmem>>, vector<1x64xf32>
    %15 = arith.mulf %1, %1 : vector<8x64xf32>
    %cst_14 = arith.constant dense<0.000000e+00> : vector<8xf32>
    %16 = vector.multi_reduction <add>, %15, %cst_14 [1] : vector<8x64xf32> to vector<8xf32>
    %17 = vector.shape_cast %16 : vector<8xf32> to vector<8x1xf32>
    %cst_15 = arith.constant 6.400000e+01 : f32
    %18 = vector.broadcast %cst_15 : f32 to vector<8x1xf32>
    %19 = arith.divf %17, %18 : vector<8x1xf32>
    %cst_16 = arith.constant 9.99999997E-7 : f32
    %20 = vector.broadcast %cst_16 : f32 to vector<8x1xf32>
    %21 = arith.addf %19, %20 : vector<8x1xf32>
    %22 = math.rsqrt %21 : vector<8x1xf32>
    %23 = vector.broadcast %22 : vector<8x1xf32> to vector<8x64xf32>
    %24 = arith.mulf %1, %23 : vector<8x64xf32>
    %25 = vector.broadcast %14 : vector<1x64xf32> to vector<8x64xf32>
    %26 = arith.mulf %24, %25 : vector<8x64xf32>
    %27 = arith.truncf %26 : vector<8x64xf32> to vector<8x64xbf16>
    %c0_17 = arith.constant 0 : index
    %c0_18 = arith.constant 0 : index
    %28 = vector.load %arg7[%c0_17, %c0_18] : memref<64x192xbf16, #tpu.memory_space<vmem>>, vector<64x192xbf16>
    %cst_19 = arith.constant dense<0.000000e+00> : vector<8x192xf32>
    %29 = tpu.matmul %27, %28, %cst_19 {dimension_numbers = #tpu.dot_dimension_numbers<[1], [0], [0], [1], [0, 0, 1, 1], [], []>} : vector<8x64xbf16>, vector<64x192xbf16>, vector<8x192xf32> -> vector<8x192xf32>
    %30 = vector.extract_strided_slice %29 {offsets = [0, 0], sizes = [8, 64], strides = [1, 1]} : vector<8x192xf32> to vector<8x64xf32>
    %31 = vector.extract_strided_slice %29 {offsets = [0, 64], sizes = [8, 64], strides = [1, 1]} : vector<8x192xf32> to vector<8x64xf32>
    %32 = vector.extract_strided_slice %29 {offsets = [0, 128], sizes = [8, 64], strides = [1, 1]} : vector<8x192xf32> to vector<8x64xf32>
    %33 = vector.extract_strided_slice %30 {offsets = [0, 0], sizes = [8, 16], strides = [1, 1]} : vector<8x64xf32> to vector<8x16xf32>
    %34 = arith.truncf %33 : vector<8x16xf32> to vector<8x16xbf16>
    %35 = vector.extract_strided_slice %31 {offsets = [0, 0], sizes = [8, 16], strides = [1, 1]} : vector<8x64xf32> to vector<8x16xf32>
    %36 = arith.truncf %35 : vector<8x16xf32> to vector<8x16xbf16>
    %37 = vector.extract_strided_slice %32 {offsets = [0, 0], sizes = [8, 16], strides = [1, 1]} : vector<8x64xf32> to vector<8x16xf32>
    %38 = arith.truncf %37 : vector<8x16xf32> to vector<8x16xbf16>
    %cst_20 = arith.constant dense<0.000000e+00> : vector<8x8xf32>
    %39 = tpu.matmul %34, %36, %cst_20 {dimension_numbers = #tpu.dot_dimension_numbers<[1], [1], [0], [0], [0, 0, 1, 0], [], []>} : vector<8x16xbf16>, vector<8x16xbf16>, vector<8x8xf32> -> vector<8x8xf32>
    %c0_21 = arith.constant 0 : index
    %c0_22 = arith.constant 0 : index
    %c0_23 = arith.constant 0 : index
    %40 = vector.load %arg5[%c0_21, %c0_22, %c0_23] : memref<4x8x8xf32, #tpu.memory_space<vmem>>, vector<1x8x8xf32>
    %41 = vector.shape_cast %40 : vector<1x8x8xf32> to vector<8x8xf32>
    %42 = arith.addf %41, %13 : vector<8x8xf32>
    %43 = vector.broadcast %5 : vector<1x8xf32> to vector<8x8xf32>
    %44 = arith.addf %42, %43 : vector<8x8xf32>
    %45 = arith.addf %39, %44 : vector<8x8xf32>
    %cst_24 = arith.constant dense<0xFF800000> : vector<8xf32>
    %46 = vector.multi_reduction <maximumf>, %45, %cst_24 [1] : vector<8x8xf32> to vector<8xf32>
    %47 = vector.shape_cast %46 : vector<8xf32> to vector<8x1xf32>
    %48 = vector.broadcast %47 : vector<8x1xf32> to vector<8x8xf32>
    %49 = arith.subf %45, %48 : vector<8x8xf32>
    %50 = math.exp %49 : vector<8x8xf32>
    %cst_25 = arith.constant dense<0.000000e+00> : vector<8xf32>
    %51 = vector.multi_reduction <add>, %50, %cst_25 [1] : vector<8x8xf32> to vector<8xf32>
    %52 = vector.shape_cast %51 : vector<8xf32> to vector<8x1xf32>
    %53 = tpu.reciprocal %52 {approx = true} : vector<8x1xf32> -> vector<8x1xf32>
    %54 = vector.broadcast %53 : vector<8x1xf32> to vector<8x8xf32>
    %55 = arith.mulf %50, %54 : vector<8x8xf32>
    %56 = arith.truncf %55 : vector<8x8xf32> to vector<8x8xbf16>
    %cst_26 = arith.constant dense<0.000000e+00> : vector<8x16xf32>
    %57 = tpu.matmul %56, %38, %cst_26 {dimension_numbers = #tpu.dot_dimension_numbers<[1], [0], [0], [1], [0, 0, 1, 1], [], []>} : vector<8x8xbf16>, vector<8x16xbf16>, vector<8x16xf32> -> vector<8x16xf32>
    %58 = vector.extract_strided_slice %30 {offsets = [0, 16], sizes = [8, 16], strides = [1, 1]} : vector<8x64xf32> to vector<8x16xf32>
    %59 = arith.truncf %58 : vector<8x16xf32> to vector<8x16xbf16>
    %60 = vector.extract_strided_slice %31 {offsets = [0, 16], sizes = [8, 16], strides = [1, 1]} : vector<8x64xf32> to vector<8x16xf32>
    %61 = arith.truncf %60 : vector<8x16xf32> to vector<8x16xbf16>
    %62 = vector.extract_strided_slice %32 {offsets = [0, 16], sizes = [8, 16], strides = [1, 1]} : vector<8x64xf32> to vector<8x16xf32>
    %63 = arith.truncf %62 : vector<8x16xf32> to vector<8x16xbf16>
    %cst_27 = arith.constant dense<0.000000e+00> : vector<8x8xf32>
    %64 = tpu.matmul %59, %61, %cst_27 {dimension_numbers = #tpu.dot_dimension_numbers<[1], [1], [0], [0], [0, 0, 1, 0], [], []>} : vector<8x16xbf16>, vector<8x16xbf16>, vector<8x8xf32> -> vector<8x8xf32>
    %c1 = arith.constant 1 : index
    %c0_28 = arith.constant 0 : index
    %c0_29 = arith.constant 0 : index
    %65 = vector.load %arg5[%c1, %c0_28, %c0_29] : memref<4x8x8xf32, #tpu.memory_space<vmem>>, vector<1x8x8xf32>
    %66 = vector.shape_cast %65 : vector<1x8x8xf32> to vector<8x8xf32>
    %67 = arith.addf %66, %13 : vector<8x8xf32>
    %68 = vector.broadcast %5 : vector<1x8xf32> to vector<8x8xf32>
    %69 = arith.addf %67, %68 : vector<8x8xf32>
    %70 = arith.addf %64, %69 : vector<8x8xf32>
    %cst_30 = arith.constant dense<0xFF800000> : vector<8xf32>
    %71 = vector.multi_reduction <maximumf>, %70, %cst_30 [1] : vector<8x8xf32> to vector<8xf32>
    %72 = vector.shape_cast %71 : vector<8xf32> to vector<8x1xf32>
    %73 = vector.broadcast %72 : vector<8x1xf32> to vector<8x8xf32>
    %74 = arith.subf %70, %73 : vector<8x8xf32>
    %75 = math.exp %74 : vector<8x8xf32>
    %cst_31 = arith.constant dense<0.000000e+00> : vector<8xf32>
    %76 = vector.multi_reduction <add>, %75, %cst_31 [1] : vector<8x8xf32> to vector<8xf32>
    %77 = vector.shape_cast %76 : vector<8xf32> to vector<8x1xf32>
    %78 = tpu.reciprocal %77 {approx = true} : vector<8x1xf32> -> vector<8x1xf32>
    %79 = vector.broadcast %78 : vector<8x1xf32> to vector<8x8xf32>
    %80 = arith.mulf %75, %79 : vector<8x8xf32>
    %81 = arith.truncf %80 : vector<8x8xf32> to vector<8x8xbf16>
    %cst_32 = arith.constant dense<0.000000e+00> : vector<8x16xf32>
    %82 = tpu.matmul %81, %63, %cst_32 {dimension_numbers = #tpu.dot_dimension_numbers<[1], [0], [0], [1], [0, 0, 1, 1], [], []>} : vector<8x8xbf16>, vector<8x16xbf16>, vector<8x16xf32> -> vector<8x16xf32>
    %83 = vector.extract_strided_slice %30 {offsets = [0, 32], sizes = [8, 16], strides = [1, 1]} : vector<8x64xf32> to vector<8x16xf32>
    %84 = arith.truncf %83 : vector<8x16xf32> to vector<8x16xbf16>
    %85 = vector.extract_strided_slice %31 {offsets = [0, 32], sizes = [8, 16], strides = [1, 1]} : vector<8x64xf32> to vector<8x16xf32>
    %86 = arith.truncf %85 : vector<8x16xf32> to vector<8x16xbf16>
    %87 = vector.extract_strided_slice %32 {offsets = [0, 32], sizes = [8, 16], strides = [1, 1]} : vector<8x64xf32> to vector<8x16xf32>
    %88 = arith.truncf %87 : vector<8x16xf32> to vector<8x16xbf16>
    %cst_33 = arith.constant dense<0.000000e+00> : vector<8x8xf32>
    %89 = tpu.matmul %84, %86, %cst_33 {dimension_numbers = #tpu.dot_dimension_numbers<[1], [1], [0], [0], [0, 0, 1, 0], [], []>} : vector<8x16xbf16>, vector<8x16xbf16>, vector<8x8xf32> -> vector<8x8xf32>
    %c2 = arith.constant 2 : index
    %c0_34 = arith.constant 0 : index
    %c0_35 = arith.constant 0 : index
    %90 = vector.load %arg5[%c2, %c0_34, %c0_35] : memref<4x8x8xf32, #tpu.memory_space<vmem>>, vector<1x8x8xf32>
    %91 = vector.shape_cast %90 : vector<1x8x8xf32> to vector<8x8xf32>
    %92 = arith.addf %91, %13 : vector<8x8xf32>
    %93 = vector.broadcast %5 : vector<1x8xf32> to vector<8x8xf32>
    %94 = arith.addf %92, %93 : vector<8x8xf32>
    %95 = arith.addf %89, %94 : vector<8x8xf32>
    %cst_36 = arith.constant dense<0xFF800000> : vector<8xf32>
    %96 = vector.multi_reduction <maximumf>, %95, %cst_36 [1] : vector<8x8xf32> to vector<8xf32>
    %97 = vector.shape_cast %96 : vector<8xf32> to vector<8x1xf32>
    %98 = vector.broadcast %97 : vector<8x1xf32> to vector<8x8xf32>
    %99 = arith.subf %95, %98 : vector<8x8xf32>
    %100 = math.exp %99 : vector<8x8xf32>
    %cst_37 = arith.constant dense<0.000000e+00> : vector<8xf32>
    %101 = vector.multi_reduction <add>, %100, %cst_37 [1] : vector<8x8xf32> to vector<8xf32>
    %102 = vector.shape_cast %101 : vector<8xf32> to vector<8x1xf32>
    %103 = tpu.reciprocal %102 {approx = true} : vector<8x1xf32> -> vector<8x1xf32>
    %104 = vector.broadcast %103 : vector<8x1xf32> to vector<8x8xf32>
    %105 = arith.mulf %100, %104 : vector<8x8xf32>
    %106 = arith.truncf %105 : vector<8x8xf32> to vector<8x8xbf16>
    %cst_38 = arith.constant dense<0.000000e+00> : vector<8x16xf32>
    %107 = tpu.matmul %106, %88, %cst_38 {dimension_numbers = #tpu.dot_dimension_numbers<[1], [0], [0], [1], [0, 0, 1, 1], [], []>} : vector<8x8xbf16>, vector<8x16xbf16>, vector<8x16xf32> -> vector<8x16xf32>
    %108 = vector.extract_strided_slice %30 {offsets = [0, 48], sizes = [8, 16], strides = [1, 1]} : vector<8x64xf32> to vector<8x16xf32>
    %109 = arith.truncf %108 : vector<8x16xf32> to vector<8x16xbf16>
    %110 = vector.extract_strided_slice %31 {offsets = [0, 48], sizes = [8, 16], strides = [1, 1]} : vector<8x64xf32> to vector<8x16xf32>
    %111 = arith.truncf %110 : vector<8x16xf32> to vector<8x16xbf16>
    %112 = vector.extract_strided_slice %32 {offsets = [0, 48], sizes = [8, 16], strides = [1, 1]} : vector<8x64xf32> to vector<8x16xf32>
    %113 = arith.truncf %112 : vector<8x16xf32> to vector<8x16xbf16>
    %cst_39 = arith.constant dense<0.000000e+00> : vector<8x8xf32>
    %114 = tpu.matmul %109, %111, %cst_39 {dimension_numbers = #tpu.dot_dimension_numbers<[1], [1], [0], [0], [0, 0, 1, 0], [], []>} : vector<8x16xbf16>, vector<8x16xbf16>, vector<8x8xf32> -> vector<8x8xf32>
    %c3 = arith.constant 3 : index
    %c0_40 = arith.constant 0 : index
    %c0_41 = arith.constant 0 : index
    %115 = vector.load %arg5[%c3, %c0_40, %c0_41] : memref<4x8x8xf32, #tpu.memory_space<vmem>>, vector<1x8x8xf32>
    %116 = vector.shape_cast %115 : vector<1x8x8xf32> to vector<8x8xf32>
    %117 = arith.addf %116, %13 : vector<8x8xf32>
    %118 = vector.broadcast %5 : vector<1x8xf32> to vector<8x8xf32>
    %119 = arith.addf %117, %118 : vector<8x8xf32>
    %120 = arith.addf %114, %119 : vector<8x8xf32>
    %cst_42 = arith.constant dense<0xFF800000> : vector<8xf32>
    %121 = vector.multi_reduction <maximumf>, %120, %cst_42 [1] : vector<8x8xf32> to vector<8xf32>
    %122 = vector.shape_cast %121 : vector<8xf32> to vector<8x1xf32>
    %123 = vector.broadcast %122 : vector<8x1xf32> to vector<8x8xf32>
    %124 = arith.subf %120, %123 : vector<8x8xf32>
    %125 = math.exp %124 : vector<8x8xf32>
    %cst_43 = arith.constant dense<0.000000e+00> : vector<8xf32>
    %126 = vector.multi_reduction <add>, %125, %cst_43 [1] : vector<8x8xf32> to vector<8xf32>
    %127 = vector.shape_cast %126 : vector<8xf32> to vector<8x1xf32>
    %128 = tpu.reciprocal %127 {approx = true} : vector<8x1xf32> -> vector<8x1xf32>
    %129 = vector.broadcast %128 : vector<8x1xf32> to vector<8x8xf32>
    %130 = arith.mulf %125, %129 : vector<8x8xf32>
    %131 = arith.truncf %130 : vector<8x8xf32> to vector<8x8xbf16>
    %cst_44 = arith.constant dense<0.000000e+00> : vector<8x16xf32>
    %132 = tpu.matmul %131, %113, %cst_44 {dimension_numbers = #tpu.dot_dimension_numbers<[1], [0], [0], [1], [0, 0, 1, 1], [], []>} : vector<8x8xbf16>, vector<8x16xbf16>, vector<8x16xf32> -> vector<8x16xf32>
    %133 = tpu.concatenate %57, %82, %107, %132 in 1 : vector<8x16xf32>, vector<8x16xf32>, vector<8x16xf32>, vector<8x16xf32> -> vector<8x64xf32>
    %134 = arith.truncf %133 : vector<8x64xf32> to vector<8x64xbf16>
    %c0_45 = arith.constant 0 : index
    %c0_46 = arith.constant 0 : index
    %135 = vector.load %arg8[%c0_45, %c0_46] : memref<64x64xbf16, #tpu.memory_space<vmem>>, vector<64x64xbf16>
    %cst_47 = arith.constant dense<0.000000e+00> : vector<8x64xf32>
    %136 = tpu.matmul %134, %135, %cst_47 {dimension_numbers = #tpu.dot_dimension_numbers<[1], [0], [0], [1], [0, 0, 1, 1], [], []>} : vector<8x64xbf16>, vector<64x64xbf16>, vector<8x64xf32> -> vector<8x64xf32>
    %137 = arith.addf %1, %136 : vector<8x64xf32>
    %c0_48 = arith.constant 0 : index
    %c0_49 = arith.constant 0 : index
    %138 = vector.load %arg9[%c0_48, %c0_49] : memref<1x64xf32, #tpu.memory_space<vmem>>, vector<1x64xf32>
    %139 = arith.mulf %137, %137 : vector<8x64xf32>
    %cst_50 = arith.constant dense<0.000000e+00> : vector<8xf32>
    %140 = vector.multi_reduction <add>, %139, %cst_50 [1] : vector<8x64xf32> to vector<8xf32>
    %141 = vector.shape_cast %140 : vector<8xf32> to vector<8x1xf32>
    %cst_51 = arith.constant 6.400000e+01 : f32
    %142 = vector.broadcast %cst_51 : f32 to vector<8x1xf32>
    %143 = arith.divf %141, %142 : vector<8x1xf32>
    %cst_52 = arith.constant 9.99999997E-7 : f32
    %144 = vector.broadcast %cst_52 : f32 to vector<8x1xf32>
    %145 = arith.addf %143, %144 : vector<8x1xf32>
    %146 = math.rsqrt %145 : vector<8x1xf32>
    %147 = vector.broadcast %146 : vector<8x1xf32> to vector<8x64xf32>
    %148 = arith.mulf %137, %147 : vector<8x64xf32>
    %149 = vector.broadcast %138 : vector<1x64xf32> to vector<8x64xf32>
    %150 = arith.mulf %148, %149 : vector<8x64xf32>
    %151 = arith.truncf %150 : vector<8x64xf32> to vector<8x64xbf16>
    %c0_53 = arith.constant 0 : index
    %c0_54 = arith.constant 0 : index
    %152 = vector.load %arg10[%c0_53, %c0_54] : memref<64x64xbf16, #tpu.memory_space<vmem>>, vector<64x64xbf16>
    %cst_55 = arith.constant dense<0.000000e+00> : vector<8x64xf32>
    %153 = tpu.matmul %151, %152, %cst_55 {dimension_numbers = #tpu.dot_dimension_numbers<[1], [0], [0], [1], [0, 0, 1, 1], [], []>} : vector<8x64xbf16>, vector<64x64xbf16>, vector<8x64xf32> -> vector<8x64xf32>
    %154 = arith.truncf %3 : vector<8x64xf32> to vector<8x64xbf16>
    %c0_56 = arith.constant 0 : index
    %c0_57 = arith.constant 0 : index
    %155 = vector.load %arg11[%c0_56, %c0_57] : memref<64x128xbf16, #tpu.memory_space<vmem>>, vector<64x128xbf16>
    %cst_58 = arith.constant dense<0.000000e+00> : vector<8x128xf32>
    %156 = tpu.matmul %154, %155, %cst_58 {dimension_numbers = #tpu.dot_dimension_numbers<[1], [0], [0], [1], [0, 0, 1, 1], [], []>} : vector<8x64xbf16>, vector<64x128xbf16>, vector<8x128xf32> -> vector<8x128xf32>
    %157 = vector.extract_strided_slice %156 {offsets = [0, 0], sizes = [8, 64], strides = [1, 1]} : vector<8x128xf32> to vector<8x64xf32>
    %158 = vector.extract_strided_slice %156 {offsets = [0, 64], sizes = [8, 64], strides = [1, 1]} : vector<8x128xf32> to vector<8x64xf32>
    %159 = vector.extract_strided_slice %153 {offsets = [0, 0], sizes = [8, 16], strides = [1, 1]} : vector<8x64xf32> to vector<8x16xf32>
    %160 = arith.truncf %159 : vector<8x16xf32> to vector<8x16xbf16>
    %161 = vector.extract_strided_slice %157 {offsets = [0, 0], sizes = [8, 16], strides = [1, 1]} : vector<8x64xf32> to vector<8x16xf32>
    %162 = arith.truncf %161 : vector<8x16xf32> to vector<8x16xbf16>
    %163 = vector.extract_strided_slice %158 {offsets = [0, 0], sizes = [8, 16], strides = [1, 1]} : vector<8x64xf32> to vector<8x16xf32>
    %164 = arith.truncf %163 : vector<8x16xf32> to vector<8x16xbf16>
    %cst_59 = arith.constant dense<0.000000e+00> : vector<8x8xf32>
    %165 = tpu.matmul %160, %162, %cst_59 {dimension_numbers = #tpu.dot_dimension_numbers<[1], [1], [0], [0], [0, 0, 1, 0], [], []>} : vector<8x16xbf16>, vector<8x16xbf16>, vector<8x8xf32> -> vector<8x8xf32>
    %166 = vector.broadcast %7 : vector<1x8xf32> to vector<8x8xf32>
    %167 = arith.addf %165, %166 : vector<8x8xf32>
    %cst_60 = arith.constant dense<0xFF800000> : vector<8xf32>
    %168 = vector.multi_reduction <maximumf>, %167, %cst_60 [1] : vector<8x8xf32> to vector<8xf32>
    %169 = vector.shape_cast %168 : vector<8xf32> to vector<8x1xf32>
    %170 = vector.broadcast %169 : vector<8x1xf32> to vector<8x8xf32>
    %171 = arith.subf %167, %170 : vector<8x8xf32>
    %172 = math.exp %171 : vector<8x8xf32>
    %cst_61 = arith.constant dense<0.000000e+00> : vector<8xf32>
    %173 = vector.multi_reduction <add>, %172, %cst_61 [1] : vector<8x8xf32> to vector<8xf32>
    %174 = vector.shape_cast %173 : vector<8xf32> to vector<8x1xf32>
    %175 = tpu.reciprocal %174 {approx = true} : vector<8x1xf32> -> vector<8x1xf32>
    %176 = vector.broadcast %175 : vector<8x1xf32> to vector<8x8xf32>
    %177 = arith.mulf %172, %176 : vector<8x8xf32>
    %178 = arith.truncf %177 : vector<8x8xf32> to vector<8x8xbf16>
    %cst_62 = arith.constant dense<0.000000e+00> : vector<8x16xf32>
    %179 = tpu.matmul %178, %164, %cst_62 {dimension_numbers = #tpu.dot_dimension_numbers<[1], [0], [0], [1], [0, 0, 1, 1], [], []>} : vector<8x8xbf16>, vector<8x16xbf16>, vector<8x16xf32> -> vector<8x16xf32>
    %180 = vector.extract_strided_slice %153 {offsets = [0, 16], sizes = [8, 16], strides = [1, 1]} : vector<8x64xf32> to vector<8x16xf32>
    %181 = arith.truncf %180 : vector<8x16xf32> to vector<8x16xbf16>
    %182 = vector.extract_strided_slice %157 {offsets = [0, 16], sizes = [8, 16], strides = [1, 1]} : vector<8x64xf32> to vector<8x16xf32>
    %183 = arith.truncf %182 : vector<8x16xf32> to vector<8x16xbf16>
    %184 = vector.extract_strided_slice %158 {offsets = [0, 16], sizes = [8, 16], strides = [1, 1]} : vector<8x64xf32> to vector<8x16xf32>
    %185 = arith.truncf %184 : vector<8x16xf32> to vector<8x16xbf16>
    %cst_63 = arith.constant dense<0.000000e+00> : vector<8x8xf32>
    %186 = tpu.matmul %181, %183, %cst_63 {dimension_numbers = #tpu.dot_dimension_numbers<[1], [1], [0], [0], [0, 0, 1, 0], [], []>} : vector<8x16xbf16>, vector<8x16xbf16>, vector<8x8xf32> -> vector<8x8xf32>
    %187 = vector.broadcast %7 : vector<1x8xf32> to vector<8x8xf32>
    %188 = arith.addf %186, %187 : vector<8x8xf32>
    %cst_64 = arith.constant dense<0xFF800000> : vector<8xf32>
    %189 = vector.multi_reduction <maximumf>, %188, %cst_64 [1] : vector<8x8xf32> to vector<8xf32>
    %190 = vector.shape_cast %189 : vector<8xf32> to vector<8x1xf32>
    %191 = vector.broadcast %190 : vector<8x1xf32> to vector<8x8xf32>
    %192 = arith.subf %188, %191 : vector<8x8xf32>
    %193 = math.exp %192 : vector<8x8xf32>
    %cst_65 = arith.constant dense<0.000000e+00> : vector<8xf32>
    %194 = vector.multi_reduction <add>, %193, %cst_65 [1] : vector<8x8xf32> to vector<8xf32>
    %195 = vector.shape_cast %194 : vector<8xf32> to vector<8x1xf32>
    %196 = tpu.reciprocal %195 {approx = true} : vector<8x1xf32> -> vector<8x1xf32>
    %197 = vector.broadcast %196 : vector<8x1xf32> to vector<8x8xf32>
    %198 = arith.mulf %193, %197 : vector<8x8xf32>
    %199 = arith.truncf %198 : vector<8x8xf32> to vector<8x8xbf16>
    %cst_66 = arith.constant dense<0.000000e+00> : vector<8x16xf32>
    %200 = tpu.matmul %199, %185, %cst_66 {dimension_numbers = #tpu.dot_dimension_numbers<[1], [0], [0], [1], [0, 0, 1, 1], [], []>} : vector<8x8xbf16>, vector<8x16xbf16>, vector<8x16xf32> -> vector<8x16xf32>
    %201 = vector.extract_strided_slice %153 {offsets = [0, 32], sizes = [8, 16], strides = [1, 1]} : vector<8x64xf32> to vector<8x16xf32>
    %202 = arith.truncf %201 : vector<8x16xf32> to vector<8x16xbf16>
    %203 = vector.extract_strided_slice %157 {offsets = [0, 32], sizes = [8, 16], strides = [1, 1]} : vector<8x64xf32> to vector<8x16xf32>
    %204 = arith.truncf %203 : vector<8x16xf32> to vector<8x16xbf16>
    %205 = vector.extract_strided_slice %158 {offsets = [0, 32], sizes = [8, 16], strides = [1, 1]} : vector<8x64xf32> to vector<8x16xf32>
    %206 = arith.truncf %205 : vector<8x16xf32> to vector<8x16xbf16>
    %cst_67 = arith.constant dense<0.000000e+00> : vector<8x8xf32>
    %207 = tpu.matmul %202, %204, %cst_67 {dimension_numbers = #tpu.dot_dimension_numbers<[1], [1], [0], [0], [0, 0, 1, 0], [], []>} : vector<8x16xbf16>, vector<8x16xbf16>, vector<8x8xf32> -> vector<8x8xf32>
    %208 = vector.broadcast %7 : vector<1x8xf32> to vector<8x8xf32>
    %209 = arith.addf %207, %208 : vector<8x8xf32>
    %cst_68 = arith.constant dense<0xFF800000> : vector<8xf32>
    %210 = vector.multi_reduction <maximumf>, %209, %cst_68 [1] : vector<8x8xf32> to vector<8xf32>
    %211 = vector.shape_cast %210 : vector<8xf32> to vector<8x1xf32>
    %212 = vector.broadcast %211 : vector<8x1xf32> to vector<8x8xf32>
    %213 = arith.subf %209, %212 : vector<8x8xf32>
    %214 = math.exp %213 : vector<8x8xf32>
    %cst_69 = arith.constant dense<0.000000e+00> : vector<8xf32>
    %215 = vector.multi_reduction <add>, %214, %cst_69 [1] : vector<8x8xf32> to vector<8xf32>
    %216 = vector.shape_cast %215 : vector<8xf32> to vector<8x1xf32>
    %217 = tpu.reciprocal %216 {approx = true} : vector<8x1xf32> -> vector<8x1xf32>
    %218 = vector.broadcast %217 : vector<8x1xf32> to vector<8x8xf32>
    %219 = arith.mulf %214, %218 : vector<8x8xf32>
    %220 = arith.truncf %219 : vector<8x8xf32> to vector<8x8xbf16>
    %cst_70 = arith.constant dense<0.000000e+00> : vector<8x16xf32>
    %221 = tpu.matmul %220, %206, %cst_70 {dimension_numbers = #tpu.dot_dimension_numbers<[1], [0], [0], [1], [0, 0, 1, 1], [], []>} : vector<8x8xbf16>, vector<8x16xbf16>, vector<8x16xf32> -> vector<8x16xf32>
    %222 = vector.extract_strided_slice %153 {offsets = [0, 48], sizes = [8, 16], strides = [1, 1]} : vector<8x64xf32> to vector<8x16xf32>
    %223 = arith.truncf %222 : vector<8x16xf32> to vector<8x16xbf16>
    %224 = vector.extract_strided_slice %157 {offsets = [0, 48], sizes = [8, 16], strides = [1, 1]} : vector<8x64xf32> to vector<8x16xf32>
    %225 = arith.truncf %224 : vector<8x16xf32> to vector<8x16xbf16>
    %226 = vector.extract_strided_slice %158 {offsets = [0, 48], sizes = [8, 16], strides = [1, 1]} : vector<8x64xf32> to vector<8x16xf32>
    %227 = arith.truncf %226 : vector<8x16xf32> to vector<8x16xbf16>
    %cst_71 = arith.constant dense<0.000000e+00> : vector<8x8xf32>
    %228 = tpu.matmul %223, %225, %cst_71 {dimension_numbers = #tpu.dot_dimension_numbers<[1], [1], [0], [0], [0, 0, 1, 0], [], []>} : vector<8x16xbf16>, vector<8x16xbf16>, vector<8x8xf32> -> vector<8x8xf32>
    %229 = vector.broadcast %7 : vector<1x8xf32> to vector<8x8xf32>
    %230 = arith.addf %228, %229 : vector<8x8xf32>
    %cst_72 = arith.constant dense<0xFF800000> : vector<8xf32>
    %231 = vector.multi_reduction <maximumf>, %230, %cst_72 [1] : vector<8x8xf32> to vector<8xf32>
    %232 = vector.shape_cast %231 : vector<8xf32> to vector<8x1xf32>
    %233 = vector.broadcast %232 : vector<8x1xf32> to vector<8x8xf32>
    %234 = arith.subf %230, %233 : vector<8x8xf32>
    %235 = math.exp %234 : vector<8x8xf32>
    %cst_73 = arith.constant dense<0.000000e+00> : vector<8xf32>
    %236 = vector.multi_reduction <add>, %235, %cst_73 [1] : vector<8x8xf32> to vector<8xf32>
    %237 = vector.shape_cast %236 : vector<8xf32> to vector<8x1xf32>
    %238 = tpu.reciprocal %237 {approx = true} : vector<8x1xf32> -> vector<8x1xf32>
    %239 = vector.broadcast %238 : vector<8x1xf32> to vector<8x8xf32>
    %240 = arith.mulf %235, %239 : vector<8x8xf32>
    %241 = arith.truncf %240 : vector<8x8xf32> to vector<8x8xbf16>
    %cst_74 = arith.constant dense<0.000000e+00> : vector<8x16xf32>
    %242 = tpu.matmul %241, %227, %cst_74 {dimension_numbers = #tpu.dot_dimension_numbers<[1], [0], [0], [1], [0, 0, 1, 1], [], []>} : vector<8x8xbf16>, vector<8x16xbf16>, vector<8x16xf32> -> vector<8x16xf32>
    %243 = tpu.concatenate %179, %200, %221, %242 in 1 : vector<8x16xf32>, vector<8x16xf32>, vector<8x16xf32>, vector<8x16xf32> -> vector<8x64xf32>
    %244 = arith.truncf %243 : vector<8x64xf32> to vector<8x64xbf16>
    %c0_75 = arith.constant 0 : index
    %c0_76 = arith.constant 0 : index
    %245 = vector.load %arg12[%c0_75, %c0_76] : memref<64x64xbf16, #tpu.memory_space<vmem>>, vector<64x64xbf16>
    %cst_77 = arith.constant dense<0.000000e+00> : vector<8x64xf32>
    %246 = tpu.matmul %244, %245, %cst_77 {dimension_numbers = #tpu.dot_dimension_numbers<[1], [0], [0], [1], [0, 0, 1, 1], [], []>} : vector<8x64xbf16>, vector<64x64xbf16>, vector<8x64xf32> -> vector<8x64xf32>
    %247 = arith.addf %137, %246 : vector<8x64xf32>
    %c0_78 = arith.constant 0 : index
    %c0_79 = arith.constant 0 : index
    %248 = vector.load %arg13[%c0_78, %c0_79] : memref<1x64xf32, #tpu.memory_space<vmem>>, vector<1x64xf32>
    %249 = arith.mulf %247, %247 : vector<8x64xf32>
    %cst_80 = arith.constant dense<0.000000e+00> : vector<8xf32>
    %250 = vector.multi_reduction <add>, %249, %cst_80 [1] : vector<8x64xf32> to vector<8xf32>
    %251 = vector.shape_cast %250 : vector<8xf32> to vector<8x1xf32>
    %cst_81 = arith.constant 6.400000e+01 : f32
    %252 = vector.broadcast %cst_81 : f32 to vector<8x1xf32>
    %253 = arith.divf %251, %252 : vector<8x1xf32>
    %cst_82 = arith.constant 9.99999997E-7 : f32
    %254 = vector.broadcast %cst_82 : f32 to vector<8x1xf32>
    %255 = arith.addf %253, %254 : vector<8x1xf32>
    %256 = math.rsqrt %255 : vector<8x1xf32>
    %257 = vector.broadcast %256 : vector<8x1xf32> to vector<8x64xf32>
    %258 = arith.mulf %247, %257 : vector<8x64xf32>
    %259 = vector.broadcast %248 : vector<1x64xf32> to vector<8x64xf32>
    %260 = arith.mulf %258, %259 : vector<8x64xf32>
    %261 = arith.truncf %260 : vector<8x64xf32> to vector<8x64xbf16>
    %c0_83 = arith.constant 0 : index
    %c0_84 = arith.constant 0 : index
    %262 = vector.load %arg14[%c0_83, %c0_84] : memref<64x128xbf16, #tpu.memory_space<vmem>>, vector<64x128xbf16>
    %cst_85 = arith.constant dense<0.000000e+00> : vector<8x128xf32>
    %263 = tpu.matmul %261, %262, %cst_85 {dimension_numbers = #tpu.dot_dimension_numbers<[1], [0], [0], [1], [0, 0, 1, 1], [], []>} : vector<8x64xbf16>, vector<64x128xbf16>, vector<8x128xf32> -> vector<8x128xf32>
    %cst_86 = arith.constant 0.000000e+00 : f32
    %264 = vector.broadcast %cst_86 : f32 to vector<8x128xf32>
    %265 = arith.maximumf %263, %264 : vector<8x128xf32>
    %266 = arith.truncf %265 : vector<8x128xf32> to vector<8x128xbf16>
    %c0_87 = arith.constant 0 : index
    %c0_88 = arith.constant 0 : index
    %267 = vector.load %arg15[%c0_87, %c0_88] : memref<128x64xbf16, #tpu.memory_space<vmem>>, vector<128x64xbf16>
    %cst_89 = arith.constant dense<0.000000e+00> : vector<8x64xf32>
    %268 = tpu.matmul %266, %267, %cst_89 {dimension_numbers = #tpu.dot_dimension_numbers<[1], [0], [0], [1], [0, 0, 1, 1], [], []>} : vector<8x128xbf16>, vector<128x64xbf16>, vector<8x64xf32> -> vector<8x64xf32>
    %269 = arith.addf %247, %268 : vector<8x64xf32>
    %c0_90 = arith.constant 0 : index
    %c0_91 = arith.constant 0 : index
    %270 = vector.load %arg16[%c0_90, %c0_91] : memref<1x64xf32, #tpu.memory_space<vmem>>, vector<1x64xf32>
    %271 = arith.mulf %269, %269 : vector<8x64xf32>
    %cst_92 = arith.constant dense<0.000000e+00> : vector<8xf32>
    %272 = vector.multi_reduction <add>, %271, %cst_92 [1] : vector<8x64xf32> to vector<8xf32>
    %273 = vector.shape_cast %272 : vector<8xf32> to vector<8x1xf32>
    %cst_93 = arith.constant 6.400000e+01 : f32
    %274 = vector.broadcast %cst_93 : f32 to vector<8x1xf32>
    %275 = arith.divf %273, %274 : vector<8x1xf32>
    %cst_94 = arith.constant 9.99999997E-7 : f32
    %276 = vector.broadcast %cst_94 : f32 to vector<8x1xf32>
    %277 = arith.addf %275, %276 : vector<8x1xf32>
    %278 = math.rsqrt %277 : vector<8x1xf32>
    %279 = vector.broadcast %278 : vector<8x1xf32> to vector<8x64xf32>
    %280 = arith.mulf %269, %279 : vector<8x64xf32>
    %281 = vector.broadcast %270 : vector<1x64xf32> to vector<8x64xf32>
    %282 = arith.mulf %280, %281 : vector<8x64xf32>
    %c0_95 = arith.constant 0 : index
    %c0_96 = arith.constant 0 : index
    %c0_97 = arith.constant 0 : index
    %283 = vector.load %arg17[%c0_95, %c0_96, %c0_97] : memref<1x8x64xf32, #tpu.memory_space<vmem>>, vector<1x8x64xf32>
    %284 = vector.shape_cast %283 : vector<1x8x64xf32> to vector<8x64xf32>
    %285 = vector.shape_cast %282 : vector<8x64xf32> to vector<1x8x64xf32>
    tpu.vector_store %arg17[%c0_95, %c0_96, %c0_97], %285 {strides = array<i32>} : memref<1x8x64xf32, #tpu.memory_space<vmem>>, vector<1x8x64xf32>,
    return
  }
  func.func @transform_0(%arg0: i32) -> (i32, i32, i32) {
    %c0_i32 = arith.constant 0 : i32
    %c0_i32_0 = arith.constant 0 : i32
    %c0_i32_1 = arith.constant 0 : i32
    return %arg0, %c0_i32, %c0_i32_0 : i32, i32, i32
  }
  func.func @transform_1(%arg0: i32) -> (i32, i32, i32) {
    %c0_i32 = arith.constant 0 : i32
    %c0_i32_0 = arith.constant 0 : i32
    %c0_i32_1 = arith.constant 0 : i32
    return %arg0, %c0_i32, %c0_i32_0 : i32, i32, i32
  }
  func.func @transform_2(%arg0: i32) -> (i32, i32, i32) {
    %c0_i32 = arith.constant 0 : i32
    %c0_i32_0 = arith.constant 0 : i32
    %c0_i32_1 = arith.constant 0 : i32
    return %arg0, %c0_i32, %c0_i32_0 : i32, i32, i32
  }
  func.func @transform_3(%arg0: i32) -> (i32, i32, i32) {
    %c0_i32 = arith.constant 0 : i32
    %c0_i32_0 = arith.constant 0 : i32
    %c0_i32_1 = arith.constant 0 : i32
    return %arg0, %c0_i32, %c0_i32_0 : i32, i32, i32
  }
  func.func @transform_4(%arg0: i32) -> (i32, i32, i32) {
    %c0_i32 = arith.constant 0 : i32
    %c0_i32_0 = arith.constant 0 : i32
    %c0_i32_1 = arith.constant 0 : i32
    %c0_i32_2 = arith.constant 0 : i32
    return %c0_i32, %c0_i32_0, %c0_i32_1 : i32, i32, i32
  }
  func.func @transform_5(%arg0: i32) -> (i32, i32) {
    %c0_i32 = arith.constant 0 : i32
    %c0_i32_0 = arith.constant 0 : i32
    %c0_i32_1 = arith.constant 0 : i32
    return %c0_i32, %c0_i32_0 : i32, i32
  }
  func.func @transform_6(%arg0: i32) -> (i32, i32) {
    %c0_i32 = arith.constant 0 : i32
    %c0_i32_0 = arith.constant 0 : i32
    %c0_i32_1 = arith.constant 0 : i32
    return %c0_i32, %c0_i32_0 : i32, i32
  }
  func.func @transform_7(%arg0: i32) -> (i32, i32) {
    %c0_i32 = arith.constant 0 : i32
    %c0_i32_0 = arith.constant 0 : i32
    %c0_i32_1 = arith.constant 0 : i32
    return %c0_i32, %c0_i32_0 : i32, i32
  }
  func.func @transform_8(%arg0: i32) -> (i32, i32) {
    %c0_i32 = arith.constant 0 : i32
    %c0_i32_0 = arith.constant 0 : i32
    %c0_i32_1 = arith.constant 0 : i32
    return %c0_i32, %c0_i32_0 : i32, i32
  }
  func.func @transform_9(%arg0: i32) -> (i32, i32) {
    %c0_i32 = arith.constant 0 : i32
    %c0_i32_0 = arith.constant 0 : i32
    %c0_i32_1 = arith.constant 0 : i32
    return %c0_i32, %c0_i32_0 : i32, i32
  }
  func.func @transform_10(%arg0: i32) -> (i32, i32) {
    %c0_i32 = arith.constant 0 : i32
    %c0_i32_0 = arith.constant 0 : i32
    %c0_i32_1 = arith.constant 0 : i32
    return %c0_i32, %c0_i32_0 : i32, i32
  }
  func.func @transform_11(%arg0: i32) -> (i32, i32) {
    %c0_i32 = arith.constant 0 : i32
    %c0_i32_0 = arith.constant 0 : i32
    %c0_i32_1 = arith.constant 0 : i32
    return %c0_i32, %c0_i32_0 : i32, i32
  }
  func.func @transform_12(%arg0: i32) -> (i32, i32) {
    %c0_i32 = arith.constant 0 : i32
    %c0_i32_0 = arith.constant 0 : i32
    %c0_i32_1 = arith.constant 0 : i32
    return %c0_i32, %c0_i32_0 : i32, i32
  }
  func.func @transform_13(%arg0: i32) -> (i32, i32) {
    %c0_i32 = arith.constant 0 : i32
    %c0_i32_0 = arith.constant 0 : i32
    %c0_i32_1 = arith.constant 0 : i32
    return %c0_i32, %c0_i32_0 : i32, i32
  }
  func.func @transform_14(%arg0: i32) -> (i32, i32) {
    %c0_i32 = arith.constant 0 : i32
    %c0_i32_0 = arith.constant 0 : i32
    %c0_i32_1 = arith.constant 0 : i32
    return %c0_i32, %c0_i32_0 : i32, i32
  }
  func.func @transform_15(%arg0: i32) -> (i32, i32) {
    %c0_i32 = arith.constant 0 : i32
    %c0_i32_0 = arith.constant 0 : i32
    %c0_i32_1 = arith.constant 0 : i32
    return %c0_i32, %c0_i32_0 : i32, i32
  }
  func.func @transform_16(%arg0: i32) -> (i32, i32, i32) {
    %c0_i32 = arith.constant 0 : i32
    %c0_i32_0 = arith.constant 0 : i32
    %c0_i32_1 = arith.constant 0 : i32
    return %arg0, %c0_i32, %c0_i32_0 : i32, i32, i32
  }
}

</mosaic_0001>

<bundles_post_ra>
// kernel: t5_forward.5
= control target key start
LH: loop header
LB: loop body
LE: loop exit
PB: predicated region body
PF: predicated region fallthrough
CT: control target
= control target key end

     0   :  { %10 = vsyncpa [#allocation3], 0  ;;  %v302_v1 = vmov 0.0   ;;  %vm303_vm0 = vmmov 0   ;;  %v304_v3 = vmov 0   ;;  %s387_s0 = inlined_call_operand.vmem [shape: f32[16,64], index: 0, kind: input, shape index: {}]   ;;  %s388_s1 = inlined_call_operand.vmem [shape: bf16[64,128], index: 1, kind: input, shape index: {}]   ;;  %s389_s2 = inlined_call_operand.vmem [shape: s32[16,1], index: 2, kind: input, shape index: {}]   ;;  %s390_s3 = inlined_call_operand.hbm [shape: f32[16,128], index: 3, kind: output, shape index: {0}]   ;;  %s391_s4 = inlined_call_operand.hbm [shape: f32[1], index: 4, kind: output, shape index: {1}]  }
   0x1   :  { %v252_v0 = vld [vmem:[%s388_s1] sm:$0xff]   ;;  %224 = vmatprep.subr.bf16.mxu0 %v302_v1  ;;  %v253_v2 = vld [vmem:[%s388_s1 + $0x8] sm:$0xff]   ;;  %232 = vmatprep.mubr.msk.bf16.mxu0 %vm303_vm0, %v302_v1  ;;  %v254_v5 = vld [vmem:[%s388_s1 + $0x10] sm:$0xff]  }
   0x2   :  { %225 = vmatpush3.bf16.msra.mxu0 %v252_v0  ;;  %250 = vset.pattern.permute.xlu1 %v304_v3  ;;  %v103_v4 = vld [vmem:[%s389_s2] sm:$0xff] }
   0x3   :  { %226 = vmatprep.subr.bf16.mxu0 %v302_v1  ;;  %251 = vset.pattern.permute.xlu0 %v304_v3 }
   0x4   :  { %128 = vperm.xlu1 %250, %v103_v4  }
   0x5   :  { %11 = vsyncpa [#allocation4], 0  ;;  %v19_v6 = vld [vmem:[%s387_s0] sm:$0xff]  ;;  %v20_v7 = vld [vmem:[%s387_s0 + $0x8] sm:$0xff]  ;;  %vm56_vm1 = vcmask 523264   ;;  %v125_v23 = vlaneseq  ;;  %vm141_vm4 = vcmp.ne.s32.totalorder %v103_v4, 4294967196 }
   0x6   :  { %227 = vmatpush3.bf16.msra.mxu0 %v253_v2  ;;  %v104_v8 = vld [vmem:[%s389_s2 + $0x8] sm:$0xff]  ;;  %v21_v9 = vmul.f32 0.125, %v19_v6  ;;  %v22_v10 = vmul.f32 0.125, %v20_v7  ;;  %v255_v11 = vld [vmem:[%s388_s1 + $0x18] sm:$0xff]   ;;  %v217_v31 = vsel %vm141_vm4, 1.0, %v302_v1  ;;  %vm151_vm6 = vcmask 7168  }
   0x7   :  { %228 = vmatprep.subr.bf16.mxu0 %v302_v1  ;;  %v126_v25 = vand.u32 127, %v125_v23  ;;  %vm142_vm5 = vcmp.ne.s32.totalorder %v104_v8, 4294967196  ;;  %v164_v33 = vsel %vm151_vm6, %v217_v31, 0.0  ;;  %s305_s0 = smov [#allocation2]  }
   0x8   :  { %131 = vperm.xlu1 %250, %v104_v8   ;;  %v23_v12 = vpack.c.bf16 %v22_v10, %v21_v9  ;;  %v218_v32 = vsel %vm142_vm5, 1.0, %v302_v1  ;;  %s188_s1 = sshll.u32 %s305_s0, 4  ;;  %s189_s1 = int_to_ptr.vmem [resolvable:$true] %s188_s1 }
   0x9   :  { %v165_v34 = vsel %vm151_vm6, %v218_v32, 0.0  ;;  %s266_s2 = scalar_lea.vmem %s189_s1, 256  ;;  %p271_p1 = scmp.lt.s32.totalorder %s189_s1, %s189_s1 }
   0xa   :  { %229 = vmatpush3.bf16.msra.mxu0 %v254_v5  ;;  %v166_v35 = vadd.f32 %v165_v34, %v164_v33  ;;  %p267_p0 = scmp.ne.s32.totalorder %s189_s1, %s266_s2  ;;  %p272_p2 = scmp.lt.s32.totalorder %s266_s2, %s266_s2 }
   0xb   :  { %230 = vmatprep.subr.bf16.mxu0 %v302_v1 }
   0xc   :  { %p273_p3 = por %p272_p2, %p271_p1 }
   0xe   :  { %231 = vmatpush3.bf16.msra.mxu0 %v255_v11  ;;  %p274_p4 = pnand %p273_p3, %p267_p0 }
  0x11   :  { %233 = vmatmul.mubr.msk.bf16.vlgmr.msra.gmra.mrb[0].mxu0 %vm56_vm1, %v23_v12 }
  0x83   :  { %v129_v24 = vpop.permute.xlu1 %128 }
  0x84   :  { %vm133_vm2 = vcmp.eq.s32.totalorder %v126_v25, %v129_v24 }
  0x87   :  { %v132_v27 = vpop.permute.xlu1 %131 }
  0x88   :  { %vm134_vm3 = vcmp.eq.s32.totalorder %v126_v25, %v132_v27 }
  0xe4   :  { %v94_v13 = vpop.f32.mrb[0].mxu0 }
  0xe5   :  { %101 = vst [vmem:[#allocation2] sm:$0xff] %v94_v13  ;;  %105 = vmax.xlane.f32.xlu0 %v94_v13  ;;  %v234_v14 = vpop.f32.mrb[1].mxu0  ;;  %v135_v29 = vsel %vm133_vm2, %v94_v13, 0.0 }
  0xe6   :  { %v97_v15 = vpop.f32.mrb[2].mxu0 }
  0xe7   :  { %102 = vst [vmem:[#allocation2 + $0x8] sm:$0xff] %v97_v15  ;;  %v235_v16 = vpop.f32.mrb[3].mxu0  ;;  %v136_v30 = vsel %vm134_vm3, %v97_v15, 0.0 }
  0xe9   :  { %107 = vmax.xlane.f32.xlu0 %v97_v15 }
 0x172   :  { %v106_v17 = vpop.xlane.xlu0 %105 }
 0x173   :  { %v109_v18 = vsub.f32 %v94_v13, %v106_v17 }
 0x175   :  { %v111_v19 = vmul.f32 1.442695, %v109_v18 }
 0x176   :  { %v108_v20 = vpop.xlane.xlu0 %107 }
 0x177   :  { %256 = vpow2.f32 %v111_v19  ;;  %v110_v21 = vsub.f32 %v97_v15, %v108_v20 }
 0x179   :  { %v113_v22 = vmul.f32 1.442695, %v110_v21 }
 0x17b   :  { %258 = vpow2.f32 %v113_v22 }
 0x181   :  { %v257_v26 = vpop.eup %256 }
 0x182   :  { %115 = vadd.xlane.f32.xlu0 %v257_v26 }
 0x185   :  { %v259_v28 = vpop.eup %258 }
 0x186   :  { %137 = vadd.xlane.f32.xlu0 %v135_v29  ;;  %117 = vadd.xlane.f32.xlu1 %v259_v28 }
 0x18a   :  { %139 = vadd.xlane.f32.xlu0 %v136_v30 }
 0x20f   :  { %v116_v36 = vpop.xlane.xlu0 %115 }
 0x210   :  { %260 = vlog2.f32 %v116_v36 }
 0x213   :  { %v118_v37 = vpop.xlane.xlu1 %117  ;;  %v138_v40 = vpop.xlane.xlu0 %137 }
 0x214   :  { %262 = vlog2.f32 %v118_v37 }
 0x217   :  { %v140_v46 = vpop.xlane.xlu0 %139 }
 0x21a   :  { %v261_v38 = vpop.eup %260 }
 0x21b   :  { %v120_v39 = vmul.f32 0.6931472, %v261_v38 }
 0x21d   :  { %v123_v41 = vadd.f32 %v120_v39, %v106_v17 }
 0x21e   :  { %v263_v42 = vpop.eup %262 }
 0x21f   :  { %v122_v43 = vmul.f32 0.6931472, %v263_v42  ;;  %v147_v44 = vsub.f32 %v123_v41, %v138_v40 }
 0x221   :  { %v124_v45 = vadd.f32 %v122_v43, %v108_v20  ;;  %v149_v47 = vmul.f32 %v217_v31, %v147_v44 }
 0x223   :  { %v148_v48 = vsub.f32 %v124_v45, %v140_v46  ;;  %v152_v50 = vsel %vm151_vm6, %v149_v47, 0.0 }
 0x225   :  { %v150_v49 = vmul.f32 %v218_v32, %v148_v48 }
 0x227   :  { %v153_v51 = vsel %vm151_vm6, %v150_v49, 0.0 }
 0x228   :  { %v154_v52 = vadd.f32 %v153_v51, %v152_v50 }
 0x22a   :  { %155 = vadd.xlane.f32.xlu0 %v154_v52 }
 0x22e   :  { %167 = vadd.xlane.f32.xlu0 %v166_v35 }
 0x2b7   :  { %v156_v53 = vpop.xlane.xlu0 %155 }
 0x2b8   :  { %v157_v54 = vrot.slane %v156_v53, 4 }
 0x2ba   :  { %v158_v55 = vadd.f32 %v157_v54, %v156_v53 }
 0x2bb   :  { %v168_v56 = vpop.xlane.xlu0 %167 }
 0x2bc   :  { %v159_v57 = vrot.slane %v158_v55, 2  ;;  %v169_v58 = vrot.slane %v168_v56, 4 }
 0x2bd   :  { %277 = shalt.err (!%p274_p4)
}
 0x2be   :  { %s278_s7 = scalar_lea.hbm %s390_s3, 256 }
 0x2bf   :  { %p279_p5 = scmp.ne.s32.totalorder %s390_s3, %s278_s7  ;;  %p282_p6 = scmp.lt.u32.totalorder %s278_s7, %s390_s3 }
 0x2c1   :  { %p284_p7 = pnand %p282_p6, %p279_p5 }
 0x2c3   :  { %287 = shalt.err (!%p284_p7)
}
 0x2c4   :  { %s306_s12 = smov 128   ;;  %s307_s13 = smov 8   ;;  %v170_v59 = vadd.f32 %v169_v58, %v168_v56  ;;  %v160_v60 = vadd.f32 %v159_v57, %v158_v55 }
 0x2c5   :  { %194 = dma.vmem_to_hbm [thread:$0]  %s189_s1, 256, %s390_s3, [#allocation3], %s306_s12, %s306_s12, %s307_s13  }
 0x2c6   :  { %v171_v61 = vrot.slane %v170_v59, 2  ;;  %v161_v62 = vrot.slane %v160_v60, 1  ;;  %s308_s18 = smov 1.0   ;;  %s288_s23 = scalar_lea.hbm %s391_s4, 16 }
 0x2c7   :  { %p289_p8 = scmp.ne.s32.totalorder %s391_s4, %s288_s23  ;;  %p292_p9 = scmp.lt.u32.totalorder %s288_s23, %s391_s4 }
 0x2c8   :  { %v172_v63 = vadd.f32 %v171_v61, %v170_v59  ;;  %v162_v0 = vadd.f32 %v161_v62, %v160_v60 }
 0x2c9   :  { %p294_p10 = pnand %p292_p9, %p289_p8 }
 0x2ca   :  { %236 = vpush %v162_v0  ;;  %v173_v1 = vrot.slane %v172_v63, 1 }
 0x2cc   :  { %v174_v2 = vadd.f32 %v173_v1, %v172_v63 }
 0x2ce   :  { %238 = vpush %v174_v2 }
 0x2fb   :  { %s237_s16 = spop %236 }
 0x2ff   :  { %s239_s17 = spop %238 }
 0x300   :  { %s176_s19 = smax.f32 %s308_s18, %s239_s17 }
 0x301   :  { %v177_v3 = vstv %s176_s19 }
 0x302   :  { %264 = vrcp.f32 %v177_v3 }
 0x30c   :  { %v265_v4 = vpop.eup %264 }
 0x30d   :  { %240 = vpush %v265_v4 }
 0x33e   :  { %s241_s20 = spop %240 }
 0x33f   :  { %s180_s3 = smul.f32 %s241_s20, %s237_s16 }
 0x341   :  { %182 = sst [smem:[#allocation5]] %s180_s3 }
 0x342   :  { %297 = shalt.err (!%p294_p10)
}
 0x343   :  { %s309_s28 = smov [#allocation5]  }
 0x344   :  { %202 = dma.smem_to_hbm %s309_s28, 16, %s391_s4, [#allocation4]  }
 0x345   :  { %298 = dma.done.wait [#allocation3], 256  }
 0x346   :  { %299 = vsyncadd [#allocation3], 4294967040 }
 0x347   :  { %300 = dma.done.wait [#allocation4], 16  }
 0x348   :  { %301 = vsyncadd [#allocation4], 4294967280 }
 0x349   :  { %209 = sfence }
 0x34a   :  { %210 = vsyncpa [#allocation3], 1 }
 0x34b   :  { %211 = vsyncpa [#allocation4], 1 }

// kernel: t5_forward.3
= control target key start
LH: loop header
LB: loop body
LE: loop exit
PB: predicated region body
PF: predicated region fallthrough
CT: control target
= control target key end

     0   :  { %s1634_s13 = smov 0   ;;  %s1857_s0 = inlined_call_operand.vmem [shape: f32[2,8,64], index: 0, kind: input, shape index: {}]   ;;  %s1858_s1 = inlined_call_operand.vmem [shape: f32[2,1,8], index: 1, kind: input, shape index: {}]   ;;  %s1859_s2 = inlined_call_operand.vmem [shape: f32[4,8,8], index: 2, kind: input, shape index: {}]   ;;  %s1860_s3 = inlined_call_operand.vmem [shape: f32[1,64], index: 3, kind: input, shape index: {}]   ;;  %s1861_s4 = inlined_call_operand.vmem [shape: bf16[64,192], index: 4, kind: input, shape index: {}]   ;;  %s1862_s5 = inlined_call_operand.vmem [shape: bf16[64,64], index: 5, kind: input, shape index: {}]   ;;  %s1863_s6 = inlined_call_operand.vmem [shape: f32[1,64], index: 6, kind: input, shape index: {}]   ;;  %s1864_s7 = inlined_call_operand.vmem [shape: bf16[64,128], index: 7, kind: input, shape index: {}]   ;;  %s1865_s8 = inlined_call_operand.vmem [shape: bf16[128,64], index: 8, kind: input, shape index: {}]   ;;  %s1866_s9 = inlined_call_operand.vmem [shape: f32[1,64], index: 9, kind: input, shape index: {}]   ;;  %s1867_s10 = inlined_call_operand.vmem [shape: f32[2,8,64], index: 10, kind: output, shape index: {}]  }
   0x1 LB: > { %s1315_s14 = sadd.s32 4294967295, %s1567_s13   ;;  %p1319_p0 = scmp.ge.s32.totalorder %s1567_s13, 1  ;;  %s1567_s13 = sphi %s1634_s13, %s20_s13  }
   0x2   : > { %p319_p1 = scmp.lt.s32.totalorder %s1567_s13, 3 }
   0x4   : > { %p320_p2 = pnand %p1319_p0, %p319_p1 }
   0x5   : > { %p358_p3 = scmp.lt.s32.totalorder (!%p320_p2), %s1315_s14, 1  ;;  %vm374_vm0 = vcmask (!%p320_p2), 523264   ;;  %v1511_v3 = vld [vmem:[%s1861_s4 + $0x4] ss:$8 sps:$4 sm:$0xff] (!%p320_p2)   ;;  %v1513_v4 = vld [vmem:[%s1861_s4] ss:$8 sps:$4 sm:$0xff] (!%p320_p2)  }
   0x6   : > { %323 = sbr.rel (%p320_p2) target bundleno = 2408 (0x968), region = 60  ;;  %v1514_v5 = vld [vmem:[%s1861_s4 + $0x14] ss:$8 sps:$4 sm:$0xff] (!%p320_p2)   ;;  %442 = vmatprep.subr.bf16.mxu1 (!%p320_p2), %v1511_v3  ;;  %v1516_v6 = vld [vmem:[%s1861_s4 + $0x10] ss:$8 sps:$4 sm:$0xff] (!%p320_p2)   ;;  %v1569_v8 = vmov (!%p320_p2), 0  }
   0x7   : > { %443 = vmatpush1.bf16.msra.mxu1 (!%p320_p2), %v1513_v4  ;;  %v1517_v7 = vld [vmem:[%s1861_s4 + $0x24] ss:$8 sps:$4 sm:$0xff] (!%p320_p2)   ;;  %474 = vmatprep.mubr.bf16.mxu1 (!%p320_p2), %v1569_v8  ;;  %v1519_v9 = vld [vmem:[%s1861_s4 + $0x20] ss:$8 sps:$4 sm:$0xff] (!%p320_p2)   ;;  %v1520_v10 = vld [vmem:[%s1861_s4 + $0x34] ss:$8 sps:$4 sm:$0xff] (!%p320_p2)  }
   0x8   : > { %444 = vmatprep.subr.bf16.mxu1 (!%p320_p2), %v1514_v5  ;;  %v1522_v11 = vld [vmem:[%s1861_s4 + $0x30] ss:$8 sps:$4 sm:$0xff] (!%p320_p2)   ;;  %v1322_v16 = vld [vmem:[%s1860_s3] ss:$0 sm:$0xff] (!%p320_p2)  ;;  %v1570_v20 = vmov (!%p320_p2), 0.0   ;;  %vm1571_vm1 = vmmov (!%p320_p2), 0  }
   0x9   : > { %1413 = vmatprep.subr.bf16.mxu0 (!%p320_p2), %v1570_v20  ;;  %1415 = vmatprep.mubr.msk.bf16.mxu0 (!%p320_p2), %vm1571_vm1, %v1570_v20  ;;  %s1572_s20 = smov (!%p320_p2), 48   ;;  %s1573_s21 = smov (!%p320_p2), 64   ;;  %vm496_vm2 = vcmask (!%p320_p2), 130048   ;;  %vm559_vm3 = vcmask (!%p320_p2), 1043456   ;;  %v485_v40 = vld [vmem:[%s1859_s2] sm:$0xff] (!%p320_p2)  ;;  %v1335_v41 = vld [vmem:[%s1859_s2 + $0x8] sm:$0xff] (!%p320_p2) }
   0xa   : > { %s1574_s22 = smov (!%p320_p2), 112   ;;  %s1575_s23 = smov (!%p320_p2), 32   ;;  %vm543_vm4 = vcmask (!%p320_p2), 64512   ;;  %v1338_v52 = vld [vmem:[%s1859_s2 + $0x10] sm:$0xff] (!%p320_p2)  ;;  %v1341_v62 = vld [vmem:[%s1859_s2 + $0x18] sm:$0xff] (!%p320_p2)  ;;  %vm956_vm5 = vcmask (!%p320_p2), 261120  }
   0xb   : > { %445 = vmatpush1.bf16.msra.mxu1 (!%p320_p2), %v1516_v6  ;;  %s1576_s24 = smov (!%p320_p2), 96   ;;  %s1577_s25 = smov (!%p320_p2), 16   ;;  %vm958_vm6 = vcmask (!%p320_p2), 392192  }
   0xc   : > { %446 = vmatprep.subr.bf16.mxu1 (!%p320_p2), %v1517_v7  ;;  %s1578_s26 = smov (!%p320_p2), 80  }
   0xd   : > { %s1869_s14 = smov (!%p358_p3, %s1315_s14), 1 }
   0xe   : > { %s1320_s15 = sshll.u32 %s1869_s14, 3  ;;  %s364_s29 = scalar_lea.vmem %s1858_s1, %s1869_s14 }
   0xf   : > { %s361_s18 = scalar_lea.vmem %s1857_s0, %s1320_s15  ;;  %447 = vmatpush1.bf16.msra.mxu1 %v1519_v9  ;;  %v1332_v39 = vld [vmem:[%s364_s29] ss:$0 sm:$0xff]  ;;  %s368_s28 = scalar_lea.vmem %s1867_s10, %s1320_s15 }
  0x10   : > { %v1650_v0 = vld [vmem:[%s361_s18] sm:$0xff]  ;;  %448 = vmatprep.subr.bf16.mxu1 %v1520_v10  ;;  %v492_v42 = vadd.f32 %v1332_v39, %v485_v40  ;;  %v605_v43 = vadd.f32 %v1335_v41, %v1332_v39  ;;  %v719_v57 = vadd.f32 %v1338_v52, %v1332_v39 }
  0x11   : > { %v373_v1 = vmul.f32 %v1650_v0, %v1650_v0 }
  0x13   : > { %v375_v2 = vsel %vm374_vm0, %v373_v1, 0.0  ;;  %449 = vmatpush1.bf16.msra.mxu1 %v1522_v11 }
  0x14   : > { %376 = vadd.xlane.f32.xlu0 %v375_v2  ;;  %1401 = vmatprep.subr.bf16.mxu1 %v1570_v20  ;;  %v832_v2 = vadd.f32 %v1341_v62, %v1332_v39 }
  0xa1   : > { %v377_v12 = vpop.xlane.xlu0 %376 }
  0xa2   : > { %v379_v13 = vmul.f32 0.015625, %v377_v12 }
  0xa4   : > { %v380_v14 = vadd.f32 1e-06, %v379_v13 }
  0xa6   : > { %1539 = vrsqrt.f32 %v380_v14 }
  0xb0   : > { %v1540_v15 = vpop.eup %1539 }
  0xb1   : > { %v382_v17 = vmul.f32 %v1540_v15, %v1650_v0 }
  0xb3   : > { %v389_v18 = vmul.f32 %v1322_v16, %v382_v17 }
  0xb5   : > { %v390_v19 = vpack.c.bf16 %v389_v18, %v389_v18 }
  0xb7   : > { %1331 = vmatmul.mubr.msk.bf16.vlgmr.msra.gmra.mrb[0].mxu1 %vm374_vm0, %v390_v19 }
  0xb8   : > { %1403 = vmatprep.mubr.msk.bf16.mxu1 %vm1571_vm1, %v1570_v20 }
 0x18a   : > { %v476_v21 = vpop.f32.mrb[0].mxu1 }
 0x18b   : > { %v483_v22 = vpack.c.bf16 %v476_v21, %v476_v21  ;;  %v478_v23 = vpop.f32.mrb[1].mxu1 }
 0x18c   : > { %v480_v24 = vpop.f32.mrb[2].mxu1  ;;  %v1700_v31 = vpack.c.bf16 %v478_v23, %v478_v23 }
 0x18d   : > { %608 = vrot.lane.b32.xlu1 %v483_v22, %s1572_s20  ;;  %494 = vrot.lane.b32.xlu0 %v483_v22, %s1573_s21  ;;  %v481_v25 = vpop.f32.mrb[3].mxu1 }
 0x18e   : > { %v561_v34 = vsel %vm559_vm3, %v1700_v31, 0 }
 0x191   : > { %606 = vrot.lane.b32.xlu1 %v483_v22, %s1574_s22 }
 0x195   : > { %722 = vrot.lane.b32.xlu1 %v483_v22, %s1575_s23 }
 0x199   : > { %720 = vrot.lane.b32.xlu1 %v483_v22, %s1576_s24 }
 0x19d   : > { %835 = vrot.lane.b32.xlu1 %v483_v22, %s1577_s25 }
 0x1a1   : > { %833 = vrot.lane.b32.xlu1 %v483_v22, %s1578_s26 }
 0x1ff   : > { %v609_v26 = vpop.permute.xlu1 %608  ;;  %v495_v27 = vpop.permute.xlu0 %494 }
 0x200   : > { %v501_v28 = vsel %vm496_vm2, %v495_v27, 0  ;;  %v614_v29 = vsel %vm496_vm2, %v609_v26, 0 }
 0x201   : > { %1402 = vmatpush3.bf16.xpose.msra.mxu1 %v501_v28  ;;  %1414 = vmatpush3.bf16.xpose.msra.mxu0 %v614_v29 }
 0x202   : > { %1407 = vmatprep.subr.bf16.mxu1 %v1570_v20  ;;  %1425 = vmatprep.subr.bf16.mxu0 %v1570_v20 }
 0x203   : > { %v607_v30 = vpop.permute.xlu1 %606 }
 0x207   : > { %v723_v32 = vpop.permute.xlu1 %722 }
 0x208   : > { %v728_v33 = vsel %vm496_vm2, %v723_v32, 0  ;;  %1404 = vmatmul.mubr.msk.bf16.vlgmr.msra.gmra.mrb[4].mxu1 %vm496_vm2, %v483_v22  ;;  %1416 = vmatmul.mubr.msk.bf16.vlgmr.msra.gmra.mrb[0].mxu0 %vm496_vm2, %v607_v30 }
 0x209   : > { %1408 = vmatpush3.bf16.msra.mxu1 %v561_v34  ;;  %1426 = vmatpush3.bf16.xpose.msra.mxu0 %v728_v33 }
 0x20a   : > { %1427 = vmatprep.mubr.msk.bf16.mxu0 %vm1571_vm1, %v1570_v20  ;;  %1437 = vmatprep.subr.bf16.mxu0 %v1570_v20 }
 0x20b   : > { %v721_v35 = vpop.permute.xlu1 %720  ;;  %1409 = vmatprep.mubr.msk.bf16.mxu1 %vm1571_vm1, %v1570_v20  ;;  %1419 = vmatprep.subr.bf16.mxu1 %v1570_v20 }
 0x20f   : > { %v836_v36 = vpop.permute.xlu1 %835 }
 0x210   : > { %v841_v37 = vsel %vm496_vm2, %v836_v36, 0  ;;  %1428 = vmatmul.mubr.msk.bf16.vlgmr.msra.gmra.mrb[4].mxu0 %vm496_vm2, %v721_v35 }
 0x211   : > { %1438 = vmatpush3.bf16.xpose.msra.mxu0 %v841_v37  ;;  %1439 = vmatprep.mubr.msk.bf16.mxu0 %vm1571_vm1, %v1570_v20 }
 0x212   : > { %1449 = vmatprep.subr.bf16.mxu0 %v1570_v20 }
 0x213   : > { %v834_v38 = vpop.permute.xlu1 %833 }
 0x218   : > { %1440 = vmatmul.mubr.msk.bf16.vlgmr.msra.gmra.mrb[8].mxu0 %vm496_vm2, %v834_v38 }
 0x219   : > { %1457 = vmatprep.mubr.msk.bf16.mxu0 %vm1571_vm1, %v1570_v20 }
 0x2db   : > { %v537_v44 = vpop.f32.mrb[4].mxu1  ;;  %v650_v45 = vpop.f32.mrb[0].mxu0 }
 0x2dc   : > { %v538_v46 = vadd.f32 %v537_v44, %v492_v42  ;;  %v651_v47 = vadd.f32 %v650_v45, %v605_v43  ;;  %v1405_v48 = vpop.f32.mrb[5].mxu1  ;;  %v1417_v49 = vpop.f32.mrb[1].mxu0 }
 0x2dd   : > { %v540_v50 = vpop.f32.mrb[6].mxu1  ;;  %v653_v51 = vpop.f32.mrb[2].mxu0 }
 0x2de   : > { %v1406_v53 = vpop.f32.mrb[7].mxu1  ;;  %v1418_v54 = vpop.f32.mrb[3].mxu0  ;;  %v656_v55 = vsel %vm543_vm4, %v651_v47, -inf  ;;  %v544_v56 = vsel %vm543_vm4, %v538_v46, -inf }
 0x2df   : > { %657 = vmax.xlane.f32.xlu0 %v656_v55  ;;  %545 = vmax.xlane.f32.xlu1 %v544_v56  ;;  %v1523_v56 = vld [vmem:[%s1862_s5] sm:$0xff]  }
 0x2e0   : > { %1450 = vmatpush3.bf16.msra.mxu0 %v1523_v56 }
 0x2e1   : > { %1451 = vmatprep.subr.bf16.mxu0 %v1570_v20 }
 0x2e3   : > { %v764_v58 = vpop.f32.mrb[4].mxu0 }
 0x2e4   : > { %v765_v59 = vadd.f32 %v764_v58, %v719_v57  ;;  %v1429_v60 = vpop.f32.mrb[5].mxu0  ;;  %v1524_v57 = vld [vmem:[%s1862_s5 + $0x8] sm:$0xff]  }
 0x2e5   : > { %v767_v61 = vpop.f32.mrb[6].mxu0  ;;  %1452 = vmatpush3.bf16.msra.mxu0 %v1524_v57 }
 0x2e6   : > { %v1430_v63 = vpop.f32.mrb[7].mxu0  ;;  %v770_v1 = vsel %vm543_vm4, %v765_v59, -inf  ;;  %v1525_v61 = vld [vmem:[%s1862_s5 + $0x10] sm:$0xff]   ;;  %1453 = vmatprep.subr.bf16.mxu0 %v1570_v20 }
 0x2e7   : > { %771 = vmax.xlane.f32.xlu0 %v770_v1 }
 0x2e9   : > { %1454 = vmatpush3.bf16.msra.mxu0 %v1525_v61 }
 0x2ea   : > { %1455 = vmatprep.subr.bf16.mxu0 %v1570_v20 }
 0x2eb   : > { %v877_v3 = vpop.f32.mrb[8].mxu0 }
 0x2ec   : > { %v878_v4 = vadd.f32 %v877_v3, %v832_v2  ;;  %v1441_v5 = vpop.f32.mrb[9].mxu0 }
 0x2ed   : > { %v880_v6 = vpop.f32.mrb[10].mxu0 }
 0x2ee   : > { %v1442_v7 = vpop.f32.mrb[11].mxu0  ;;  %v883_v8 = vsel %vm543_vm4, %v878_v4, -inf }
 0x2ef   : > { %884 = vmax.xlane.f32.xlu1 %v883_v8 }
 0x36c   : > { %v658_v9 = vpop.xlane.xlu0 %657  ;;  %v546_v10 = vpop.xlane.xlu1 %545 }
 0x36d   : > { %v659_v11 = vsub.f32 %v651_v47, %v658_v9  ;;  %v547_v12 = vsub.f32 %v538_v46, %v546_v10 }
 0x36f   : > { %v660_v13 = vmul.f32 1.442695, %v659_v11  ;;  %v548_v14 = vmul.f32 1.442695, %v547_v12 }
 0x371   : > { %1541 = vpow2.f32 %v660_v13 }
 0x372   : > { %1543 = vpow2.f32 %v548_v14 }
 0x374   : > { %v772_v15 = vpop.xlane.xlu0 %771 }
 0x375   : > { %v773_v16 = vsub.f32 %v765_v59, %v772_v15 }
 0x377   : > { %v774_v17 = vmul.f32 1.442695, %v773_v16 }
 0x379   : > { %1545 = vpow2.f32 %v774_v17 }
 0x37b   : > { %v1542_v18 = vpop.eup %1541 }
 0x37c   : > { %v1544_v19 = vpop.eup %1543  ;;  %v662_v21 = vsel %vm543_vm4, %v1542_v18, 0.0  ;;  %v885_v25 = vpop.xlane.xlu1 %884 }
 0x37d   : > { %663 = vadd.xlane.f32.xlu1 %v662_v21  ;;  %v550_v22 = vsel %vm543_vm4, %v1544_v19, 0.0  ;;  %v886_v26 = vsub.f32 %v878_v4, %v885_v25  ;;  %v1526_v4 = vld [vmem:[%s1862_s5 + $0x18] sm:$0xff]   ;;  %v1528_v25 = vld [vmem:[%s1864_s7 + $0x8] sm:$0xff]  }
 0x37e   : > { %551 = vadd.xlane.f32.xlu0 %v550_v22  ;;  %1456 = vmatpush3.bf16.msra.mxu0 %v1526_v4 }
 0x37f   : > { %v887_v27 = vmul.f32 1.442695, %v886_v26  ;;  %1473 = vmatprep.subr.bf16.mxu0 %v1570_v20  ;;  %v1530_v26 = vld [vmem:[%s1864_s7 + $0x18] sm:$0xff]  }
 0x381   : > { %1547 = vpow2.f32 %v887_v27  ;;  %v1531_v27 = vld [vmem:[%s1865_s8] sm:$0xff]  }
 0x383   : > { %v1546_v23 = vpop.eup %1545 }
 0x384   : > { %v776_v24 = vsel %vm543_vm4, %v1546_v23, 0.0 }
 0x385   : > { %777 = vadd.xlane.f32.xlu0 %v776_v24  ;;  %v1527_v24 = vld [vmem:[%s1864_s7] sm:$0xff]  }
 0x38b   : > { %v1548_v28 = vpop.eup %1547 }
 0x38c   : > { %v889_v29 = vsel %vm543_vm4, %v1548_v28, 0.0 }
 0x38e   : > { %782 = vrot.lane.b32.xlu1 %v1700_v31, %s1576_s24 }
 0x39b   : > { %669 = vrot.lane.b32.xlu0 %v1700_v31, %s1574_s22 }
 0x3b2   : > { %890 = vadd.xlane.f32.xlu1 %v889_v29  ;;  %v1533_v29 = vld [vmem:[%s1865_s8 + $0x10] sm:$0xff]  }
 0x3c3   : > { %895 = vrot.lane.b32.xlu1 %v1700_v31, %s1578_s26 }
 0x40a   : > { %v664_v32 = vpop.xlane.xlu1 %663 }
 0x40b   : > { %v552_v30 = vpop.xlane.xlu0 %551 }
 0x40c   : > { %1549 = vrcp.f32 %v552_v30  ;;  %v1534_v30 = vld [vmem:[%s1865_s8 + $0x18] sm:$0xff]  }
 0x40d   : > { %1551 = vrcp.f32 %v664_v32  ;;  %v1535_v32 = vld [vmem:[%s1865_s8 + $0x20] sm:$0xff]  }
 0x40e   : > { %v783_v40 = vpop.permute.xlu1 %782 }
 0x40f   : > { %v788_v43 = vsel %vm559_vm3, %v783_v40, 0 }
 0x412   : > { %v778_v33 = vpop.xlane.xlu0 %777 }
 0x413   : > { %1553 = vrcp.f32 %v778_v33  ;;  %v1536_v33 = vld [vmem:[%s1865_s8 + $0x28] sm:$0xff]  }
 0x416   : > { %v1550_v34 = vpop.eup %1549  ;;  %v670_v36 = vpop.permute.xlu0 %669 }
 0x417   : > { %v554_v35 = vmul.f32 %v1550_v34, %v1544_v19  ;;  %v1552_v38 = vpop.eup %1551  ;;  %v675_v39 = vsel %vm559_vm3, %v670_v36, 0  ;;  %v1537_v34 = vld [vmem:[%s1865_s8 + $0x30] sm:$0xff]  }
 0x418   : > { %v666_v31 = vmul.f32 %v1552_v38, %v1542_v18 }
 0x419   : > { %v555_v37 = vpack.c.bf16 %v554_v35, %v554_v35 }
 0x41a   : > { %v667_v41 = vpack.c.bf16 %v666_v31, %v666_v31 }
 0x41b   : > { %1410 = vmatmul.mubr.msk.bf16.vlgmr.msra.gmra.mrb[8].mxu1 %vm543_vm4, %v555_v37 }
 0x41c   : > { %1420 = vmatpush3.bf16.msra.mxu1 %v675_v39  ;;  %1421 = vmatprep.mubr.msk.bf16.mxu1 %vm1571_vm1, %v1570_v20  ;;  %v1349_v39 = vld [vmem:[%s1863_s6] ss:$0 sm:$0xff] }
 0x41d   : > { %1431 = vmatprep.subr.bf16.mxu1 %v1570_v20  ;;  %v1554_v42 = vpop.eup %1553 }
 0x41e   : > { %v780_v44 = vmul.f32 %v1554_v42, %v1546_v23  ;;  %v1538_v42 = vld [vmem:[%s1865_s8 + $0x38] sm:$0xff]  }
 0x420   : > { %v781_v45 = vpack.c.bf16 %v780_v44, %v780_v44 }
 0x423   : > { %1422 = vmatmul.mubr.msk.bf16.vlgmr.msra.gmra.mrb[12].mxu1 %vm543_vm4, %v667_v41 }
 0x424   : > { %1432 = vmatpush3.bf16.msra.mxu1 %v788_v43  ;;  %1433 = vmatprep.mubr.msk.bf16.mxu1 %vm1571_vm1, %v1570_v20 }
 0x425   : > { %1443 = vmatprep.subr.bf16.mxu1 %v1570_v20 }
 0x42b   : > { %1434 = vmatmul.mubr.msk.bf16.vlgmr.msra.gmra.mrb[16].mxu1 %vm543_vm4, %v781_v45 }
 0x42c   : > { %1445 = vmatprep.mubr.msk.bf16.mxu1 %vm1571_vm1, %v1570_v20 }
 0x43f   : > { %v891_v46 = vpop.xlane.xlu1 %890 }
 0x440   : > { %1555 = vrcp.f32 %v891_v46 }
 0x443   : > { %v896_v47 = vpop.permute.xlu1 %895 }
 0x444   : > { %v901_v48 = vsel %vm559_vm3, %v896_v47, 0 }
 0x445   : > { %1444 = vmatpush3.bf16.msra.mxu1 %v901_v48 }
 0x446   : > { %1461 = vmatprep.subr.bf16.mxu1 %v1570_v20 }
 0x44a   : > { %v1556_v49 = vpop.eup %1555 }
 0x44b   : > { %v893_v50 = vmul.f32 %v1556_v49, %v1548_v28  ;;  %v1532_v28 = vld [vmem:[%s1865_s8 + $0x8] sm:$0xff]  }
 0x44d   : > { %v894_v51 = vpack.c.bf16 %v893_v50, %v893_v50 }
 0x44f   : > { %1446 = vmatmul.mubr.msk.bf16.vlgmr.msra.gmra.mrb[20].mxu1 %vm543_vm4, %v894_v51 }
 0x450   : > { %1469 = vmatprep.mubr.msk.bf16.mxu1 %vm1571_vm1, %v1570_v20  ;;  %1462 = vmatpush3.bf16.msra.mxu1 %v1527_v24 }
 0x451   : > { %1463 = vmatprep.subr.bf16.mxu1 %v1570_v20 }
 0x454   : > { %1464 = vmatpush3.bf16.msra.mxu1 %v1528_v25 }
 0x455   : > { %1465 = vmatprep.subr.bf16.mxu1 %v1570_v20 }
 0x4ee   : > { %v597_v52 = vpop.f32.mrb[8].mxu1 }
 0x4ef   : > { %v1411_v53 = vpop.f32.mrb[9].mxu1 }
 0x4f0   : > { %v600_v54 = vpop.f32.mrb[10].mxu1 }
 0x4f1   : > { %v1412_v55 = vpop.f32.mrb[11].mxu1 }
 0x4f6   : > { %v711_v58 = vpop.f32.mrb[12].mxu1 }
 0x4f7   : > { %944 = vrot.lane.b32.xlu0 %v711_v58, %s1577_s25  ;;  %v1423_v59 = vpop.f32.mrb[13].mxu1 }
 0x4f8   : > { %v714_v60 = vpop.f32.mrb[14].mxu1  ;;  %v1363_v59 = vld [vmem:[%s1866_s9] ss:$0 sm:$0xff] }
 0x4f9   : > { %v1424_v62 = vpop.f32.mrb[15].mxu1 }
 0x4fe   : > { %v824_v63 = vpop.f32.mrb[16].mxu1 }
 0x4ff   : > { %948 = vrot.lane.b32.xlu1 %v824_v63, %s1575_s23  ;;  %v1435_v1 = vpop.f32.mrb[17].mxu1 }
 0x500   : > { %v827_v2 = vpop.f32.mrb[18].mxu1 }
 0x501   : > { %v1436_v3 = vpop.f32.mrb[19].mxu1 }
 0x522   : > { %v937_v5 = vpop.f32.mrb[20].mxu1 }
 0x523   : > { %952 = vrot.lane.b32.xlu0 %v937_v5, %s1572_s20  ;;  %v1447_v6 = vpop.f32.mrb[21].mxu1 }
 0x524   : > { %v940_v7 = vpop.f32.mrb[22].mxu1 }
 0x525   : > { %v1448_v8 = vpop.f32.mrb[23].mxu1 }
 0x569   : > { %v945_v9 = vpop.permute.xlu0 %944 }
 0x56a   : > { %v955_v11 = vsel %vm496_vm2, %v597_v52, %v945_v9 }
 0x571   : > { %v949_v10 = vpop.permute.xlu1 %948 }
 0x572   : > { %v957_v12 = vsel %vm956_vm5, %v955_v11, %v949_v10 }
 0x595   : > { %v953_v13 = vpop.permute.xlu0 %952 }
 0x596   : > { %v959_v14 = vsel %vm958_vm6, %v957_v12, %v953_v13 }
 0x597   : > { %v960_v15 = vpack.c.bf16 %v959_v14, %v959_v14 }
 0x599   : > { %1458 = vmatmul.mubr.msk.bf16.vlgmr.msra.gmra.mrb[12].mxu0 %vm374_vm0, %v960_v15 }
 0x59a   : > { %1489 = vmatprep.mubr.msk.bf16.mxu0 %vm1571_vm1, %v1570_v20  ;;  %1474 = vmatpush3.bf16.msra.mxu0 %v1531_v27 }
 0x59b   : > { %1475 = vmatprep.subr.bf16.mxu0 %v1570_v20 }
 0x59e   : > { %1476 = vmatpush3.bf16.msra.mxu0 %v1532_v28 }
 0x59f   : > { %1477 = vmatprep.subr.bf16.mxu0 %v1570_v20 }
 0x5a2   : > { %1478 = vmatpush3.bf16.msra.mxu0 %v1533_v29 }
 0x5a3   : > { %1479 = vmatprep.subr.bf16.mxu0 %v1570_v20 }
 0x5a6   : > { %1480 = vmatpush3.bf16.msra.mxu0 %v1534_v30 }
 0x5a7   : > { %1481 = vmatprep.subr.bf16.mxu0 %v1570_v20 }
 0x5aa   : > { %1482 = vmatpush3.bf16.msra.mxu0 %v1535_v32 }
 0x5ab   : > { %1483 = vmatprep.subr.bf16.mxu0 %v1570_v20 }
 0x5ae   : > { %1484 = vmatpush3.bf16.msra.mxu0 %v1536_v33 }
 0x5af   : > { %1485 = vmatprep.subr.bf16.mxu0 %v1570_v20 }
 0x5b2   : > { %1486 = vmatpush3.bf16.msra.mxu0 %v1537_v34 }
 0x5b3   : > { %1487 = vmatprep.subr.bf16.mxu0 %v1570_v20 }
 0x5b6   : > { %1488 = vmatpush3.bf16.msra.mxu0 %v1538_v42 }
 0x66c   : > { %v1030_v16 = vpop.f32.mrb[12].mxu0 }
 0x66d   : > { %v1036_v17 = vadd.f32 %v1030_v16, %v1650_v0  ;;  %v1459_v18 = vpop.f32.mrb[13].mxu0  ;;  %v1529_v0 = vld [vmem:[%s1864_s7 + $0x10] sm:$0xff]  }
 0x66e   : > { %v1033_v19 = vpop.f32.mrb[14].mxu0  ;;  %1466 = vmatpush3.bf16.msra.mxu1 %v1529_v0 }
 0x66f   : > { %v1460_v21 = vpop.f32.mrb[15].mxu0  ;;  %v1038_v22 = vmul.f32 %v1036_v17, %v1036_v17  ;;  %1467 = vmatprep.subr.bf16.mxu1 %v1570_v20 }
 0x671   : > { %v1039_v23 = vsel %vm374_vm0, %v1038_v22, 0.0 }
 0x672   : > { %1040 = vadd.xlane.f32.xlu1 %v1039_v23  ;;  %1468 = vmatpush3.bf16.msra.mxu1 %v1530_v26 }
 0x6ff   : > { %v1041_v35 = vpop.xlane.xlu1 %1040 }
 0x700   : > { %v1042_v36 = vmul.f32 0.015625, %v1041_v35 }
 0x702   : > { %v1043_v37 = vadd.f32 1e-06, %v1042_v36 }
 0x704   : > { %1557 = vrsqrt.f32 %v1043_v37 }
 0x70e   : > { %v1558_v38 = vpop.eup %1557 }
 0x70f   : > { %v1045_v31 = vmul.f32 %v1558_v38, %v1036_v17 }
 0x711   : > { %v1052_v40 = vmul.f32 %v1349_v39, %v1045_v31 }
 0x713   : > { %v1053_v41 = vpack.c.bf16 %v1052_v40, %v1052_v40 }
 0x715   : > { %1470 = vmatmul.mubr.msk.bf16.vlgmr.msra.gmra.mrb[24].mxu1 %vm374_vm0, %v1053_v41 }
 0x7e8   : > { %v1123_v20 = vpop.f32.mrb[24].mxu1 }
 0x7e9   : > { %v1129_v43 = vmax.f32 %v1123_v20, 0.0  ;;  %v1471_v44 = vpop.f32.mrb[25].mxu1 }
 0x7ea   : > { %v1126_v45 = vpop.f32.mrb[26].mxu1 }
 0x7eb   : > { %v1130_v46 = vpack.c.bf16 %v1129_v43, %v1129_v43  ;;  %v1472_v47 = vpop.f32.mrb[27].mxu1 }
 0x7ed   : > { %1490 = vmatmul.mubr.bf16.vlgmr.msra.gmra.mrb[16].mxu0 %v1130_v46 }
 0x8c0   : > { %v1229_v48 = vpop.f32.mrb[16].mxu0 }
 0x8c1   : > { %v1235_v49 = vadd.f32 %v1229_v48, %v1036_v17  ;;  %v1491_v50 = vpop.f32.mrb[17].mxu0 }
 0x8c2   : > { %v1232_v51 = vpop.f32.mrb[18].mxu0 }
 0x8c3   : > { %v1492_v52 = vpop.f32.mrb[19].mxu0  ;;  %v1237_v53 = vmul.f32 %v1235_v49, %v1235_v49 }
 0x8c5   : > { %v1238_v54 = vsel %vm374_vm0, %v1237_v53, 0.0 }
 0x8c6   : > { %1239 = vadd.xlane.f32.xlu0 %v1238_v54 }
 0x953   : > { %v1240_v55 = vpop.xlane.xlu0 %1239 }
 0x954   : > { %v1241_v56 = vmul.f32 0.015625, %v1240_v55 }
 0x956   : > { %v1242_v57 = vadd.f32 1e-06, %v1241_v56 }
 0x958   : > { %1559 = vrsqrt.f32 %v1242_v57 }
 0x962   : > { %v1560_v58 = vpop.eup %1559 }
 0x963   : > { %v1244_v60 = vmul.f32 %v1560_v58, %v1235_v49 }
 0x965   : > { %v1251_v61 = vmul.f32 %v1363_v59, %v1244_v60 }
 0x967   : > { %1252 = vst.msk [vmem:[%s368_s28] sm:$0xff] %vm374_vm0, %v1251_v61 }
 0x968 PF: > { %s20_s13 = sadd.s32 1, %s1567_s13  }
 0x969   : > { %p17_p4 = scmp.ge.s32.totalorder %s20_s13, 4  }
 0x96b   :  { %19 = sbr.rel (!%p17_p4) target bundleno = 1 (0x1), region = 96 }

// kernel: t5_forward.4
= control target key start
LH: loop header
LB: loop body
LE: loop exit
PB: predicated region body
PF: predicated region fallthrough
CT: control target
= control target key end

     0   :  { %s2767_s21 = smov 0   ;;  %s3143_s0 = inlined_call_operand.vmem [shape: f32[2,8,64], index: 0, kind: input, shape index: {}]   ;;  %s3144_s1 = inlined_call_operand.vmem [shape: f32[2,8,64], index: 1, kind: input, shape index: {}]   ;;  %s3145_s2 = inlined_call_operand.vmem [shape: f32[2,1,8], index: 2, kind: input, shape index: {}]   ;;  %s3146_s3 = inlined_call_operand.vmem [shape: f32[2,1,8], index: 3, kind: input, shape index: {}]   ;;  %s3147_s4 = inlined_call_operand.vmem [shape: f32[4,8,8], index: 4, kind: input, shape index: {}]   ;;  %s3148_s5 = inlined_call_operand.vmem [shape: f32[1,64], index: 5, kind: input, shape index: {}]   ;;  %s3149_s6 = inlined_call_operand.vmem [shape: bf16[64,192], index: 6, kind: input, shape index: {}]   ;;  %s3150_s7 = inlined_call_operand.vmem [shape: bf16[64,64], index: 7, kind: input, shape index: {}]   ;;  %s3151_s8 = inlined_call_operand.vmem [shape: f32[1,64], index: 8, kind: input, shape index: {}]   ;;  %s3152_s9 = inlined_call_operand.vmem [shape: bf16[64,64], index: 9, kind: input, shape index: {}]   ;;  %s3153_s10 = inlined_call_operand.vmem [shape: bf16[64,128], index: 10, kind: input, shape index: {}]   ;;  %s3154_s11 = inlined_call_operand.vmem [shape: bf16[64,64], index: 11, kind: input, shape index: {}]   ;;  %s3155_s12 = inlined_call_operand.vmem [shape: f32[1,64], index: 12, kind: input, shape index: {}]   ;;  %s3156_s13 = inlined_call_operand.vmem [shape: bf16[64,128], index: 13, kind: input, shape index: {}]   ;;  %s3157_s14 = inlined_call_operand.vmem [shape: bf16[128,64], index: 14, kind: input, shape index: {}]   ;;  %s3158_s15 = inlined_call_operand.vmem [shape: f32[1,64], index: 15, kind: input, shape index: {}]   ;;  %s3159_s16 = inlined_call_operand.vmem [shape: f32[2,8,64], index: 16, kind: output, shape index: {}]  }
   0x1   :  { %3173 = sst [smem:[#allocation2_spill]] %s3143_s0 }
   0x2 LB: > { %s2247_s22 = sadd.s32 4294967295, %s2670_s21   ;;  %p2251_p0 = scmp.ge.s32.totalorder %s2670_s21, 1  ;;  %s2670_s21 = sphi %s2767_s21, %s26_s21  }
   0x3   : > { %p486_p1 = scmp.lt.s32.totalorder %s2670_s21, 3 }
   0x5   : > { %p487_p2 = pnand %p2251_p0, %p486_p1 }
   0x6   : > { %p544_p3 = scmp.lt.s32.totalorder (!%p487_p2), %s2247_s22, 1  ;;  %s3174_s26 = sld [smem:[#allocation2_spill]] (!%p487_p2)  ;;  %vm575_vm0 = vcmask (!%p487_p2), 523264   ;;  %v2584_v3 = vld [vmem:[%s3149_s6 + $0x4] ss:$8 sps:$4 sm:$0xff] (!%p487_p2)   ;;  %v2672_v8 = vmov (!%p487_p2), 0   ;;  %v567_v39 = vlaneseq (!%p487_p2) }
   0x7   : > { %490 = sbr.rel (%p487_p2) target bundleno = 4003 (0xfa3), region = 84  ;;  %v2586_v4 = vld [vmem:[%s3149_s6] ss:$8 sps:$4 sm:$0xff] (!%p487_p2)   ;;  %v2587_v5 = vld [vmem:[%s3149_s6 + $0x14] ss:$8 sps:$4 sm:$0xff] (!%p487_p2)   ;;  %643 = vmatprep.subr.bf16.mxu1 (!%p487_p2), %v2584_v3  ;;  %675 = vmatprep.mubr.bf16.mxu1 (!%p487_p2), %v2672_v8  ;;  %v2673_v20 = vmov (!%p487_p2), 0.0  }
   0x8   : > { %644 = vmatpush1.bf16.msra.mxu1 (!%p487_p2), %v2586_v4  ;;  %v2589_v6 = vld [vmem:[%s3149_s6 + $0x10] ss:$8 sps:$4 sm:$0xff] (!%p487_p2)   ;;  %v2590_v7 = vld [vmem:[%s3149_s6 + $0x24] ss:$8 sps:$4 sm:$0xff] (!%p487_p2)   ;;  %v2592_v9 = vld [vmem:[%s3149_s6 + $0x20] ss:$8 sps:$4 sm:$0xff] (!%p487_p2)   ;;  %2402 = vmatprep.subr.bf16.mxu0 (!%p487_p2), %v2673_v20 }
   0x9   : > { %645 = vmatprep.subr.bf16.mxu1 (!%p487_p2), %v2587_v5  ;;  %v2593_v10 = vld [vmem:[%s3149_s6 + $0x34] ss:$8 sps:$4 sm:$0xff] (!%p487_p2)   ;;  %v2595_v11 = vld [vmem:[%s3149_s6 + $0x30] ss:$8 sps:$4 sm:$0xff] (!%p487_p2)   ;;  %v2255_v16 = vld [vmem:[%s3148_s5] ss:$0 sm:$0xff] (!%p487_p2) }
   0xa   : > { %vm2674_vm1 = vmmov (!%p487_p2), 0   ;;  %s3161_s19 = smov (!%p487_p2), 48   ;;  %s3160_s20 = smov (!%p487_p2), 64   ;;  %vm698_vm2 = vcmask (!%p487_p2), 130048   ;;  %vm761_vm3 = vcmask (!%p487_p2), 1043456   ;;  %v568_v40 = vshrl.u32 (!%p487_p2), %v567_v39, 7 }
   0xb   : > { %2404 = vmatprep.mubr.msk.bf16.mxu0 (!%p487_p2), %vm2674_vm1, %v2673_v20  ;;  %s3171_s24 = smov (!%p487_p2), 112   ;;  %s3163_s25 = smov (!%p487_p2), 32   ;;  %v570_v41 = vand.u32 (!%p487_p2), 127, %v567_v39  ;;  %v686_v43 = vld [vmem:[%s3147_s4] sm:$0xff] (!%p487_p2)  ;;  %v2268_v44 = vld [vmem:[%s3147_s4 + $0x8] sm:$0xff] (!%p487_p2)  ;;  %v2271_v50 = vld [vmem:[%s3147_s4 + $0x10] sm:$0xff] (!%p487_p2) }
   0xc   : > { %646 = vmatpush1.bf16.msra.mxu1 (!%p487_p2), %v2589_v6  ;;  %s3167_s28 = smov (!%p487_p2), 80   ;;  %vm745_vm5 = vcmask (!%p487_p2), 64512   ;;  %s3175_s0 = smov (!%p487_p2), 16   ;;  %vm1161_vm6 = vcmask (!%p487_p2), 261120   ;;  %vm1163_vm7 = vcmask (!%p487_p2), 392192  }
   0xd   : > { %647 = vmatprep.subr.bf16.mxu1 (!%p487_p2), %v2590_v7  ;;  %vm571_vm4 = vcmp.gt.s32.totalorder (!%p487_p2), %v570_v41, %v568_v40  ;;  %s3178_s18 = smov (!%p487_p2), 112  }
   0xe   : > { %s3183_s22 = smov (!%p544_p3, %s2247_s22), 1  ;;  %v572_v42 = vsel %vm571_vm4, -1e+09, %v2673_v20 }
   0xf   : > { %s2778_s23 = sshll.u32 %s3183_s22, 3  ;;  %v687_v45 = vadd.f32 %v686_v43, %v572_v42  ;;  %v807_v46 = vadd.f32 %v2268_v44, %v572_v42  ;;  %v922_v57 = vadd.f32 %v2271_v50, %v572_v42 }
  0x10   : > { %s547_s27 = scalar_lea.vmem %s3174_s26, %s2778_s23  ;;  %648 = vmatpush1.bf16.msra.mxu1 %v2592_v9  ;;  %s3169_s26 = smov 96  }
  0x11   : > { %v2784_v0 = vld [vmem:[%s547_s27] sm:$0xff]  ;;  %649 = vmatprep.subr.bf16.mxu1 %v2593_v10  ;;  %s3165_s27 = smov 16   ;;  %s551_s29 = scalar_lea.vmem %s3144_s1, %s2778_s23 }
  0x12   : > { %v574_v1 = vmul.f32 %v2784_v0, %v2784_v0 }
  0x14   : > { %v576_v2 = vsel %vm575_vm0, %v574_v1, 0.0  ;;  %650 = vmatpush1.bf16.msra.mxu1 %v2595_v11 }
  0x15   : > { %577 = vadd.xlane.f32.xlu0 %v576_v2  ;;  %2390 = vmatprep.subr.bf16.mxu1 %v2673_v20  ;;  %v2274_v2 = vld [vmem:[%s3147_s4 + $0x18] sm:$0xff] }
  0x16   : > { %v1036_v6 = vadd.f32 %v2274_v2, %v572_v42  ;;  %v2597_v2 = vld [vmem:[%s3150_s7 + $0x8] sm:$0xff]  }
  0xa2   : > { %v578_v12 = vpop.xlane.xlu0 %577 }
  0xa3   : > { %v580_v13 = vmul.f32 0.015625, %v578_v12 }
  0xa5   : > { %v581_v14 = vadd.f32 1e-06, %v580_v13 }
  0xa7   : > { %2624 = vrsqrt.f32 %v581_v14 }
  0xb1   : > { %v2625_v15 = vpop.eup %2624 }
  0xb2   : > { %v583_v17 = vmul.f32 %v2625_v15, %v2784_v0 }
  0xb4   : > { %v590_v18 = vmul.f32 %v2255_v16, %v583_v17 }
  0xb6   : > { %v591_v19 = vpack.c.bf16 %v590_v18, %v590_v18 }
  0xb8   : > { %2264 = vmatmul.mubr.msk.bf16.vlgmr.msra.gmra.mrb[0].mxu1 %vm575_vm0, %v591_v19 }
  0xb9   : > { %2392 = vmatprep.mubr.msk.bf16.mxu1 %vm2674_vm1, %v2673_v20 }
 0x18b   : > { %v677_v21 = vpop.f32.mrb[0].mxu1 }
 0x18c   : > { %v684_v22 = vpack.c.bf16 %v677_v21, %v677_v21  ;;  %v679_v23 = vpop.f32.mrb[1].mxu1 }
 0x18d   : > { %v681_v24 = vpop.f32.mrb[2].mxu1  ;;  %v2835_v31 = vpack.c.bf16 %v679_v23, %v679_v23 }
 0x18e   : > { %811 = vrot.lane.b32.xlu1 %v684_v22, %s3161_s19  ;;  %696 = vrot.lane.b32.xlu0 %v684_v22, %s3160_s20  ;;  %v682_v25 = vpop.f32.mrb[3].mxu1  ;;  %s554_s19 = scalar_lea.vmem %s3145_s2, %s3183_s22  ;;  %s3179_s20 = smov 96  }
 0x18f   : > { %v763_v34 = vsel %vm761_vm3, %v2835_v31, 0  ;;  %v2265_v47 = vld [vmem:[%s554_s19] ss:$0 sm:$0xff]  ;;  %s3176_s19 = smov 32  }
 0x190   : > { %v694_v48 = vadd.f32 %v2265_v47, %v687_v45  ;;  %v808_v49 = vadd.f32 %v2265_v47, %v807_v46  ;;  %v923_v1 = vadd.f32 %v2265_v47, %v922_v57  ;;  %v1037_v10 = vadd.f32 %v2265_v47, %v1036_v6  ;;  %v2598_v6 = vld [vmem:[%s3150_s7 + $0x10] sm:$0xff]  }
 0x192   : > { %809 = vrot.lane.b32.xlu1 %v684_v22, %s3171_s24 }
 0x196   : > { %926 = vrot.lane.b32.xlu1 %v684_v22, %s3163_s25  ;;  %s3180_s25 = smov 80  }
 0x19a   : > { %924 = vrot.lane.b32.xlu1 %v684_v22, %s3169_s26 }
 0x19e   : > { %1040 = vrot.lane.b32.xlu1 %v684_v22, %s3165_s27  ;;  %s3177_s27 = smov 48  }
 0x1a2   : > { %1038 = vrot.lane.b32.xlu1 %v684_v22, %s3167_s28 }
 0x200   : > { %v812_v26 = vpop.permute.xlu1 %811  ;;  %v697_v27 = vpop.permute.xlu0 %696 }
 0x201   : > { %v703_v28 = vsel %vm698_vm2, %v697_v27, 0  ;;  %v817_v29 = vsel %vm698_vm2, %v812_v26, 0 }
 0x202   : > { %2391 = vmatpush3.bf16.xpose.msra.mxu1 %v703_v28  ;;  %2403 = vmatpush3.bf16.xpose.msra.mxu0 %v817_v29 }
 0x203   : > { %2396 = vmatprep.subr.bf16.mxu1 %v2673_v20  ;;  %2414 = vmatprep.subr.bf16.mxu0 %v2673_v20 }
 0x204   : > { %v810_v30 = vpop.permute.xlu1 %809 }
 0x208   : > { %v927_v32 = vpop.permute.xlu1 %926 }
 0x209   : > { %v932_v33 = vsel %vm698_vm2, %v927_v32, 0  ;;  %2393 = vmatmul.mubr.msk.bf16.vlgmr.msra.gmra.mrb[4].mxu1 %vm698_vm2, %v684_v22  ;;  %2405 = vmatmul.mubr.msk.bf16.vlgmr.msra.gmra.mrb[0].mxu0 %vm698_vm2, %v810_v30 }
 0x20a   : > { %2397 = vmatpush3.bf16.msra.mxu1 %v763_v34  ;;  %2415 = vmatpush3.bf16.xpose.msra.mxu0 %v932_v33 }
 0x20b   : > { %2416 = vmatprep.mubr.msk.bf16.mxu0 %vm2674_vm1, %v2673_v20  ;;  %2426 = vmatprep.subr.bf16.mxu0 %v2673_v20 }
 0x20c   : > { %v925_v35 = vpop.permute.xlu1 %924  ;;  %2398 = vmatprep.mubr.msk.bf16.mxu1 %vm2674_vm1, %v2673_v20  ;;  %2408 = vmatprep.subr.bf16.mxu1 %v2673_v20 }
 0x210   : > { %v1041_v36 = vpop.permute.xlu1 %1040 }
 0x211   : > { %v1046_v37 = vsel %vm698_vm2, %v1041_v36, 0  ;;  %2417 = vmatmul.mubr.msk.bf16.vlgmr.msra.gmra.mrb[4].mxu0 %vm698_vm2, %v925_v35 }
 0x212   : > { %2427 = vmatpush3.bf16.xpose.msra.mxu0 %v1046_v37  ;;  %2428 = vmatprep.mubr.msk.bf16.mxu0 %vm2674_vm1, %v2673_v20 }
 0x213   : > { %2438 = vmatprep.subr.bf16.mxu0 %v2673_v20 }
 0x214   : > { %v1039_v38 = vpop.permute.xlu1 %1038 }
 0x219   : > { %2429 = vmatmul.mubr.msk.bf16.vlgmr.msra.gmra.mrb[8].mxu0 %vm698_vm2, %v1039_v38 }
 0x21a   : > { %2446 = vmatprep.mubr.msk.bf16.mxu0 %vm2674_vm1, %v2673_v20 }
 0x2dc   : > { %v739_v51 = vpop.f32.mrb[4].mxu1  ;;  %v853_v52 = vpop.f32.mrb[0].mxu0 }
 0x2dd   : > { %v740_v53 = vadd.f32 %v739_v51, %v694_v48  ;;  %v854_v54 = vadd.f32 %v853_v52, %v808_v49  ;;  %v2394_v55 = vpop.f32.mrb[5].mxu1  ;;  %v2406_v56 = vpop.f32.mrb[1].mxu0 }
 0x2de   : > { %v742_v58 = vpop.f32.mrb[6].mxu1  ;;  %v856_v59 = vpop.f32.mrb[2].mxu0 }
 0x2df   : > { %v2395_v60 = vpop.f32.mrb[7].mxu1  ;;  %v2407_v61 = vpop.f32.mrb[3].mxu0  ;;  %v859_v62 = vsel %vm745_vm5, %v854_v54, -inf  ;;  %v746_v63 = vsel %vm745_vm5, %v740_v53, -inf }
 0x2e0   : > { %860 = vmax.xlane.f32.xlu0 %v859_v62  ;;  %747 = vmax.xlane.f32.xlu1 %v746_v63 }
 0x2e4   : > { %v968_v3 = vpop.f32.mrb[4].mxu0 }
 0x2e5   : > { %v969_v4 = vadd.f32 %v968_v3, %v923_v1  ;;  %v2418_v5 = vpop.f32.mrb[5].mxu0  ;;  %v2596_v1 = vld [vmem:[%s3150_s7] sm:$0xff]  }
 0x2e6   : > { %v971_v7 = vpop.f32.mrb[6].mxu0  ;;  %2439 = vmatpush3.bf16.msra.mxu0 %v2596_v1 }
 0x2e7   : > { %v2419_v8 = vpop.f32.mrb[7].mxu0  ;;  %v974_v9 = vsel %vm745_vm5, %v969_v4, -inf  ;;  %2440 = vmatprep.subr.bf16.mxu0 %v2673_v20 }
 0x2e8   : > { %975 = vmax.xlane.f32.xlu0 %v974_v9 }
 0x2ea   : > { %2441 = vmatpush3.bf16.msra.mxu0 %v2597_v2 }
 0x2eb   : > { %2442 = vmatprep.subr.bf16.mxu0 %v2673_v20 }
 0x2ec   : > { %v1082_v11 = vpop.f32.mrb[8].mxu0 }
 0x2ed   : > { %v1083_v12 = vadd.f32 %v1082_v11, %v1037_v10  ;;  %v2430_v13 = vpop.f32.mrb[9].mxu0 }
 0x2ee   : > { %v1085_v14 = vpop.f32.mrb[10].mxu0  ;;  %2443 = vmatpush3.bf16.msra.mxu0 %v2598_v6 }
 0x2ef   : > { %v2431_v15 = vpop.f32.mrb[11].mxu0  ;;  %v1088_v16 = vsel %vm745_vm5, %v1083_v12, -inf  ;;  %2444 = vmatprep.subr.bf16.mxu0 %v2673_v20 }
 0x2f0   : > { %1089 = vmax.xlane.f32.xlu1 %v1088_v16 }
 0x36d   : > { %v861_v17 = vpop.xlane.xlu0 %860  ;;  %v748_v18 = vpop.xlane.xlu1 %747 }
 0x36e   : > { %v862_v19 = vsub.f32 %v854_v54, %v861_v17  ;;  %v749_v21 = vsub.f32 %v740_v53, %v748_v18 }
 0x370   : > { %v863_v22 = vmul.f32 1.442695, %v862_v19  ;;  %v750_v23 = vmul.f32 1.442695, %v749_v21 }
 0x372   : > { %2626 = vpow2.f32 %v863_v22 }
 0x373   : > { %2628 = vpow2.f32 %v750_v23 }
 0x375   : > { %v976_v24 = vpop.xlane.xlu0 %975 }
 0x376   : > { %v977_v25 = vsub.f32 %v969_v4, %v976_v24 }
 0x378   : > { %v978_v26 = vmul.f32 1.442695, %v977_v25  ;;  %v2600_v25 = vld [vmem:[%s3153_s10] sm:$0xff]  }
 0x37a   : > { %2630 = vpow2.f32 %v978_v26  ;;  %v2601_v26 = vld [vmem:[%s3153_s10 + $0x8] sm:$0xff]  }
 0x37c   : > { %v2627_v27 = vpop.eup %2626 }
 0x37d   : > { %v2629_v28 = vpop.eup %2628  ;;  %v865_v29 = vsel %vm745_vm5, %v2627_v27, 0.0  ;;  %v1090_v34 = vpop.xlane.xlu1 %1089 }
 0x37e   : > { %866 = vadd.xlane.f32.xlu1 %v865_v29  ;;  %v752_v30 = vsel %vm745_vm5, %v2629_v28, 0.0  ;;  %v1091_v35 = vsub.f32 %v1083_v12, %v1090_v34  ;;  %v2599_v12 = vld [vmem:[%s3150_s7 + $0x18] sm:$0xff]  }
 0x37f   : > { %753 = vadd.xlane.f32.xlu0 %v752_v30  ;;  %2445 = vmatpush3.bf16.msra.mxu0 %v2599_v12 }
 0x380   : > { %v1092_v36 = vmul.f32 1.442695, %v1091_v35  ;;  %2462 = vmatprep.subr.bf16.mxu0 %v2673_v20  ;;  %v2602_v35 = vld [vmem:[%s3153_s10 + $0x10] sm:$0xff]  }
 0x382   : > { %2632 = vpow2.f32 %v1092_v36  ;;  %v564_v36 = vld [vmem:[%s551_s29] sm:$0xff] }
 0x384   : > { %v2631_v32 = vpop.eup %2630 }
 0x385   : > { %v980_v33 = vsel %vm745_vm5, %v2631_v32, 0.0 }
 0x386   : > { %981 = vadd.xlane.f32.xlu0 %v980_v33 }
 0x38c   : > { %v2633_v37 = vpop.eup %2632 }
 0x38d   : > { %v1094_v38 = vsel %vm745_vm5, %v2633_v37, 0.0 }
 0x38f   : > { %986 = vrot.lane.b32.xlu1 %v2835_v31, %s3169_s26 }
 0x39c   : > { %872 = vrot.lane.b32.xlu0 %v2835_v31, %s3171_s24 }
 0x3b3   : > { %1095 = vadd.xlane.f32.xlu1 %v1094_v38  ;;  %v1334_v38 = vpack.c.bf16 %v564_v36, %v564_v36 }
 0x3c4   : > { %1100 = vrot.lane.b32.xlu1 %v2835_v31, %s3167_s28  ;;  %s557_s28 = scalar_lea.vmem %s3146_s3, %s3183_s22  ;;  %s3181_s22 = smov 64  }
 0x3c5   : > { %v2293_v6 = vld [vmem:[%s557_s28] ss:$0 sm:$0xff] }
 0x40b   : > { %v867_v40 = vpop.xlane.xlu1 %866 }
 0x40c   : > { %v754_v39 = vpop.xlane.xlu0 %753 }
 0x40d   : > { %2634 = vrcp.f32 %v754_v39  ;;  %v2605_v39 = vld [vmem:[%s3152_s9 + $0x8] sm:$0xff]  }
 0x40e   : > { %2636 = vrcp.f32 %v867_v40  ;;  %v2606_v40 = vld [vmem:[%s3152_s9 + $0x10] sm:$0xff]  }
 0x40f   : > { %v987_v48 = vpop.permute.xlu1 %986 }
 0x410   : > { %v992_v51 = vsel %vm761_vm3, %v987_v48, 0 }
 0x413   : > { %v982_v41 = vpop.xlane.xlu0 %981 }
 0x414   : > { %2638 = vrcp.f32 %v982_v41  ;;  %v2607_v41 = vld [vmem:[%s3152_s9 + $0x18] sm:$0xff]  }
 0x417   : > { %v2635_v42 = vpop.eup %2634  ;;  %v873_v44 = vpop.permute.xlu0 %872 }
 0x418   : > { %v756_v43 = vmul.f32 %v2635_v42, %v2629_v28  ;;  %v2637_v46 = vpop.eup %2636  ;;  %v878_v47 = vsel %vm761_vm3, %v873_v44, 0 }
 0x419   : > { %v869_v31 = vmul.f32 %v2637_v46, %v2627_v27  ;;  %v2282_v46 = vld [vmem:[%s3151_s8] ss:$0 sm:$0xff] }
 0x41a   : > { %v757_v45 = vpack.c.bf16 %v756_v43, %v756_v43 }
 0x41b   : > { %v870_v49 = vpack.c.bf16 %v869_v31, %v869_v31 }
 0x41c   : > { %2399 = vmatmul.mubr.msk.bf16.vlgmr.msra.gmra.mrb[8].mxu1 %vm745_vm5, %v757_v45 }
 0x41d   : > { %2409 = vmatpush3.bf16.msra.mxu1 %v878_v47  ;;  %2410 = vmatprep.mubr.msk.bf16.mxu1 %vm2674_vm1, %v2673_v20 }
 0x41e   : > { %2420 = vmatprep.subr.bf16.mxu1 %v2673_v20  ;;  %v2639_v50 = vpop.eup %2638 }
 0x41f   : > { %v984_v52 = vmul.f32 %v2639_v50, %v2631_v32 }
 0x421   : > { %v985_v53 = vpack.c.bf16 %v984_v52, %v984_v52 }
 0x424   : > { %2411 = vmatmul.mubr.msk.bf16.vlgmr.msra.gmra.mrb[12].mxu1 %vm745_vm5, %v870_v49 }
 0x425   : > { %2421 = vmatpush3.bf16.msra.mxu1 %v992_v51  ;;  %2422 = vmatprep.mubr.msk.bf16.mxu1 %vm2674_vm1, %v2673_v20 }
 0x426   : > { %2432 = vmatprep.subr.bf16.mxu1 %v2673_v20 }
 0x42c   : > { %2423 = vmatmul.mubr.msk.bf16.vlgmr.msra.gmra.mrb[16].mxu1 %vm745_vm5, %v985_v53 }
 0x42d   : > { %2434 = vmatprep.mubr.msk.bf16.mxu1 %vm2674_vm1, %v2673_v20 }
 0x440   : > { %v1096_v54 = vpop.xlane.xlu1 %1095 }
 0x441   : > { %2640 = vrcp.f32 %v1096_v54 }
 0x444   : > { %v1101_v55 = vpop.permute.xlu1 %1100 }
 0x445   : > { %v1106_v56 = vsel %vm761_vm3, %v1101_v55, 0 }
 0x446   : > { %2433 = vmatpush3.bf16.msra.mxu1 %v1106_v56 }
 0x447   : > { %2450 = vmatprep.subr.bf16.mxu1 %v2673_v20 }
 0x44b   : > { %v2641_v57 = vpop.eup %2640 }
 0x44c   : > { %v1098_v58 = vmul.f32 %v2641_v57, %v2633_v37  ;;  %v2604_v37 = vld [vmem:[%s3153_s10 + $0x18] sm:$0xff]  }
 0x44e   : > { %v1099_v59 = vpack.c.bf16 %v1098_v58, %v1098_v58 }
 0x450   : > { %2435 = vmatmul.mubr.msk.bf16.vlgmr.msra.gmra.mrb[20].mxu1 %vm745_vm5, %v1099_v59 }
 0x451   : > { %2458 = vmatprep.mubr.msk.bf16.mxu1 %vm2674_vm1, %v2673_v20 }
 0x4ef   : > { %v799_v60 = vpop.f32.mrb[8].mxu1 }
 0x4f0   : > { %v2400_v61 = vpop.f32.mrb[9].mxu1 }
 0x4f1   : > { %v802_v62 = vpop.f32.mrb[10].mxu1 }
 0x4f2   : > { %v2401_v63 = vpop.f32.mrb[11].mxu1 }
 0x4f7   : > { %v914_v3 = vpop.f32.mrb[12].mxu1 }
 0x4f8   : > { %1149 = vrot.lane.b32.xlu0 %v914_v3, %s3175_s0  ;;  %v2412_v4 = vpop.f32.mrb[13].mxu1 }
 0x4f9   : > { %v917_v5 = vpop.f32.mrb[14].mxu1 }
 0x4fa   : > { %v2413_v7 = vpop.f32.mrb[15].mxu1 }
 0x4ff   : > { %v1028_v8 = vpop.f32.mrb[16].mxu1 }
 0x500   : > { %1153 = vrot.lane.b32.xlu1 %v1028_v8, %s3176_s19  ;;  %v2424_v9 = vpop.f32.mrb[17].mxu1 }
 0x501   : > { %v1031_v10 = vpop.f32.mrb[18].mxu1 }
 0x502   : > { %v2425_v11 = vpop.f32.mrb[19].mxu1 }
 0x523   : > { %v1142_v13 = vpop.f32.mrb[20].mxu1 }
 0x524   : > { %1157 = vrot.lane.b32.xlu0 %v1142_v13, %s3177_s27  ;;  %v2436_v14 = vpop.f32.mrb[21].mxu1 }
 0x525   : > { %v1145_v15 = vpop.f32.mrb[22].mxu1 }
 0x526   : > { %v2437_v16 = vpop.f32.mrb[23].mxu1 }
 0x56a   : > { %v1150_v17 = vpop.permute.xlu0 %1149 }
 0x56b   : > { %v1160_v19 = vsel %vm698_vm2, %v799_v60, %v1150_v17 }
 0x572   : > { %v1154_v18 = vpop.permute.xlu1 %1153 }
 0x573   : > { %v1162_v21 = vsel %vm1161_vm6, %v1160_v19, %v1154_v18 }
 0x596   : > { %v1158_v22 = vpop.permute.xlu0 %1157 }
 0x597   : > { %v1164_v23 = vsel %vm1163_vm7, %v1162_v21, %v1158_v22 }
 0x598   : > { %v1165_v24 = vpack.c.bf16 %v1164_v23, %v1164_v23 }
 0x59a   : > { %2447 = vmatmul.mubr.msk.bf16.vlgmr.msra.gmra.mrb[12].mxu0 %vm575_vm0, %v1165_v24 }
 0x59b   : > { %2470 = vmatprep.mubr.msk.bf16.mxu0 %vm2674_vm1, %v2673_v20  ;;  %2463 = vmatpush3.bf16.msra.mxu0 %v2600_v25 }
 0x59c   : > { %2464 = vmatprep.subr.bf16.mxu0 %v2673_v20 }
 0x59f   : > { %2465 = vmatpush3.bf16.msra.mxu0 %v2601_v26 }
 0x5a0   : > { %2466 = vmatprep.subr.bf16.mxu0 %v2673_v20 }
 0x5a3   : > { %2467 = vmatpush3.bf16.msra.mxu0 %v2602_v35 }
 0x5a4   : > { %2468 = vmatprep.subr.bf16.mxu0 %v2673_v20 }
 0x5a7   : > { %2469 = vmatpush3.bf16.msra.mxu0 %v2604_v37 }
 0x5a8   : > { %2486 = vmatprep.subr.bf16.mxu0 %v2673_v20 }
 0x5aa   : > { %2471 = vmatmul.mubr.msk.bf16.vlgmr.msra.gmra.mrb[16].mxu0 %vm575_vm0, %v1334_v38 }
 0x5ab   : > { %2488 = vmatprep.mubr.msk.bf16.mxu0 %vm2674_vm1, %v2673_v20 }
 0x66d   : > { %v1235_v27 = vpop.f32.mrb[12].mxu0 }
 0x66e   : > { %v2939_v28 = vadd.f32 %v1235_v27, %v2784_v0  ;;  %v2448_v29 = vpop.f32.mrb[13].mxu0  ;;  %v2603_v0 = vld [vmem:[%s3152_s9] sm:$0xff]  }
 0x66f   : > { %v1238_v30 = vpop.f32.mrb[14].mxu0  ;;  %2451 = vmatpush3.bf16.msra.mxu1 %v2603_v0 }
 0x670   : > { %v2449_v32 = vpop.f32.mrb[15].mxu0  ;;  %v1243_v33 = vmul.f32 %v2939_v28, %v2939_v28  ;;  %2452 = vmatprep.subr.bf16.mxu1 %v2673_v20 }
 0x672   : > { %v1244_v34 = vsel %vm575_vm0, %v1243_v33, 0.0 }
 0x673   : > { %1245 = vadd.xlane.f32.xlu1 %v1244_v34  ;;  %2453 = vmatpush3.bf16.msra.mxu1 %v2605_v39 }
 0x674   : > { %2454 = vmatprep.subr.bf16.mxu1 %v2673_v20 }
 0x677   : > { %2455 = vmatpush3.bf16.msra.mxu1 %v2606_v40 }
 0x678   : > { %2456 = vmatprep.subr.bf16.mxu1 %v2673_v20 }
 0x67b   : > { %2457 = vmatpush3.bf16.msra.mxu1 %v2607_v41 }
 0x67c   : > { %2474 = vmatprep.subr.bf16.mxu1 %v2673_v20 }
 0x67d   : > { %v1404_v49 = vpop.f32.mrb[16].mxu0 }
 0x67e   : > { %v2982_v50 = vpack.c.bf16 %v1404_v49, %v1404_v49  ;;  %v2472_v51 = vpop.f32.mrb[17].mxu0 }
 0x67f   : > { %v1407_v52 = vpop.f32.mrb[18].mxu0 }
 0x680   : > { %1528 = vrot.lane.b32.xlu0 %v2982_v50, %s3178_s18  ;;  %v2473_v53 = vpop.f32.mrb[19].mxu0  ;;  %v1422_v54 = vsel %vm698_vm2, %v2982_v50, 0 }
 0x684   : > { %1638 = vrot.lane.b32.xlu0 %v2982_v50, %s3179_s20 }
 0x6f2   : > { %v1529_v55 = vpop.permute.xlu0 %1528 }
 0x6f3   : > { %v1534_v56 = vsel %vm698_vm2, %v1529_v55, 0 }
 0x6f4   : > { %2487 = vmatpush3.bf16.xpose.msra.mxu0 %v1534_v56 }
 0x6f5   : > { %2498 = vmatprep.subr.bf16.mxu0 %v2673_v20 }
 0x6f6   : > { %v1639_v62 = vpop.permute.xlu0 %1638 }
 0x6f7   : > { %v1644_v1 = vsel %vm698_vm2, %v1639_v62, 0 }
 0x700   : > { %v1246_v42 = vpop.xlane.xlu1 %1245 }
 0x701   : > { %v1247_v43 = vmul.f32 0.015625, %v1246_v42 }
 0x703   : > { %v1248_v44 = vadd.f32 1e-06, %v1247_v43 }
 0x705   : > { %2642 = vrsqrt.f32 %v1248_v44 }
 0x70f   : > { %v2643_v45 = vpop.eup %2642 }
 0x710   : > { %v1250_v47 = vmul.f32 %v2643_v45, %v2939_v28 }
 0x712   : > { %v1257_v31 = vmul.f32 %v2282_v46, %v1250_v47 }
 0x714   : > { %v1258_v48 = vpack.c.bf16 %v1257_v31, %v1257_v31 }
 0x716   : > { %2459 = vmatmul.mubr.msk.bf16.vlgmr.msra.gmra.mrb[24].mxu1 %vm575_vm0, %v1258_v48 }
 0x717   : > { %2476 = vmatprep.mubr.msk.bf16.mxu1 %vm2674_vm1, %v2673_v20  ;;  %2475 = vmatpush3.bf16.xpose.msra.mxu1 %v1422_v54 }
 0x718   : > { %2480 = vmatprep.subr.bf16.mxu1 %v2673_v20 }
 0x7e9   : > { %v1328_v57 = vpop.f32.mrb[24].mxu1 }
 0x7ea   : > { %v1410_v58 = vpack.c.bf16 %v1328_v57, %v1328_v57  ;;  %v2460_v59 = vpop.f32.mrb[25].mxu1 }
 0x7eb   : > { %v1331_v60 = vpop.f32.mrb[26].mxu1 }
 0x7ec   : > { %1526 = vrot.lane.b32.xlu0 %v1410_v58, %s3178_s18  ;;  %v2461_v61 = vpop.f32.mrb[27].mxu1  ;;  %2477 = vmatmul.mubr.msk.bf16.vlgmr.msra.gmra.mrb[28].mxu1 %vm698_vm2, %v1410_v58 }
 0x7ed   : > { %2482 = vmatprep.mubr.msk.bf16.mxu1 %vm2674_vm1, %v2673_v20 }
 0x7f0   : > { %1636 = vrot.lane.b32.xlu0 %v1410_v58, %s3179_s20 }
 0x7f4   : > { %1748 = vrot.lane.b32.xlu0 %v2982_v50, %s3180_s25 }
 0x7f8   : > { %1746 = vrot.lane.b32.xlu0 %v1410_v58, %s3180_s25 }
 0x85e   : > { %v1527_v63 = vpop.permute.xlu0 %1526 }
 0x85f   : > { %2489 = vmatmul.mubr.msk.bf16.vlgmr.msra.gmra.mrb[20].mxu0 %vm698_vm2, %v1527_v63 }
 0x860   : > { %2499 = vmatpush3.bf16.xpose.msra.mxu0 %v1644_v1  ;;  %2500 = vmatprep.mubr.msk.bf16.mxu0 %vm2674_vm1, %v2673_v20 }
 0x861   : > { %2510 = vmatprep.subr.bf16.mxu0 %v2673_v20 }
 0x862   : > { %v1637_v2 = vpop.permute.xlu0 %1636 }
 0x866   : > { %v1749_v3 = vpop.permute.xlu0 %1748 }
 0x867   : > { %v1754_v4 = vsel %vm698_vm2, %v1749_v3, 0  ;;  %2501 = vmatmul.mubr.msk.bf16.vlgmr.msra.gmra.mrb[24].mxu0 %vm698_vm2, %v1637_v2 }
 0x868   : > { %2511 = vmatpush3.bf16.xpose.msra.mxu0 %v1754_v4  ;;  %2512 = vmatprep.mubr.msk.bf16.mxu0 %vm2674_vm1, %v2673_v20 }
 0x869   : > { %2522 = vmatprep.subr.bf16.mxu0 %v2673_v20 }
 0x86a   : > { %v1747_v5 = vpop.permute.xlu0 %1746 }
 0x86f   : > { %2513 = vmatmul.mubr.msk.bf16.vlgmr.msra.gmra.mrb[28].mxu0 %vm698_vm2, %v1747_v5 }
 0x870   : > { %2530 = vmatprep.mubr.msk.bf16.mxu0 %vm2674_vm1, %v2673_v20 }
 0x8bf   : > { %v1458_v7 = vpop.f32.mrb[28].mxu1 }
 0x8c0   : > { %v1459_v8 = vadd.f32 %v2293_v6, %v1458_v7  ;;  %v2478_v9 = vpop.f32.mrb[29].mxu1 }
 0x8c1   : > { %v1461_v10 = vpop.f32.mrb[30].mxu1 }
 0x8c2   : > { %v2479_v11 = vpop.f32.mrb[31].mxu1  ;;  %v1464_v12 = vsel %vm745_vm5, %v1459_v8, -inf }
 0x8c3   : > { %1465 = vmax.xlane.f32.xlu0 %v1464_v12 }
 0x932   : > { %v1570_v13 = vpop.f32.mrb[20].mxu0 }
 0x933   : > { %v1571_v14 = vadd.f32 %v2293_v6, %v1570_v13  ;;  %v2490_v15 = vpop.f32.mrb[21].mxu0 }
 0x934   : > { %v1573_v16 = vpop.f32.mrb[22].mxu0 }
 0x935   : > { %v2491_v17 = vpop.f32.mrb[23].mxu0  ;;  %v1576_v18 = vsel %vm745_vm5, %v1571_v14, -inf }
 0x936   : > { %1577 = vmax.xlane.f32.xlu1 %v1576_v18  ;;  %v2608_v17 = vld [vmem:[%s3154_s11] sm:$0xff]   ;;  %v2609_v18 = vld [vmem:[%s3154_s11 + $0x8] sm:$0xff]  }
 0x937   : > { %2523 = vmatpush3.bf16.msra.mxu0 %v2608_v17 }
 0x938   : > { %2524 = vmatprep.subr.bf16.mxu0 %v2673_v20 }
 0x93a   : > { %v1680_v19 = vpop.f32.mrb[24].mxu0 }
 0x93b   : > { %v1681_v21 = vadd.f32 %v2293_v6, %v1680_v19  ;;  %v2502_v22 = vpop.f32.mrb[25].mxu0  ;;  %2525 = vmatpush3.bf16.msra.mxu0 %v2609_v18  ;;  %v2610_v19 = vld [vmem:[%s3154_s11 + $0x10] sm:$0xff]  }
 0x93c   : > { %v1683_v23 = vpop.f32.mrb[26].mxu0  ;;  %2526 = vmatprep.subr.bf16.mxu0 %v2673_v20 }
 0x93d   : > { %v2503_v24 = vpop.f32.mrb[27].mxu0  ;;  %v1686_v25 = vsel %vm745_vm5, %v1681_v21, -inf }
 0x93e   : > { %1687 = vmax.xlane.f32.xlu1 %v1686_v25  ;;  %v2611_v25 = vld [vmem:[%s3154_s11 + $0x18] sm:$0xff]  }
 0x93f   : > { %2527 = vmatpush3.bf16.msra.mxu0 %v2610_v19 }
 0x940   : > { %2528 = vmatprep.subr.bf16.mxu0 %v2673_v20 }
 0x942   : > { %v1790_v26 = vpop.f32.mrb[28].mxu0 }
 0x943   : > { %v1791_v27 = vadd.f32 %v2293_v6, %v1790_v26  ;;  %v2514_v29 = vpop.f32.mrb[29].mxu0  ;;  %2529 = vmatpush3.bf16.msra.mxu0 %v2611_v25 }
 0x944   : > { %v1793_v30 = vpop.f32.mrb[30].mxu0  ;;  %2546 = vmatprep.subr.bf16.mxu0 %v2673_v20 }
 0x945   : > { %v2515_v32 = vpop.f32.mrb[31].mxu0  ;;  %v1796_v33 = vsel %vm745_vm5, %v1791_v27, -inf }
 0x946   : > { %1797 = vmax.xlane.f32.xlu1 %v1796_v33 }
 0x950   : > { %v1466_v34 = vpop.xlane.xlu0 %1465 }
 0x951   : > { %v1467_v35 = vsub.f32 %v1459_v8, %v1466_v34 }
 0x953   : > { %v1468_v36 = vmul.f32 1.442695, %v1467_v35 }
 0x955   : > { %2644 = vpow2.f32 %v1468_v36 }
 0x957   : > { %1477 = vrot.lane.b32.xlu1 %v2982_v50, %s3181_s22  ;;  %s561_s22 = scalar_lea.vmem %s3159_s16, %s2778_s23 }
 0x95f   : > { %v2645_v0 = vpop.eup %2644 }
 0x960   : > { %v1470_v37 = vsel %vm745_vm5, %v2645_v0, 0.0 }
 0x97b   : > { %1471 = vadd.xlane.f32.xlu1 %v1470_v37 }
 0x9c3   : > { %v1578_v38 = vpop.xlane.xlu1 %1577 }
 0x9c4   : > { %v1579_v39 = vsub.f32 %v1571_v14, %v1578_v38 }
 0x9c6   : > { %v1580_v40 = vmul.f32 1.442695, %v1579_v39 }
 0x9c8   : > { %2646 = vpow2.f32 %v1580_v40 }
 0x9cb   : > { %v1688_v41 = vpop.xlane.xlu1 %1687 }
 0x9cc   : > { %v1689_v42 = vsub.f32 %v1681_v21, %v1688_v41 }
 0x9ce   : > { %v1690_v43 = vmul.f32 1.442695, %v1689_v42 }
 0x9d0   : > { %2648 = vpow2.f32 %v1690_v43 }
 0x9d2   : > { %v2647_v44 = vpop.eup %2646 }
 0x9d3   : > { %v1798_v45 = vpop.xlane.xlu1 %1797  ;;  %v1582_v46 = vsel %vm745_vm5, %v2647_v44, 0.0 }
 0x9d4   : > { %v1799_v47 = vsub.f32 %v1791_v27, %v1798_v45  ;;  %1583 = vadd.xlane.f32.xlu1 %v1582_v46 }
 0x9d6   : > { %v1800_v31 = vmul.f32 1.442695, %v1799_v47 }
 0x9d7   : > { %v1478_v48 = vpop.permute.xlu1 %1477 }
 0x9d8   : > { %2650 = vpow2.f32 %v1800_v31  ;;  %v1483_v49 = vsel %vm761_vm3, %v1478_v48, 0  ;;  %v2612_v48 = vld [vmem:[%s3156_s13] sm:$0xff]  }
 0x9d9   : > { %2481 = vmatpush3.bf16.msra.mxu1 %v1483_v49  ;;  %v2613_v49 = vld [vmem:[%s3156_s13 + $0x8] sm:$0xff]  }
 0x9da   : > { %v2649_v51 = vpop.eup %2648  ;;  %2492 = vmatprep.subr.bf16.mxu1 %v2673_v20 }
 0x9db   : > { %v1692_v52 = vsel %vm745_vm5, %v2649_v51, 0.0 }
 0x9dc   : > { %1693 = vadd.xlane.f32.xlu1 %v1692_v52  ;;  %v2616_v52 = vld [vmem:[%s3157_s14] sm:$0xff]  }
 0x9e2   : > { %v2651_v53 = vpop.eup %2650 }
 0x9e3   : > { %v1802_v54 = vsel %vm745_vm5, %v2651_v53, 0.0 }
 0x9e4   : > { %1803 = vadd.xlane.f32.xlu0 %v1802_v54  ;;  %v2618_v54 = vld [vmem:[%s3157_s14 + $0x10] sm:$0xff]  }
 0x9ed   : > { %1698 = vrot.lane.b32.xlu1 %v2982_v50, %s3176_s19 }
 0x9f1   : > { %1808 = vrot.lane.b32.xlu1 %v2982_v50, %s3175_s0 }
 0x9fa   : > { %1588 = vrot.lane.b32.xlu0 %v2982_v50, %s3177_s27 }
 0xa08   : > { %v1472_v55 = vpop.xlane.xlu1 %1471 }
 0xa09   : > { %2652 = vrcp.f32 %v1472_v55  ;;  %v2619_v55 = vld [vmem:[%s3157_s14 + $0x18] sm:$0xff]  }
 0xa13   : > { %v2653_v56 = vpop.eup %2652 }
 0xa14   : > { %v1474_v57 = vmul.f32 %v2653_v56, %v2645_v0  ;;  %v2620_v56 = vld [vmem:[%s3157_s14 + $0x20] sm:$0xff]  }
 0xa16   : > { %v1475_v58 = vpack.c.bf16 %v1474_v57, %v1474_v57  ;;  %v2621_v57 = vld [vmem:[%s3157_s14 + $0x28] sm:$0xff]  }
 0xa18   : > { %2483 = vmatmul.mubr.msk.bf16.vlgmr.msra.gmra.mrb[32].mxu1 %vm745_vm5, %v1475_v58  ;;  %v2622_v58 = vld [vmem:[%s3157_s14 + $0x30] sm:$0xff]  }
 0xa19   : > { %2494 = vmatprep.mubr.msk.bf16.mxu1 %vm2674_vm1, %v2673_v20 }
 0xa61   : > { %v1584_v59 = vpop.xlane.xlu1 %1583 }
 0xa62   : > { %2654 = vrcp.f32 %v1584_v59 }
 0xa69   : > { %v1694_v60 = vpop.xlane.xlu1 %1693 }
 0xa6a   : > { %2656 = vrcp.f32 %v1694_v60 }
 0xa6c   : > { %v2655_v61 = vpop.eup %2654 }
 0xa6d   : > { %v1586_v63 = vmul.f32 %v2655_v61, %v2647_v44  ;;  %v1699_v2 = vpop.permute.xlu1 %1698 }
 0xa6e   : > { %v1704_v5 = vsel %vm761_vm3, %v1699_v2, 0 }
 0xa6f   : > { %v1587_v3 = vpack.c.bf16 %v1586_v63, %v1586_v63  ;;  %v2307_v63 = vld [vmem:[%s3155_s12] ss:$0 sm:$0xff] }
 0xa71   : > { %v1804_v62 = vpop.xlane.xlu0 %1803  ;;  %v1809_v7 = vpop.permute.xlu1 %1808 }
 0xa72   : > { %2658 = vrcp.f32 %v1804_v62  ;;  %v1814_v10 = vsel %vm761_vm3, %v1809_v7, 0 }
 0xa74   : > { %v2657_v4 = vpop.eup %2656 }
 0xa75   : > { %v1589_v1 = vpop.permute.xlu0 %1588  ;;  %v1696_v6 = vmul.f32 %v2657_v4, %v2649_v51  ;;  %v2615_v51 = vld [vmem:[%s3156_s13 + $0x18] sm:$0xff]  }
 0xa76   : > { %v1594_v50 = vsel %vm761_vm3, %v1589_v1, 0 }
 0xa77   : > { %2493 = vmatpush3.bf16.msra.mxu1 %v1594_v50  ;;  %v1697_v8 = vpack.c.bf16 %v1696_v6, %v1696_v6 }
 0xa78   : > { %2504 = vmatprep.subr.bf16.mxu1 %v2673_v20 }
 0xa7a   : > { %2495 = vmatmul.mubr.msk.bf16.vlgmr.msra.gmra.mrb[36].mxu1 %vm745_vm5, %v1587_v3  ;;  %v2623_v3 = vld [vmem:[%s3157_s14 + $0x38] sm:$0xff]  }
 0xa7b   : > { %2505 = vmatpush3.bf16.msra.mxu1 %v1704_v5  ;;  %2506 = vmatprep.mubr.msk.bf16.mxu1 %vm2674_vm1, %v2673_v20 }
 0xa7c   : > { %2516 = vmatprep.subr.bf16.mxu1 %v2673_v20  ;;  %v2659_v9 = vpop.eup %2658 }
 0xa7d   : > { %v1806_v11 = vmul.f32 %v2659_v9, %v2651_v53  ;;  %v2617_v53 = vld [vmem:[%s3157_s14 + $0x8] sm:$0xff]  }
 0xa7f   : > { %v1807_v12 = vpack.c.bf16 %v1806_v11, %v1806_v11 }
 0xa82   : > { %2507 = vmatmul.mubr.msk.bf16.vlgmr.msra.gmra.mrb[40].mxu1 %vm745_vm5, %v1697_v8 }
 0xa83   : > { %2517 = vmatpush3.bf16.msra.mxu1 %v1814_v10  ;;  %2518 = vmatprep.mubr.msk.bf16.mxu1 %vm2674_vm1, %v2673_v20 }
 0xa84   : > { %2534 = vmatprep.subr.bf16.mxu1 %v2673_v20 }
 0xa8a   : > { %2519 = vmatmul.mubr.msk.bf16.vlgmr.msra.gmra.mrb[44].mxu1 %vm745_vm5, %v1807_v12 }
 0xa8b   : > { %2542 = vmatprep.mubr.msk.bf16.mxu1 %vm2674_vm1, %v2673_v20  ;;  %2535 = vmatpush3.bf16.msra.mxu1 %v2612_v48 }
 0xa8c   : > { %2536 = vmatprep.subr.bf16.mxu1 %v2673_v20 }
 0xa8f   : > { %2537 = vmatpush3.bf16.msra.mxu1 %v2613_v49 }
 0xa90   : > { %2538 = vmatprep.subr.bf16.mxu1 %v2673_v20 }
 0xaeb   : > { %v1519_v13 = vpop.f32.mrb[32].mxu1 }
 0xaec   : > { %v2484_v14 = vpop.f32.mrb[33].mxu1 }
 0xaed   : > { %v1522_v15 = vpop.f32.mrb[34].mxu1 }
 0xaee   : > { %v2485_v16 = vpop.f32.mrb[35].mxu1 }
 0xb4d   : > { %v1630_v21 = vpop.f32.mrb[36].mxu1 }
 0xb4e   : > { %1857 = vrot.lane.b32.xlu0 %v1630_v21, %s3175_s0  ;;  %v2496_v22 = vpop.f32.mrb[37].mxu1  ;;  %v2321_v21 = vld [vmem:[%s3158_s15] ss:$0 sm:$0xff] }
 0xb4f   : > { %v1633_v23 = vpop.f32.mrb[38].mxu1 }
 0xb50   : > { %v2497_v24 = vpop.f32.mrb[39].mxu1 }
 0xb55   : > { %v1740_v26 = vpop.f32.mrb[40].mxu1 }
 0xb56   : > { %1861 = vrot.lane.b32.xlu1 %v1740_v26, %s3176_s19  ;;  %v2508_v27 = vpop.f32.mrb[41].mxu1 }
 0xb57   : > { %v1743_v29 = vpop.f32.mrb[42].mxu1 }
 0xb58   : > { %v2509_v30 = vpop.f32.mrb[43].mxu1 }
 0xb5d   : > { %v1850_v32 = vpop.f32.mrb[44].mxu1 }
 0xb5e   : > { %1865 = vrot.lane.b32.xlu0 %v1850_v32, %s3177_s27  ;;  %v2520_v33 = vpop.f32.mrb[45].mxu1 }
 0xb5f   : > { %v1853_v34 = vpop.f32.mrb[46].mxu1 }
 0xb60   : > { %v2521_v35 = vpop.f32.mrb[47].mxu1 }
 0xbc0   : > { %v1858_v36 = vpop.permute.xlu0 %1857 }
 0xbc1   : > { %v1868_v37 = vsel %vm698_vm2, %v1519_v13, %v1858_v36 }
 0xbc8   : > { %v1862_v0 = vpop.permute.xlu1 %1861 }
 0xbc9   : > { %v1869_v38 = vsel %vm1161_vm6, %v1868_v37, %v1862_v0 }
 0xbd0   : > { %v1866_v39 = vpop.permute.xlu0 %1865 }
 0xbd1   : > { %v1870_v40 = vsel %vm1163_vm7, %v1869_v38, %v1866_v39 }
 0xbd2   : > { %v1871_v41 = vpack.c.bf16 %v1870_v40, %v1870_v40 }
 0xbd4   : > { %2531 = vmatmul.mubr.msk.bf16.vlgmr.msra.gmra.mrb[32].mxu0 %vm575_vm0, %v1871_v41 }
 0xbd5   : > { %2562 = vmatprep.mubr.msk.bf16.mxu0 %vm2674_vm1, %v2673_v20  ;;  %2547 = vmatpush3.bf16.msra.mxu0 %v2616_v52 }
 0xbd6   : > { %2548 = vmatprep.subr.bf16.mxu0 %v2673_v20 }
 0xbd9   : > { %2549 = vmatpush3.bf16.msra.mxu0 %v2617_v53 }
 0xbda   : > { %2550 = vmatprep.subr.bf16.mxu0 %v2673_v20 }
 0xbdd   : > { %2551 = vmatpush3.bf16.msra.mxu0 %v2618_v54 }
 0xbde   : > { %2552 = vmatprep.subr.bf16.mxu0 %v2673_v20 }
 0xbe1   : > { %2553 = vmatpush3.bf16.msra.mxu0 %v2619_v55 }
 0xbe2   : > { %2554 = vmatprep.subr.bf16.mxu0 %v2673_v20 }
 0xbe5   : > { %2555 = vmatpush3.bf16.msra.mxu0 %v2620_v56 }
 0xbe6   : > { %2556 = vmatprep.subr.bf16.mxu0 %v2673_v20 }
 0xbe9   : > { %2557 = vmatpush3.bf16.msra.mxu0 %v2621_v57 }
 0xbea   : > { %2558 = vmatprep.subr.bf16.mxu0 %v2673_v20 }
 0xbed   : > { %2559 = vmatpush3.bf16.msra.mxu0 %v2622_v58 }
 0xbee   : > { %2560 = vmatprep.subr.bf16.mxu0 %v2673_v20 }
 0xbf1   : > { %2561 = vmatpush3.bf16.msra.mxu0 %v2623_v3 }
 0xca7   : > { %v1941_v42 = vpop.f32.mrb[32].mxu0 }
 0xca8   : > { %v1947_v43 = vadd.f32 %v1941_v42, %v2939_v28  ;;  %v2532_v44 = vpop.f32.mrb[33].mxu0  ;;  %v2614_v28 = vld [vmem:[%s3156_s13 + $0x10] sm:$0xff]  }
 0xca9   : > { %v1944_v45 = vpop.f32.mrb[34].mxu0  ;;  %2539 = vmatpush3.bf16.msra.mxu1 %v2614_v28 }
 0xcaa   : > { %v2533_v46 = vpop.f32.mrb[35].mxu0  ;;  %v1949_v47 = vmul.f32 %v1947_v43, %v1947_v43  ;;  %2540 = vmatprep.subr.bf16.mxu1 %v2673_v20 }
 0xcac   : > { %v1950_v31 = vsel %vm575_vm0, %v1949_v47, 0.0 }
 0xcad   : > { %1951 = vadd.xlane.f32.xlu1 %v1950_v31  ;;  %2541 = vmatpush3.bf16.msra.mxu1 %v2615_v51 }
 0xd3a   : > { %v1952_v59 = vpop.xlane.xlu1 %1951 }
 0xd3b   : > { %v1953_v60 = vmul.f32 0.015625, %v1952_v59 }
 0xd3d   : > { %v1954_v61 = vadd.f32 1e-06, %v1953_v60 }
 0xd3f   : > { %2660 = vrsqrt.f32 %v1954_v61 }
 0xd49   : > { %v2661_v62 = vpop.eup %2660 }
 0xd4a   : > { %v1956_v1 = vmul.f32 %v2661_v62, %v1947_v43 }
 0xd4c   : > { %v1963_v50 = vmul.f32 %v2307_v63, %v1956_v1 }
 0xd4e   : > { %v1964_v2 = vpack.c.bf16 %v1963_v50, %v1963_v50 }
 0xd50   : > { %2543 = vmatmul.mubr.msk.bf16.vlgmr.msra.gmra.mrb[48].mxu1 %vm575_vm0, %v1964_v2 }
 0xe23   : > { %v2034_v20 = vpop.f32.mrb[48].mxu1 }
 0xe24   : > { %v2040_v4 = vmax.f32 %v2034_v20, 0.0  ;;  %v2544_v5 = vpop.f32.mrb[49].mxu1 }
 0xe25   : > { %v2037_v6 = vpop.f32.mrb[50].mxu1 }
 0xe26   : > { %v2041_v7 = vpack.c.bf16 %v2040_v4, %v2040_v4  ;;  %v2545_v8 = vpop.f32.mrb[51].mxu1 }
 0xe28   : > { %2563 = vmatmul.mubr.bf16.vlgmr.msra.gmra.mrb[36].mxu0 %v2041_v7 }
 0xefb   : > { %v2140_v9 = vpop.f32.mrb[36].mxu0 }
 0xefc   : > { %v2146_v10 = vadd.f32 %v2140_v9, %v1947_v43  ;;  %v2564_v11 = vpop.f32.mrb[37].mxu0 }
 0xefd   : > { %v2143_v12 = vpop.f32.mrb[38].mxu0 }
 0xefe   : > { %v2565_v13 = vpop.f32.mrb[39].mxu0  ;;  %v2148_v14 = vmul.f32 %v2146_v10, %v2146_v10 }
 0xf00   : > { %v2149_v15 = vsel %vm575_vm0, %v2148_v14, 0.0 }
 0xf01   : > { %2150 = vadd.xlane.f32.xlu0 %v2149_v15 }
 0xf8e   : > { %v2151_v16 = vpop.xlane.xlu0 %2150 }
 0xf8f   : > { %v2152_v17 = vmul.f32 0.015625, %v2151_v16 }
 0xf91   : > { %v2153_v18 = vadd.f32 1e-06, %v2152_v17 }
 0xf93   : > { %2662 = vrsqrt.f32 %v2153_v18 }
 0xf9d   : > { %v2663_v19 = vpop.eup %2662 }
 0xf9e   : > { %v2155_v22 = vmul.f32 %v2663_v19, %v2146_v10 }
 0xfa0   : > { %v2162_v23 = vmul.f32 %v2321_v21, %v2155_v22 }
 0xfa2   : > { %2163 = vst.msk [vmem:[%s561_s22] sm:$0xff] %vm575_vm0, %v2162_v23 }
 0xfa3 PF: > { %s26_s21 = sadd.s32 1, %s2670_s21  }
 0xfa4   : > { %p23_p4 = scmp.ge.s32.totalorder %s26_s21, 4  }
 0xfa6   :  { %25 = sbr.rel (!%p23_p4) target bundleno = 2 (0x2), region = 126 }

</bundles_post_ra>
